<compile_context>
chip_gen: v7x
topology: tpu7x:2x2x1
jax: 0.10.0
libtpu: 0.0.40
codegen_flags: <defaults>
</compile_context>

<pallas_src>
import math
import jax
import jax.numpy as jnp
from jax.experimental import pallas as pl
from jax.experimental.pallas import tpu as pltpu


# ------------------------------- kernels ------------------------------------

def conv_relu_kernel(p_ref, w_ref, o_ref):
    """p_ref: (9*Cin, TM) bf16, w_ref: (Cout, 9*Cin) bf16, o_ref: (Cout, TM) bf16.

    One fused MXU matmul over K = 9*Cin, f32 accumulation, ReLU in f32,
    single store (no RMW through VMEM)."""
    acc = jnp.dot(w_ref[...], p_ref[...], preferred_element_type=jnp.float32)
    o_ref[...] = jnp.maximum(acc, 0.0).astype(o_ref.dtype)


def tail_kernel(p_ref, w_ref, o_ref):
    """Fused last conv + ReLU + AvgPool2d(2,2) + log_softmax.

    p_ref: (4*B, 9*Cin) bf16, rows ordered (oh, ow, b) over the 2x2 output map.
    w_ref: (9*Cin, 10)  bf16.
    o_ref: (B, 10) f32 log-probabilities."""
    y = jnp.dot(p_ref[...], w_ref[...], preferred_element_type=jnp.float32)
    y = jnp.maximum(y, 0.0)                                   # (4B, 10) f32
    b = o_ref.shape[0]
    # mean over the 2x2 window == mean of the four contiguous B-row slabs
    g = 0.25 * (y[0 * b:1 * b] + y[1 * b:2 * b] + y[2 * b:3 * b] + y[3 * b:4 * b])
    m = jnp.max(g, axis=1, keepdims=True)
    s = g - m
    lse = jnp.log(jnp.sum(jnp.exp(s), axis=1, keepdims=True))
    o_ref[...] = s - lse


# ------------------------------- glue ---------------------------------------

def _round_up(x, m):
    return (x + m - 1) // m * m


def _im2col(x_cbhw, stride, oh, ow):
    """(Cin, B, H, W) -> (9*Cin, B*OH*OW) tap-major im2col (plain-JAX glue)."""
    cin, b, _, _ = x_cbhw.shape
    taps = []
    for kh in range(3):
        for kw in range(3):
            taps.append(
                x_cbhw[:, :,
                       kh:kh + stride * (oh - 1) + 1:stride,
                       kw:kw + stride * (ow - 1) + 1:stride])
    return jnp.stack(taps, axis=0).reshape(9 * cin, b * oh * ow)


def conv_relu_layer(x_cbhw, w_packed, stride, *, tm=512):
    """Valid 3x3 conv (no bias) + ReLU.  x: (Cin,B,H,W), w_packed: (Cout,9*Cin) bf16."""
    cin, b, h, w = x_cbhw.shape
    cout, kp = w_packed.shape
    oh = (h - 3) // stride + 1
    ow = (w - 3) // stride + 1
    m = b * oh * ow

    p = _im2col(x_cbhw, stride, oh, ow).astype(jnp.bfloat16)       # (9*Cin, M)
    tm_eff = min(tm, _round_up(m, 128))
    m_pad = _round_up(m, tm_eff)
    p = jnp.pad(p, ((0, 0), (0, m_pad - m)))

    out = pl.pallas_call(
        conv_relu_kernel,
        grid=(m_pad // tm_eff,),
        in_specs=[
            pl.BlockSpec((kp, tm_eff), lambda i: (0, i)),    # patches: tiled over M
            pl.BlockSpec((cout, kp), lambda i: (0, 0)),      # weights: VMEM-resident
        ],
        out_specs=pl.BlockSpec((cout, tm_eff), lambda i: (0, i)),
        out_shape=jax.ShapeDtypeStruct((cout, m_pad), jnp.bfloat16),
        compiler_params=pltpu.CompilerParams(
            dimension_semantics=("parallel",),               # v7x: split M over 2 TCs
            allow_input_fusion=[True, False],                # fuse im2col producer
        ),
    )(p, w_packed)
    return out[:, :m].reshape(cout, b, oh, ow)


def tail(x_cbhw, w_packed):
    """Last conv (stride 2 -> 2x2 map) + AvgPool(2,2) + log_softmax in one kernel."""
    cin, b, h, w = x_cbhw.shape
    oh = (h - 3) // 2 + 1
    ow = (w - 3) // 2 + 1
    assert oh == 2 and ow == 2, "head expects a 2x2 pre-pool map"
    taps = [x_cbhw[:, :, kh:kh + 3:2, kw:kw + 3:2]
            for kh in range(3) for kw in range(3)]
    p = jnp.stack(taps, axis=0)                                # (9, Cin, B, 2, 2)
    p = jnp.transpose(p, (3, 4, 2, 0, 1)).reshape(4 * b, 9 * cin)  # rows: (oh, ow, b)
    p = p.astype(jnp.bfloat16)
    w_t = jnp.transpose(w_packed)                              # (9*Cin, 10) bf16
    return pl.pallas_call(
        tail_kernel,
        out_shape=jax.ShapeDtypeStruct((b, w_packed.shape[0]), jnp.float32),
    )(p, w_t)


def netconv_forward(x_nchw, packed_weights):
    """x_nchw: (B, 3, H, W) float32 -> (B, 10) log-probabilities."""
    w1, w2, w3, w4, w5 = packed_weights
    x = jnp.transpose(x_nchw.astype(jnp.float32), (1, 0, 2, 3))   # -> (C, B, H, W)
    x = conv_relu_layer(x, w1, 1)       # (16,  B, 62, 62)
    x = conv_relu_layer(x, w2, 2)       # (32,  B, 30, 30)
    x = conv_relu_layer(x, w3, 2)       # (64,  B, 14, 14)
    x = conv_relu_layer(x, w4, 2)       # (128, B,  6,  6)
    return tail(x, w5)                  # (B, 10)


# ---------------------------- params / packing ------------------------------

def weightittensor(key, inc, outc, ksz, g):
    """Deterministic analogue of the PyTorch init (uniform in +/- 1/sqrt(inc*k*k))."""
    wr = 1.0 / math.sqrt(inc * ksz * ksz)
    if inc == g:
        inc = 1
    return jax.random.uniform(key, (outc, inc, ksz, ksz),
                              dtype=jnp.float32, minval=-wr, maxval=wr)


def pack_conv_weight(w_oihw):
    """OIHW -> (Cout, 9*Cin) bf16 with K index = (kh*3+kw)*Cin + ci (matches im2col)."""
    cout, cin, kh, kw = w_oihw.shape
    return (jnp.transpose(w_oihw, (0, 2, 3, 1))
            .reshape(cout, kh * kw * cin)
            .astype(jnp.bfloat16))


# --------------------------------- main --------------------------------------

if __name__ == "__main__":
    key = jax.random.PRNGKey(0)
    kw1, kw2, kw3, kw4, kw5, kx = jax.random.split(key, 6)
    params_oihw = [
        weightittensor(kw1, 3, 16, 3, 1),     # (16, 3, 3, 3)
        weightittensor(kw2, 16, 32, 3, 1),    # (32, 16, 3, 3)
        weightittensor(kw3, 32, 64, 3, 1),    # (64, 32, 3, 3)
        weightittensor(kw4, 64, 128, 3, 1),   # (128, 64, 3, 3)
        weightittensor(kw5, 128, 10, 3, 1),   # (10, 128, 3, 3)
    ]
    # Pre-pack weights once, outside the jitted forward.
    packed = tuple(pack_conv_weight(w) for w in params_oihw)

    # Spatial 64 is the smallest size for which all five valid (no-pad) convs
    # (strides 1,2,2,2,2) and the final 2x2 average pool are well-defined:
    # 64 -> 62 -> 30 -> 14 -> 6 -> 2 -> 1.
    B = 2
    x = jax.random.normal(kx, (B, 3, 64, 64), dtype=jnp.float32)

    out = jax.jit(netconv_forward)(x, packed)
    jax.block_until_ready(out)
    assert out.shape == (B, 10)
    assert bool(jnp.all(jnp.isfinite(out)))
    print("KERNEL_OK")
</pallas_src>

<mosaic_0001>
module attributes {stable_mosaic.version = 11 : i64} {
  func.func @conv_relu_kernel(%arg0: i32, %arg1: memref<27x512xbf16, #tpu.memory_space<vmem>>, %arg2: memref<16x27xbf16, #tpu.memory_space<vmem>>, %arg3: memref<16x512xbf16, #tpu.memory_space<vmem>>) attributes {dimension_semantics = [#tpu.dimension_semantics<parallel>], iteration_bounds = array<i64: 16>, scalar_prefetch = 0 : i64, scratch_operands = 0 : i64, tpu.core_type = #tpu.core_type<tc>, window_params = [{transform_indices = @transform_0, window_bounds = array<i64: 27, 512>}, {pipeline_mode = #tpu.pipeline_mode<synchronous>, transform_indices = @transform_1, window_bounds = array<i64: 16, 27>}, {transform_indices = @transform_2, window_bounds = array<i64: 16, 512>}]} {
    %c0 = arith.constant 0 : index
    %c0_0 = arith.constant 0 : index
    %0 = vector.load %arg2[%c0, %c0_0] : memref<16x27xbf16, #tpu.memory_space<vmem>>, vector<16x27xbf16>
    %c0_1 = arith.constant 0 : index
    %c0_2 = arith.constant 0 : index
    %1 = vector.load %arg1[%c0_1, %c0_2] : memref<27x512xbf16, #tpu.memory_space<vmem>>, vector<27x512xbf16>
    %cst = arith.constant dense<0.000000e+00> : vector<16x512xf32>
    %2 = tpu.matmul %0, %1, %cst {dimension_numbers = #tpu.dot_dimension_numbers<[1], [0], [0], [1], [0, 0, 1, 1], [], []>} : vector<16x27xbf16>, vector<27x512xbf16>, vector<16x512xf32> -> vector<16x512xf32>
    %cst_3 = arith.constant 0.000000e+00 : f32
    %3 = vector.broadcast %cst_3 : f32 to vector<16x512xf32>
    %4 = arith.maximumf %2, %3 : vector<16x512xf32>
    %5 = arith.truncf %4 : vector<16x512xf32> to vector<16x512xbf16>
    %c0_4 = arith.constant 0 : index
    %c0_5 = arith.constant 0 : index
    %6 = vector.load %arg3[%c0_4, %c0_5] : memref<16x512xbf16, #tpu.memory_space<vmem>>, vector<16x512xbf16>
    tpu.vector_store %arg3[%c0_4, %c0_5], %5 {strides = array<i32>} : memref<16x512xbf16, #tpu.memory_space<vmem>>, vector<16x512xbf16>,
    return
  }
  func.func @transform_0(%arg0: i32) -> (i32, i32) {
    %c0_i32 = arith.constant 0 : i32
    %c0_i32_0 = arith.constant 0 : i32
    return %c0_i32, %arg0 : i32, i32
  }
  func.func @transform_1(%arg0: i32) -> (i32, i32) {
    %c0_i32 = arith.constant 0 : i32
    %c0_i32_0 = arith.constant 0 : i32
    %c0_i32_1 = arith.constant 0 : i32
    return %c0_i32, %c0_i32_0 : i32, i32
  }
  func.func @transform_2(%arg0: i32) -> (i32, i32) {
    %c0_i32 = arith.constant 0 : i32
    %c0_i32_0 = arith.constant 0 : i32
    return %c0_i32, %arg0 : i32, i32
  }
}

module attributes {stable_mosaic.version = 11 : i64} {
  func.func @conv_relu_kernel(%arg0: i32, %arg1: memref<144x512xbf16, #tpu.memory_space<vmem>>, %arg2: memref<32x144xbf16, #tpu.memory_space<vmem>>, %arg3: memref<32x512xbf16, #tpu.memory_space<vmem>>) attributes {dimension_semantics = [#tpu.dimension_semantics<parallel>], iteration_bounds = array<i64: 4>, scalar_prefetch = 0 : i64, scratch_operands = 0 : i64, tpu.core_type = #tpu.core_type<tc>, window_params = [{transform_indices = @transform_0, window_bounds = array<i64: 144, 512>}, {pipeline_mode = #tpu.pipeline_mode<synchronous>, transform_indices = @transform_1, window_bounds = array<i64: 32, 144>}, {transform_indices = @transform_2, window_bounds = array<i64: 32, 512>}]} {
    %c0 = arith.constant 0 : index
    %c0_0 = arith.constant 0 : index
    %0 = vector.load %arg2[%c0, %c0_0] : memref<32x144xbf16, #tpu.memory_space<vmem>>, vector<32x144xbf16>
    %c0_1 = arith.constant 0 : index
    %c0_2 = arith.constant 0 : index
    %1 = vector.load %arg1[%c0_1, %c0_2] : memref<144x512xbf16, #tpu.memory_space<vmem>>, vector<144x512xbf16>
    %cst = arith.constant dense<0.000000e+00> : vector<32x512xf32>
    %2 = tpu.matmul %0, %1, %cst {dimension_numbers = #tpu.dot_dimension_numbers<[1], [0], [0], [1], [0, 0, 1, 1], [], []>} : vector<32x144xbf16>, vector<144x512xbf16>, vector<32x512xf32> -> vector<32x512xf32>
    %cst_3 = arith.constant 0.000000e+00 : f32
    %3 = vector.broadcast %cst_3 : f32 to vector<32x512xf32>
    %4 = arith.maximumf %2, %3 : vector<32x512xf32>
    %5 = arith.truncf %4 : vector<32x512xf32> to vector<32x512xbf16>
    %c0_4 = arith.constant 0 : index
    %c0_5 = arith.constant 0 : index
    %6 = vector.load %arg3[%c0_4, %c0_5] : memref<32x512xbf16, #tpu.memory_space<vmem>>, vector<32x512xbf16>
    tpu.vector_store %arg3[%c0_4, %c0_5], %5 {strides = array<i32>} : memref<32x512xbf16, #tpu.memory_space<vmem>>, vector<32x512xbf16>,
    return
  }
  func.func @transform_0(%arg0: i32) -> (i32, i32) {
    %c0_i32 = arith.constant 0 : i32
    %c0_i32_0 = arith.constant 0 : i32
    return %c0_i32, %arg0 : i32, i32
  }
  func.func @transform_1(%arg0: i32) -> (i32, i32) {
    %c0_i32 = arith.constant 0 : i32
    %c0_i32_0 = arith.constant 0 : i32
    %c0_i32_1 = arith.constant 0 : i32
    return %c0_i32, %c0_i32_0 : i32, i32
  }
  func.func @transform_2(%arg0: i32) -> (i32, i32) {
    %c0_i32 = arith.constant 0 : i32
    %c0_i32_0 = arith.constant 0 : i32
    return %c0_i32, %arg0 : i32, i32
  }
}

module attributes {stable_mosaic.version = 11 : i64} {
  func.func @conv_relu_kernel(%arg0: i32, %arg1: memref<288x512xbf16, #tpu.memory_space<vmem>>, %arg2: memref<64x288xbf16, #tpu.memory_space<vmem>>, %arg3: memref<64x512xbf16, #tpu.memory_space<vmem>>) attributes {dimension_semantics = [#tpu.dimension_semantics<parallel>], iteration_bounds = array<i64: 1>, scalar_prefetch = 0 : i64, scratch_operands = 0 : i64, tpu.core_type = #tpu.core_type<tc>, window_params = [{transform_indices = @transform_0, window_bounds = array<i64: 288, 512>}, {pipeline_mode = #tpu.pipeline_mode<synchronous>, transform_indices = @transform_1, window_bounds = array<i64: 64, 288>}, {transform_indices = @transform_2, window_bounds = array<i64: 64, 512>}]} {
    %c0 = arith.constant 0 : index
    %c0_0 = arith.constant 0 : index
    %0 = vector.load %arg2[%c0, %c0_0] : memref<64x288xbf16, #tpu.memory_space<vmem>>, vector<64x288xbf16>
    %c0_1 = arith.constant 0 : index
    %c0_2 = arith.constant 0 : index
    %1 = vector.load %arg1[%c0_1, %c0_2] : memref<288x512xbf16, #tpu.memory_space<vmem>>, vector<288x512xbf16>
    %cst = arith.constant dense<0.000000e+00> : vector<64x512xf32>
    %2 = tpu.matmul %0, %1, %cst {dimension_numbers = #tpu.dot_dimension_numbers<[1], [0], [0], [1], [0, 0, 1, 1], [], []>} : vector<64x288xbf16>, vector<288x512xbf16>, vector<64x512xf32> -> vector<64x512xf32>
    %cst_3 = arith.constant 0.000000e+00 : f32
    %3 = vector.broadcast %cst_3 : f32 to vector<64x512xf32>
    %4 = arith.maximumf %2, %3 : vector<64x512xf32>
    %5 = arith.truncf %4 : vector<64x512xf32> to vector<64x512xbf16>
    %c0_4 = arith.constant 0 : index
    %c0_5 = arith.constant 0 : index
    %6 = vector.load %arg3[%c0_4, %c0_5] : memref<64x512xbf16, #tpu.memory_space<vmem>>, vector<64x512xbf16>
    tpu.vector_store %arg3[%c0_4, %c0_5], %5 {strides = array<i32>} : memref<64x512xbf16, #tpu.memory_space<vmem>>, vector<64x512xbf16>,
    return
  }
  func.func @transform_0(%arg0: i32) -> (i32, i32) {
    %c0_i32 = arith.constant 0 : i32
    %c0_i32_0 = arith.constant 0 : i32
    return %c0_i32, %arg0 : i32, i32
  }
  func.func @transform_1(%arg0: i32) -> (i32, i32) {
    %c0_i32 = arith.constant 0 : i32
    %c0_i32_0 = arith.constant 0 : i32
    %c0_i32_1 = arith.constant 0 : i32
    return %c0_i32, %c0_i32_0 : i32, i32
  }
  func.func @transform_2(%arg0: i32) -> (i32, i32) {
    %c0_i32 = arith.constant 0 : i32
    %c0_i32_0 = arith.constant 0 : i32
    return %c0_i32, %arg0 : i32, i32
  }
}

module attributes {stable_mosaic.version = 11 : i64} {
  func.func @conv_relu_kernel(%arg0: i32, %arg1: memref<576x128xbf16, #tpu.memory_space<vmem>>, %arg2: memref<128x576xbf16, #tpu.memory_space<vmem>>, %arg3: memref<128x128xbf16, #tpu.memory_space<vmem>>) attributes {dimension_semantics = [#tpu.dimension_semantics<parallel>], iteration_bounds = array<i64: 1>, scalar_prefetch = 0 : i64, scratch_operands = 0 : i64, tpu.core_type = #tpu.core_type<tc>, window_params = [{transform_indices = @transform_0, window_bounds = array<i64: 576, 128>}, {pipeline_mode = #tpu.pipeline_mode<synchronous>, transform_indices = @transform_1, window_bounds = array<i64: 128, 576>}, {transform_indices = @transform_2, window_bounds = array<i64: 128, 128>}]} {
    %c0 = arith.constant 0 : index
    %c0_0 = arith.constant 0 : index
    %0 = vector.load %arg2[%c0, %c0_0] : memref<128x576xbf16, #tpu.memory_space<vmem>>, vector<128x576xbf16>
    %c0_1 = arith.constant 0 : index
    %c0_2 = arith.constant 0 : index
    %1 = vector.load %arg1[%c0_1, %c0_2] : memref<576x128xbf16, #tpu.memory_space<vmem>>, vector<576x128xbf16>
    %cst = arith.constant dense<0.000000e+00> : vector<128x128xf32>
    %2 = tpu.matmul %0, %1, %cst {dimension_numbers = #tpu.dot_dimension_numbers<[1], [0], [0], [1], [0, 0, 1, 1], [], []>} : vector<128x576xbf16>, vector<576x128xbf16>, vector<128x128xf32> -> vector<128x128xf32>
    %cst_3 = arith.constant 0.000000e+00 : f32
    %3 = vector.broadcast %cst_3 : f32 to vector<128x128xf32>
    %4 = arith.maximumf %2, %3 : vector<128x128xf32>
    %5 = arith.truncf %4 : vector<128x128xf32> to vector<128x128xbf16>
    %c0_4 = arith.constant 0 : index
    %c0_5 = arith.constant 0 : index
    %6 = vector.load %arg3[%c0_4, %c0_5] : memref<128x128xbf16, #tpu.memory_space<vmem>>, vector<128x128xbf16>
    tpu.vector_store %arg3[%c0_4, %c0_5], %5 {strides = array<i32>} : memref<128x128xbf16, #tpu.memory_space<vmem>>, vector<128x128xbf16>,
    return
  }
  func.func @transform_0(%arg0: i32) -> (i32, i32) {
    %c0_i32 = arith.constant 0 : i32
    %c0_i32_0 = arith.constant 0 : i32
    return %c0_i32, %arg0 : i32, i32
  }
  func.func @transform_1(%arg0: i32) -> (i32, i32) {
    %c0_i32 = arith.constant 0 : i32
    %c0_i32_0 = arith.constant 0 : i32
    %c0_i32_1 = arith.constant 0 : i32
    return %c0_i32, %c0_i32_0 : i32, i32
  }
  func.func @transform_2(%arg0: i32) -> (i32, i32) {
    %c0_i32 = arith.constant 0 : i32
    %c0_i32_0 = arith.constant 0 : i32
    return %c0_i32, %arg0 : i32, i32
  }
}

module attributes {stable_mosaic.version = 11 : i64} {
  func.func @tail_kernel(%arg0: memref<8x1152xbf16, #tpu.memory_space<vmem>>, %arg1: memref<1152x10xbf16, #tpu.memory_space<vmem>>, %arg2: memref<2x10xf32, #tpu.memory_space<vmem>>) attributes {dimension_semantics = [], scalar_prefetch = 0 : i64, scratch_operands = 0 : i64, tpu.core_type = #tpu.core_type<tc>} {
    %c0 = arith.constant 0 : index
    %c0_0 = arith.constant 0 : index
    %0 = vector.load %arg0[%c0, %c0_0] : memref<8x1152xbf16, #tpu.memory_space<vmem>>, vector<8x1152xbf16>
    %c0_1 = arith.constant 0 : index
    %c0_2 = arith.constant 0 : index
    %1 = vector.load %arg1[%c0_1, %c0_2] : memref<1152x10xbf16, #tpu.memory_space<vmem>>, vector<1152x10xbf16>
    %cst = arith.constant dense<0.000000e+00> : vector<8x10xf32>
    %2 = tpu.matmul %0, %1, %cst {dimension_numbers = #tpu.dot_dimension_numbers<[1], [0], [0], [1], [0, 0, 1, 1], [], []>} : vector<8x1152xbf16>, vector<1152x10xbf16>, vector<8x10xf32> -> vector<8x10xf32>
    %cst_3 = arith.constant 0.000000e+00 : f32
    %3 = vector.broadcast %cst_3 : f32 to vector<8x10xf32>
    %4 = arith.maximumf %2, %3 : vector<8x10xf32>
    %5 = vector.extract_strided_slice %4 {offsets = [0, 0], sizes = [2, 10], strides = [1, 1]} : vector<8x10xf32> to vector<2x10xf32>
    %6 = vector.extract_strided_slice %4 {offsets = [2, 0], sizes = [2, 10], strides = [1, 1]} : vector<8x10xf32> to vector<2x10xf32>
    %7 = arith.addf %5, %6 : vector<2x10xf32>
    %8 = vector.extract_strided_slice %4 {offsets = [4, 0], sizes = [2, 10], strides = [1, 1]} : vector<8x10xf32> to vector<2x10xf32>
    %9 = arith.addf %7, %8 : vector<2x10xf32>
    %10 = vector.extract_strided_slice %4 {offsets = [6, 0], sizes = [2, 10], strides = [1, 1]} : vector<8x10xf32> to vector<2x10xf32>
    %11 = arith.addf %9, %10 : vector<2x10xf32>
    %cst_4 = arith.constant 2.500000e-01 : f32
    %12 = vector.broadcast %cst_4 : f32 to vector<2x10xf32>
    %13 = arith.mulf %12, %11 : vector<2x10xf32>
    %cst_5 = arith.constant dense<0xFF800000> : vector<2xf32>
    %14 = vector.multi_reduction <maximumf>, %13, %cst_5 [1] : vector<2x10xf32> to vector<2xf32>
    %15 = vector.shape_cast %14 : vector<2xf32> to vector<2x1xf32>
    %16 = vector.broadcast %15 : vector<2x1xf32> to vector<2x10xf32>
    %17 = arith.subf %13, %16 : vector<2x10xf32>
    %18 = math.exp %17 : vector<2x10xf32>
    %cst_6 = arith.constant dense<0.000000e+00> : vector<2xf32>
    %19 = vector.multi_reduction <add>, %18, %cst_6 [1] : vector<2x10xf32> to vector<2xf32>
    %20 = vector.shape_cast %19 : vector<2xf32> to vector<2x1xf32>
    %21 = math.log %20 : vector<2x1xf32>
    %22 = vector.broadcast %21 : vector<2x1xf32> to vector<2x10xf32>
    %23 = arith.subf %17, %22 : vector<2x10xf32>
    %c0_7 = arith.constant 0 : index
    %c0_8 = arith.constant 0 : index
    %24 = vector.load %arg2[%c0_7, %c0_8] : memref<2x10xf32, #tpu.memory_space<vmem>>, vector<2x10xf32>
    tpu.vector_store %arg2[%c0_7, %c0_8], %23 {strides = array<i32>} : memref<2x10xf32, #tpu.memory_space<vmem>>, vector<2x10xf32>,
    return
  }
}

</mosaic_0001>

<bundles_post_ra>
// kernel: netconv_forward.11
= control target key start
LH: loop header
LB: loop body
LE: loop exit
PB: predicated region body
PF: predicated region fallthrough
CT: control target
= control target key end

     0   :  { %s1500_s0 = inlined_call_operand.vmem [shape: bf16[16,27], index: 0, kind: input, shape index: {}]   ;;  %s1501_s1 = inlined_call_operand.vmem [shape: bf16[27,7688], index: 1, kind: input, shape index: {}]   ;;  %s1502_s2 = inlined_call_operand.<no memory space> [shape: bf16[], index: 2, kind: input, shape index: {}]   ;;  %s1503_s3 = inlined_call_operand.vmem [shape: bf16[16,8192], index: 3, kind: output, shape index: {}]  }
   0x1   :  { %v8_v0 = vstv %s1502_s2 }
   0x2   :  { %v1249_v1 = vunpack.i.l.bf16 %v8_v0 }
   0x3   :  { %s1251_s14 = smov 0   ;;  %s1253_s15 = smov 0  }
   0x4   :  { %s1255_s16 = smov 0  }
   0x5 LB: > { %s1264_s2 = sadd.s32 4294967295, %s1221_s16   ;;  %s1266_s17 = sadd.s32 1, %s1221_s16   ;;  %s1221_s16 = sphi %s1255_s16, %s1513_s16   ;;  %s1217_s15 = sphi %s1253_s15, %s1512_s15   ;;  %s1213_s14 = sphi %s1251_s14, %s1511_s14  }
   0x6   : > { %s69_s18 = ssub.s32 %s1221_s16, %s1266_s17  ;;  %s72_s19 = sadd.s32 1, %s1217_s15 }
   0x7   : > { %p70_p0 = scmp.eq.s32.totalorder %s69_s18, 0  ;;  %p82_p1 = scmp.ne.s32.totalorder %s1217_s15, %s1213_s14 }
   0x8   : > { %p83_p2 = scmp.eq.s32.totalorder %s1264_s2, 15  ;;  %p1058_p3 = scmp.ge.s32.totalorder %s1221_s16, 1 }
   0x9   : > { %s1274_s20 = scalar_select %p70_p0, %s1217_s15, %s72_s19  }
   0xa   : > { %p1276_p4 = por %p83_p2, %p82_p1  ;;  %p127_p5 = scmp.lt.s32.totalorder %s1221_s16, 17 }
   0xc   : > { %p128_p6 = pnand %p1058_p3, %p127_p5 }
   0xe   : > { %131 = sbr.rel (%p128_p6) target bundleno = 310 (0x136), region = 28 }
  0x15   : > { %s1281_s22 = sshll.u32 %s1264_s2, 2  ;;  %s1284_s23 = sshll.u32 %s1264_s2, 9  ;;  %v1223_v2 = vmov 0   ;;  %v192_v3 = vlaneseq  ;;  %v1224_v24 = vmov 0.0   ;;  %vm833_vm8 = vcmask 1044480  }
  0x16   : > { %p157_p7 = scmp.lt.s32.totalorder %s1281_s22, 60  ;;  %s167_s24 = ssub.s32 60, %s1281_s22  ;;  %881 = vmatprep.mubr.bf16.mxu0 %v1223_v2  ;;  %924 = vmatprep.mubr.bf16.mxu1 %v1223_v2  ;;  %v194_v5 = vstv %s1284_s23  ;;  %vm834_vm10 = vcmask 1045504   ;;  %vm829_vm11 = vcmask 220160  }
  0x17   : > { %p168_p8 = scmp.lt.s32.totalorder %s167_s24, 0  ;;  %s202_s25 = sadd.s32 1, %s1281_s22  ;;  %v1298_v4 = vand.u32 127, %v192_v3  ;;  %v645_v6 = vshrl.u32 %v192_v3, 7  ;;  %v183_v7 = vstv %s167_s24 }
  0x18   : > { %s158_s26 = scalar_select %p157_p7, %s1281_s22, 60  ;;  %vm184_vm0 = vcmp.lt.s32.totalorder %v183_v7, 0 }
  0x19   : > { %s169_s27 = scalar_select %p168_p8, 0, 255  ;;  %v195_v8 = vadd.s32 %v194_v5, %v1298_v4  ;;  %v1311_v9 = vadd.s32 24, %v645_v6 }
  0x1a   : > { %s1061_s28 = sshll.u32 %s158_s26, 2  ;;  %s1290_s29 = ssub.s32 60, %s202_s25 }
  0x1b   : > { %s1295_s5 = scalar_lea.vmem %s1501_s1, %s1061_s28  ;;  %s170_s6 = sshrl.u32 %s169_s27, 1  ;;  %vm196_vm1 = vcmp.lt.s32.totalorder %v195_v8, 7688  ;;  %vm647_vm2 = vcmp.lt.s32.totalorder %v1311_v9, 27  ;;  %v220_v34 = vstv %s1290_s29  ;;  %v1198_v9 = vld [vmem:[%s1500_s0] sm:$0xff]  }
  0x1c   : > { %s171_s7 = sor.u32 %s170_s6, %s169_s27  ;;  %p204_p9 = scmp.lt.s32.totalorder %s1290_s29, 0  ;;  %vm1359_vm3 = vcmp.lt.s32.totalorder %v220_v34, 0 }
  0x1d   : > { %s172_s8 = sand.u32 85, %s171_s7  ;;  %s1116_s9 = sadd.s32 128, %s1284_s23 }
  0x1e   : > { %s173_s10 = sshrl.u32 %s172_s8, 1  ;;  %s241_s11 = sadd.s32 2, %s1281_s22  ;;  %v232_v21 = vstv %s1116_s9 }
  0x1f   : > { %s174_s12 = sor.u32 %s173_s10, %s172_s8  ;;  %s1303_s13 = ssub.s32 60, %s241_s11  ;;  %v1348_v32 = vadd.s32 %v232_v21, %v1298_v4 }
  0x20   : > { %s175_s16 = sand.u32 51, %s174_s12  ;;  %p243_p10 = scmp.lt.s32.totalorder %s1303_s13, 0  ;;  %v259_v36 = vstv %s1303_s13 }
  0x21   : > { %s176_s18 = sshrl.u32 %s175_s16, 2  ;;  %s1118_s19 = sadd.s32 256, %s1284_s23  ;;  %vm234_vm4 = vcmp.lt.s32.totalorder %v1348_v32, 7688  ;;  %vm1367_vm5 = vcmp.lt.s32.totalorder %v259_v36, 0 }
  0x22   : > { %s177_s25 = sor.u32 %s176_s18, %s175_s16  ;;  %s280_s26 = sadd.s32 3, %s1281_s22  ;;  %v271_v29 = vstv %s1118_s19 }
  0x23   : > { %s178_s27 = sand.u32 15, %s177_s25  ;;  %s1309_s28 = ssub.s32 60, %s280_s26  ;;  %v1356_v37 = vadd.s32 %v271_v29, %v1298_v4 }
  0x24   : > { %v179_v10 = vld [vmem:[%s1295_s5] sm:%s178_s27]  ;;  %s205_s30 = scalar_select %p204_p9, 0, 255  ;;  %v1070_v11 = vld [vmem:[%s1295_s5 + $0xf4] sm:%s178_s27] }
  0x25   : > { %v180_v12 = vunpack.c.l.bf16 %v179_v10  ;;  %v332_v13 = vunpack.c.l.bf16 %v1070_v11  ;;  %s244_s24 = scalar_select %p243_p10, 0, 255  ;;  %v1078_v14 = vld [vmem:[%s1295_s5 + $0x1e8] sm:%s178_s27]  ;;  %v1086_v16 = vld [vmem:[%s1295_s5 + $0x2dc] sm:%s178_s27]  ;;  %vm273_vm6 = vcmp.lt.s32.totalorder %v1356_v37, 7688  ;;  %v1225_v37 = vmov 65535  }
  0x26   : > { %s206_s22 = sshrl.u32 %s205_s30, 1  ;;  %p282_p11 = scmp.lt.s32.totalorder %s1309_s28, 0  ;;  %v485_v15 = vunpack.c.l.bf16 %v1078_v14  ;;  %v638_v19 = vunpack.c.l.bf16 %v1086_v16  ;;  %v298_v10 = vstv %s1309_s28 }
  0x27   : > { %v185_v17 = vsel %vm184_vm0, %v1249_v1, %v180_v12  ;;  %s207_s4 = sor.u32 %s206_s22, %s205_s30  ;;  %v337_v18 = vsel %vm184_vm0, %v1249_v1, %v332_v13  ;;  %s245_s6 = sshrl.u32 %s244_s24, 1  ;;  %vm1443_vm7 = vcmp.lt.s32.totalorder %v298_v10, 0 }
  0x28   : > { %v197_v20 = vsel %vm196_vm1, %v185_v17, %v1249_v1  ;;  %s208_s7 = sand.u32 85, %s207_s4  ;;  %v349_v22 = vsel %vm196_vm1, %v337_v18, %v1249_v1  ;;  %s246_s8 = sor.u32 %s245_s6, %s244_s24  ;;  %v490_v23 = vsel %vm184_vm0, %v1249_v1, %v485_v15  ;;  %v643_v28 = vsel %vm184_vm0, %v1249_v1, %v638_v19 }
  0x29   : > { %v198_v25 = vpack.c.bf16 %v1224_v24, %v197_v20  ;;  %s209_s10 = sshrl.u32 %s208_s7, 1  ;;  %v351_v26 = vpack.c.bf16 %v1224_v24, %v349_v22  ;;  %s247_s11 = sand.u32 85, %s246_s8  ;;  %v502_v27 = vsel %vm196_vm1, %v490_v23, %v1249_v1  ;;  %v648_v31 = vsel %vm647_vm2, %v643_v28, %v1249_v1 }
  0x2a   : > { %s210_s9 = sor.u32 %s209_s10, %s208_s7  ;;  %s248_s12 = sshrl.u32 %s247_s11, 1  ;;  %v504_v30 = vpack.c.bf16 %v1224_v24, %v502_v27  ;;  %v655_v33 = vsel %vm196_vm1, %v648_v31, %v1249_v1 }
  0x2b   : > { %200 = vst [vmem:[#allocation8] sm:$0xf] %v198_v25  ;;  %s211_s16 = sand.u32 51, %s210_s9  ;;  %353 = vst [vmem:[#allocation8 + $0x10] sm:$0xf] %v351_v26  ;;  %s249_s18 = sor.u32 %s248_s12, %s247_s11  ;;  %v657_v35 = vpack.c.bf16 %v1224_v24, %v655_v33 }
  0x2c   : > { %s212_s19 = sshrl.u32 %s211_s16, 2  ;;  %s250_s25 = sand.u32 51, %s249_s18  ;;  %506 = vst [vmem:[#allocation8 + $0x20] sm:$0xf] %v504_v30 }
  0x2d   : > { %s213_s26 = sor.u32 %s212_s19, %s211_s16  ;;  %s251_s27 = sshrl.u32 %s250_s25, 2  ;;  %659 = vst [vmem:[#allocation8 + $0x30] sm:$0xf] %v657_v35 }
  0x2e   : > { %s214_s30 = sand.u32 15, %s213_s26  ;;  %s252_s24 = sor.u32 %s251_s27, %s250_s25 }
  0x2f   : > { %v1064_v38 = vld [vmem:[%s1295_s5 + $0x4] sm:%s214_s30]  ;;  %v1072_v40 = vld [vmem:[%s1295_s5 + $0xf8] sm:%s214_s30]  ;;  %s253_s29 = sand.u32 15, %s252_s24  ;;  %s1120_s22 = sadd.s32 384, %s1284_s23 }
  0x30   : > { %v216_v41 = vunpack.c.l.bf16 %v1064_v38  ;;  %v369_v42 = vunpack.c.l.bf16 %v1072_v40  ;;  %v1066_v43 = vld [vmem:[%s1295_s5 + $0x8] sm:%s253_s29]  ;;  %s283_s13 = scalar_select %p282_p11, 0, 255  ;;  %v310_v45 = vstv %s1120_s22  ;;  %v835_v38 = vsel %vm833_vm8, 4294967295, %v1225_v37 }
  0x31   : > { %v255_v46 = vunpack.c.l.bf16 %v1066_v43  ;;  %v1074_v47 = vld [vmem:[%s1295_s5 + $0xfc] sm:%s253_s29]  ;;  %v1080_v48 = vld [vmem:[%s1295_s5 + $0x1ec] sm:%s214_s30]  ;;  %v311_v13 = vadd.s32 %v310_v45, %v1298_v4  ;;  %s149_s16 = sand.u32 1, %s1213_s14   ;;  %s1146_s14 = sshll.u32 (%p1276_p4), %s1264_s2, 4 }
  0x32   : > { %v222_v49 = vsel %vm1359_vm3, %v1249_v1, %v216_v41  ;;  %v375_v50 = vsel %vm1359_vm3, %v1249_v1, %v369_v42  ;;  %s284_s23 = sshrl.u32 %s283_s13, 1  ;;  %v408_v51 = vunpack.c.l.bf16 %v1074_v47  ;;  %v522_v52 = vunpack.c.l.bf16 %v1080_v48  ;;  %v1088_v53 = vld [vmem:[%s1295_s5 + $0x2e0] sm:%s214_s30]  ;;  %v1082_v57 = vld [vmem:[%s1295_s5 + $0x1f0] sm:%s253_s29]  ;;  %s1059_s18 = sshll.u32 %s149_s16, 5 }
  0x33   : > { %v235_v54 = vsel %vm234_vm4, %v222_v49, %v1249_v1  ;;  %v388_v55 = vsel %vm234_vm4, %v375_v50, %v1249_v1  ;;  %v261_v56 = vsel %vm1367_vm5, %v1249_v1, %v255_v46  ;;  %s285_s4 = sor.u32 %s284_s23, %s283_s13  ;;  %v1090_v58 = vld [vmem:[%s1295_s5 + $0x2e4] sm:%s253_s29]  ;;  %v675_v3 = vunpack.c.l.bf16 %v1088_v53  ;;  %v1190_v36 = vld [vmem:[#allocation8] ss:$16 sps:$4 sm:$0xff]   ;;  %s151_s19 = scalar_lea.vmem [#allocation7], %s1059_s18 }
  0x34   : > { %v237_v59 = vpack.c.bf16 %v1224_v24, %v235_v54  ;;  %v390_v60 = vpack.c.bf16 %v1224_v24, %v388_v55  ;;  %v274_v61 = vsel %vm273_vm6, %v261_v56, %v1249_v1  ;;  %s286_s6 = sand.u32 85, %s285_s4  ;;  %v414_v62 = vsel %vm1367_vm5, %v1249_v1, %v408_v51  ;;  %s980_s27 = scalar_lea.vmem (%p1276_p4), %s1503_s3, %s1146_s14 }
  0x35   : > { %v276_v63 = vpack.c.bf16 %v1224_v24, %v274_v61  ;;  %s287_s7 = sshrl.u32 %s286_s6, 1  ;;  %v427_v0 = vsel %vm273_vm6, %v414_v62, %v1249_v1  ;;  %v528_v2 = vsel %vm1359_vm3, %v1249_v1, %v522_v52  ;;  %v561_v7 = vunpack.c.l.bf16 %v1082_v57  ;;  %v1196_v52 = vld [vmem:[#allocation8 + $0x20] ss:$16 sps:$4 sm:$0x3f]  }
  0x36   : > { %239 = vst [vmem:[#allocation8 + $0x4] sm:$0xf] %v237_v59  ;;  %392 = vst [vmem:[#allocation8 + $0x14] sm:$0xf] %v390_v60  ;;  %s288_s8 = sor.u32 %s287_s7, %s286_s6  ;;  %v429_v5 = vpack.c.bf16 %v1224_v24, %v427_v0  ;;  %v541_v6 = vsel %vm234_vm4, %v528_v2, %v1249_v1  ;;  %v714_v8 = vunpack.c.l.bf16 %v1090_v58  ;;  %v681_v12 = vsel %vm1359_vm3, %v1249_v1, %v675_v3 }
  0x37   : > { %278 = vst [vmem:[#allocation8 + $0x8] sm:$0xf] %v276_v63  ;;  %s289_s10 = sand.u32 51, %s288_s8  ;;  %v543_v11 = vpack.c.bf16 %v1224_v24, %v541_v6  ;;  %v686_v14 = vsel %vm647_vm2, %v681_v12, %v1249_v1  ;;  %v567_v15 = vsel %vm1367_vm5, %v1249_v1, %v561_v7  ;;  %vm312_vm9 = vcmp.lt.s32.totalorder %v311_v13, 7688 }
  0x38   : > { %s290_s11 = sshrl.u32 %s289_s10, 2  ;;  %431 = vst [vmem:[#allocation8 + $0x18] sm:$0xf] %v429_v5  ;;  %v720_v16 = vsel %vm1367_vm5, %v1249_v1, %v714_v8  ;;  %v694_v4 = vsel %vm234_vm4, %v686_v14, %v1249_v1  ;;  %v580_v17 = vsel %vm273_vm6, %v567_v15, %v1249_v1  ;;  %v836_v49 = vsel %vm834_vm10, %v835_v38, 0 }
  0x39   : > { %s291_s28 = sor.u32 %s290_s11, %s289_s10  ;;  %545 = vst [vmem:[#allocation8 + $0x24] sm:$0xf] %v543_v11  ;;  %v725_v18 = vsel %vm647_vm2, %v720_v16, %v1249_v1  ;;  %v696_v19 = vpack.c.bf16 %v1224_v24, %v694_v4  ;;  %v582_v20 = vpack.c.bf16 %v1224_v24, %v580_v17  ;;  %v838_v54 = vand.u32 %v1196_v52, %v836_v49 }
  0x3a   : > { %s292_s9 = sand.u32 15, %s291_s28  ;;  %v733_v21 = vsel %vm273_vm6, %v725_v18, %v1249_v1 }
  0x3b   : > { %v1068_v22 = vld [vmem:[%s1295_s5 + $0xc] sm:%s292_s9]  ;;  %v1076_v25 = vld [vmem:[%s1295_s5 + $0x100] sm:%s292_s9]  ;;  %v735_v26 = vpack.c.bf16 %v1224_v24, %v733_v21  ;;  %698 = vst [vmem:[#allocation8 + $0x34] sm:$0xf] %v696_v19  ;;  %584 = vst [vmem:[#allocation8 + $0x28] sm:$0xf] %v582_v20 }
  0x3c   : > { %v294_v27 = vunpack.c.l.bf16 %v1068_v22  ;;  %v447_v28 = vunpack.c.l.bf16 %v1076_v25  ;;  %v1084_v29 = vld [vmem:[%s1295_s5 + $0x1f4] sm:%s292_s9]  ;;  %v1092_v30 = vld [vmem:[%s1295_s5 + $0x2e8] sm:%s292_s9] }
  0x3d   : > { %v1186_v31 = vld [vmem:[#allocation8 + $0x4] ss:$16 sps:$4 sm:$0xff]   ;;  %v600_v32 = vunpack.c.l.bf16 %v1084_v29  ;;  %737 = vst [vmem:[#allocation8 + $0x38] sm:$0xf] %v735_v26  ;;  %v753_v33 = vunpack.c.l.bf16 %v1092_v30 }
  0x3e   : > { %v300_v34 = vsel %vm1443_vm7, %v1249_v1, %v294_v27  ;;  %v453_v35 = vsel %vm1443_vm7, %v1249_v1, %v447_v28  ;;  %849 = vmatprep.subr.bf16.mxu0 %v1186_v31 }
  0x3f   : > { %v313_v39 = vsel %vm312_vm9, %v300_v34, %v1249_v1  ;;  %v466_v40 = vsel %vm312_vm9, %v453_v35, %v1249_v1  ;;  %v606_v41 = vsel %vm1443_vm7, %v1249_v1, %v600_v32  ;;  %v759_v42 = vsel %vm1443_vm7, %v1249_v1, %v753_v33  ;;  %850 = vmatpush1.bf16.msra.mxu0 %v1190_v36  ;;  %v1191_v56 = vld [vmem:[#allocation8 + $0x8] ss:$16 sps:$4 sm:$0xff]  }
  0x40   : > { %v315_v43 = vpack.c.bf16 %v1224_v24, %v313_v39  ;;  %v468_v44 = vpack.c.bf16 %v1224_v24, %v466_v40  ;;  %v619_v45 = vsel %vm312_vm9, %v606_v41, %v1249_v1  ;;  %v764_v46 = vsel %vm647_vm2, %v759_v42, %v1249_v1 }
  0x41   : > { %v621_v47 = vpack.c.bf16 %v1224_v24, %v619_v45  ;;  %v772_v48 = vsel %vm312_vm9, %v764_v46, %v1249_v1 }
  0x42   : > { %317 = vst [vmem:[#allocation8 + $0xc] sm:$0xf] %v315_v43  ;;  %470 = vst [vmem:[#allocation8 + $0x1c] sm:$0xf] %v468_v44  ;;  %v774_v50 = vpack.c.bf16 %v1224_v24, %v772_v48 }
  0x43   : > { %v1192_v51 = vld [vmem:[#allocation8 + $0x24] ss:$16 sps:$4 sm:$0x3f]   ;;  %623 = vst [vmem:[#allocation8 + $0x2c] sm:$0xf] %v621_v47 }
  0x44   : > { %776 = vst [vmem:[#allocation8 + $0x3c] sm:$0xf] %v774_v50  ;;  %v841_v53 = vand.u32 %v1192_v51, %v836_v49  ;;  %v1197_v24 = vld [vmem:[#allocation8 + $0x28] ss:$16 sps:$4 sm:$0x3f]  }
  0x45   : > { %v844_v59 = vand.u32 %v1197_v24, %v836_v49 }
  0x46   : > { %851 = vmatprep.subr.bf16.mxu0 %v841_v53 }
  0x47   : > { %852 = vmatpush1.bf16.msra.mxu0 %v838_v54 }
  0x49   : > { %v1188_v55 = vld [vmem:[#allocation8 + $0xc] ss:$16 sps:$4 sm:$0xff]  }
  0x4a   : > { %892 = vmatprep.subr.bf16.mxu1 %v1188_v55  ;;  %1103 = vmatmul.mubr.msk.bf16.vlgmr.msra.gmra.mrb[0].mxu0 %vm829_vm11, %v1198_v9 }
  0x4b   : > { %v1194_v57 = vld [vmem:[#allocation8 + $0x2c] ss:$16 sps:$4 sm:$0x3f]   ;;  %893 = vmatpush1.bf16.msra.mxu1 %v1191_v56 }
  0x4c   : > { %v847_v58 = vand.u32 %v1194_v57, %v836_v49 }
  0x4e   : > { %894 = vmatprep.subr.bf16.mxu1 %v847_v58 }
  0x4f   : > { %895 = vmatpush1.bf16.msra.mxu1 %v844_v59 }
  0x52   : > { %1104 = vmatmul.mubr.msk.bf16.vlgmr.msra.gmra.mrb[0].mxu1 %vm829_vm11, %v1198_v9 }
 0x11d   : > { %v883_v60 = vpop.f32.mrb[0].mxu0 }
 0x11e   : > { %v935_v61 = vmax.f32 %v883_v60, 0.0  ;;  %v885_v62 = vpop.f32.mrb[1].mxu0 }
 0x11f   : > { %v936_v63 = vmax.f32 %v885_v62, 0.0  ;;  %v887_v0 = vpop.f32.mrb[2].mxu0 }
 0x120   : > { %v939_v2 = vmax.f32 %v887_v0, 0.0  ;;  %v889_v3 = vpop.f32.mrb[3].mxu0 }
 0x121   : > { %v1142_v5 = vpack.c.bf16 %v936_v63, %v935_v61  ;;  %v940_v6 = vmax.f32 %v889_v3, 0.0 }
 0x123   : > { %967 = vst [vmem:[%s151_s19] sm:$0xff] %v1142_v5  ;;  %v1144_v7 = vpack.c.bf16 %v940_v6, %v939_v2 }
 0x125   : > { %v926_v8 = vpop.f32.mrb[0].mxu1  ;;  %969 = vst [vmem:[%s151_s19 + $0x10] sm:$0xff] %v1144_v7 }
 0x126   : > { %v937_v10 = vmax.f32 %v926_v8, 0.0  ;;  %v928_v11 = vpop.f32.mrb[1].mxu1 }
 0x127   : > { %v938_v12 = vmax.f32 %v928_v11, 0.0  ;;  %v930_v13 = vpop.f32.mrb[2].mxu1  ;;  %977 = sbr.rel (!%p1276_p4) target bundleno = 310 (0x136), region = 32 }
 0x128   : > { %v941_v14 = vmax.f32 %v930_v13, 0.0  ;;  %v932_v15 = vpop.f32.mrb[3].mxu1 }
 0x129   : > { %v1143_v16 = vpack.c.bf16 %v938_v12, %v937_v10  ;;  %v942_v4 = vmax.f32 %v932_v15, 0.0 }
 0x12a   : > { %v993_v18 = vld [vmem:[%s151_s19] sm:$0xff] (%p1276_p4) }
 0x12b   : > { %968 = vst [vmem:[%s151_s19 + $0x8] sm:$0xff] %v1143_v16  ;;  %v1145_v17 = vpack.c.bf16 %v942_v4, %v941_v14  ;;  %994 = vst [vmem:[%s980_s27] sm:$0xff] (%p1276_p4), %v993_v18 }
 0x12c   : > { %v997_v20 = vld [vmem:[%s151_s19 + $0x10] sm:$0xff] (%p1276_p4) }
 0x12d   : > { %970 = vst [vmem:[%s151_s19 + $0x18] sm:$0xff] %v1145_v17  ;;  %998 = vst [vmem:[%s980_s27 + $0x100] sm:$0xff] (%p1276_p4), %v997_v20 }
 0x132   : > { %v995_v19 = vld [vmem:[%s151_s19 + $0x8] sm:$0xff] }
 0x133   : > { %996 = vst [vmem:[%s980_s27 + $0x8] sm:$0xff] %v995_v19 }
 0x134   : > { %v999_v21 = vld [vmem:[%s151_s19 + $0x18] sm:$0xff] }
 0x135   : > { %1000 = vst [vmem:[%s980_s27 + $0x108] sm:$0xff] %v999_v21 }
 0x136 PF: > { %p15_p12 = scmp.ge.s32.totalorder %s1266_s17, 18   ;;  %s1511_s14 = smov %s1217_s15 }
 0x137   : > { %s1512_s15 = smov %s1274_s20  ;;  %s1513_s16 = smov %s1266_s17 }
 0x138   :  { %17 = sbr.rel (!%p15_p12) target bundleno = 5 (0x5), region = 111 }

// kernel: netconv_forward.10
= control target key start
LH: loop header
LB: loop body
LE: loop exit
PB: predicated region body
PF: predicated region fallthrough
CT: control target
= control target key end

     0   :  { %s3637_s0 = inlined_call_operand.vmem [shape: bf16[32,144], index: 0, kind: input, shape index: {}]   ;;  %s3638_s1 = inlined_call_operand.vmem [shape: bf16[144,1800], index: 1, kind: input, shape index: {}]   ;;  %s3639_s2 = inlined_call_operand.<no memory space> [shape: bf16[], index: 2, kind: input, shape index: {}]   ;;  %s3640_s3 = inlined_call_operand.vmem [shape: bf16[32,2048], index: 3, kind: output, shape index: {}]  }
   0x1   :  { %v8_v0 = vstv %s3639_s2 }
   0x2   :  { %v2993_v1 = vunpack.i.l.bf16 %v8_v0 }
   0x3   :  { %s2995_s14 = smov 0   ;;  %s2997_s15 = smov 0  }
   0x4   :  { %s2999_s16 = smov 0  }
   0x5 LB: > { %s3008_s2 = sadd.s32 4294967295, %s2967_s16   ;;  %s3010_s17 = sadd.s32 1, %s2967_s16   ;;  %s2967_s16 = sphi %s2999_s16, %s3648_s16   ;;  %s2963_s15 = sphi %s2997_s15, %s3647_s15   ;;  %s2959_s14 = sphi %s2995_s14, %s3646_s14  }
   0x6   : > { %s69_s18 = ssub.s32 %s2967_s16, %s3010_s17  ;;  %s72_s19 = sadd.s32 1, %s2963_s15 }
   0x7   : > { %p70_p0 = scmp.eq.s32.totalorder %s69_s18, 0  ;;  %p82_p1 = scmp.ne.s32.totalorder %s2963_s15, %s2959_s14 }
   0x8   : > { %p83_p2 = scmp.eq.s32.totalorder %s3008_s2, 3  ;;  %p2466_p3 = scmp.ge.s32.totalorder %s2967_s16, 1 }
   0x9   : > { %s3018_s20 = scalar_select %p70_p0, %s2963_s15, %s72_s19  }
   0xa   : > { %p3020_p4 = por %p83_p2, %p82_p1  ;;  %p127_p5 = scmp.lt.s32.totalorder %s2967_s16, 5 }
   0xc   : > { %p128_p6 = pnand %p2466_p3, %p127_p5 }
   0xe   : > { %131 = sbr.rel (%p128_p6) target bundleno = 344 (0x158), region = 28 }
  0x15   : > { %s3025_s22 = sshll.u32 %s3008_s2, 2  ;;  %s3028_s23 = sshll.u32 %s3008_s2, 9  ;;  %v171_v2 = vlaneseq  ;;  %vm2186_vm0 = vcmask 130048   ;;  %v2938_v4 = vld [vmem:[%s3637_s0 + $0x4] ss:$8 sps:$4 sm:$0xff]   ;;  %v2969_v29 = vmov 0.0  }
  0x16   : > { %p157_p7 = scmp.lt.s32.totalorder %s3025_s22, 14  ;;  %v173_v3 = vstv %s3028_s23  ;;  %s2673_s24 = sadd.s32 128, %s3028_s23  ;;  %2654 = vmatprep.mubr.msk.bf16.mxu0 %vm2186_vm0, %v2938_v4  ;;  %2656 = vmatprep.mubr.msk.bf16.mxu1 %vm2186_vm0, %v2938_v4 }
  0x17   : > { %v3036_v5 = vand.u32 127, %v171_v2  ;;  %v188_v6 = vstv %s2673_s24  ;;  %s197_s27 = sadd.s32 2, %s3025_s22  ;;  %s2675_s28 = sadd.s32 256, %s3028_s23 }
  0x18   : > { %s158_s29 = scalar_select %p157_p7, %s3025_s22, 14  ;;  %v222_v9 = vstv %s2675_s28 }
  0x19   : > { %v3044_v7 = vadd.s32 %v173_v3, %v3036_v5  ;;  %v3047_v8 = vadd.s32 %v188_v6, %v3036_v5  ;;  %s3049_s30 = ssub.s32 14, %s197_s27  ;;  %v3063_v13 = vadd.s32 %v222_v9, %v3036_v5  ;;  %s231_s9 = sadd.s32 3, %s3025_s22 }
  0x1a   : > { %s2469_s4 = sshll.u32 %s158_s29, 2  ;;  %p199_p8 = scmp.lt.s32.totalorder %s3049_s30, 0  ;;  %v215_v12 = vstv %s3049_s30 }
  0x1b   : > { %s3055_s7 = scalar_lea.vmem %s3638_s1, %s2469_s4  ;;  %vm175_vm1 = vcmp.lt.s32.totalorder %v3044_v7, 1800  ;;  %vm190_vm2 = vcmp.lt.s32.totalorder %v3047_v8, 1800  ;;  %s2677_s10 = sadd.s32 384, %s3028_s23  ;;  %vm3081_vm3 = vcmp.lt.s32.totalorder %v215_v12, 0  ;;  %vm224_vm4 = vcmp.lt.s32.totalorder %v3063_v13, 1800 }
  0x1c   : > { %v167_v10 = vld [vmem:[%s3055_s7] sm:$0xff]   ;;  %s200_s8 = scalar_select %p199_p8, 0, 255  ;;  %v2486_v14 = vld [vmem:[%s3055_s7 + $0x78] sm:$0xff]   ;;  %v256_v19 = vstv %s2677_s10  ;;  %v2502_v28 = vld [vmem:[%s3055_s7 + $0xf0] sm:$0xff]  }
  0x1d   : > { %v2478_v11 = vld [vmem:[%s3055_s7 + $0x3c] sm:$0xff]   ;;  %v168_v15 = vunpack.c.l.bf16 %v167_v10  ;;  %v182_v16 = vunpack.c.h.bf16 %v167_v10  ;;  %v365_v20 = vunpack.c.l.bf16 %v2486_v14  ;;  %v380_v21 = vunpack.c.h.bf16 %v2486_v14  ;;  %v2494_v22 = vld [vmem:[%s3055_s7 + $0xb4] sm:$0xff]   ;;  %s3091_s16 = ssub.s32 14, %s231_s9  ;;  %v2510_v34 = vld [vmem:[%s3055_s7 + $0x12c] sm:$0xff]  }
  0x1e   : > { %v266_v17 = vunpack.c.l.bf16 %v2478_v11  ;;  %v281_v18 = vunpack.c.h.bf16 %v2478_v11  ;;  %s201_s11 = sshrl.u32 %s200_s8, 1  ;;  %v249_v35 = vstv %s3091_s16  ;;  %v464_v38 = vunpack.c.l.bf16 %v2494_v22  ;;  %p233_p9 = scmp.lt.s32.totalorder %s3091_s16, 0  ;;  %v2518_v47 = vld [vmem:[%s3055_s7 + $0x168] sm:$0xff]   ;;  %v3130_v57 = vld [vmem:[%s3055_s7 + $0x1e0] sm:$0xff]  }
  0x1f   : > { %v176_v23 = vsel %vm175_vm1, %v168_v15, %v2993_v1  ;;  %v191_v24 = vsel %vm190_vm2, %v182_v16, %v2993_v1  ;;  %s202_s12 = sor.u32 %s201_s11, %s200_s8  ;;  %v373_v36 = vsel %vm175_vm1, %v365_v20, %v2993_v1  ;;  %v389_v37 = vsel %vm190_vm2, %v380_v21, %v2993_v1  ;;  %v3119_v52 = vld [vmem:[%s3055_s7 + $0x1a4] sm:$0xff]  }
  0x20   : > { %v274_v25 = vsel %vm175_vm1, %v266_v17, %v2993_v1  ;;  %v290_v26 = vsel %vm190_vm2, %v281_v18, %v2993_v1  ;;  %v177_v30 = vpack.c.bf16 %v2969_v29, %v176_v23  ;;  %v193_v31 = vpack.c.bf16 %v2969_v29, %v191_v24  ;;  %s203_s13 = sand.u32 85, %s202_s12 }
  0x21   : > { %v276_v32 = vpack.c.bf16 %v2969_v29, %v274_v25  ;;  %v292_v33 = vpack.c.bf16 %v2969_v29, %v290_v26  ;;  %s204_s18 = sshrl.u32 %s203_s13, 1  ;;  %v375_v39 = vpack.c.bf16 %v2969_v29, %v373_v36  ;;  %v391_v40 = vpack.c.bf16 %v2969_v29, %v389_v37 }
  0x22   : > { %179 = vst [vmem:[#allocation8] sm:$0xf] %v177_v30  ;;  %195 = vst [vmem:[#allocation8 + $0x4] sm:$0xf] %v193_v31  ;;  %s205_s19 = sor.u32 %s204_s18, %s203_s13  ;;  %v479_v41 = vunpack.c.h.bf16 %v2494_v22  ;;  %v563_v42 = vunpack.c.l.bf16 %v2502_v28  ;;  %v3105_v43 = vadd.s32 %v256_v19, %v3036_v5  ;;  %v472_v44 = vsel %vm175_vm1, %v464_v38, %v2993_v1  ;;  %s149_s18 = sand.u32 1, %s2959_s14  }
  0x23   : > { %278 = vst [vmem:[#allocation8 + $0x10] sm:$0xf] %v276_v32  ;;  %294 = vst [vmem:[#allocation8 + $0x14] sm:$0xf] %v292_v33  ;;  %s206_s22 = sand.u32 51, %s205_s19  ;;  %v578_v45 = vunpack.c.h.bf16 %v2502_v28  ;;  %v662_v46 = vunpack.c.l.bf16 %v2510_v34  ;;  %v474_v48 = vpack.c.bf16 %v2969_v29, %v472_v44  ;;  %v677_v51 = vunpack.c.h.bf16 %v2510_v34  ;;  %s2467_s19 = sshll.u32 %s149_s18, 6 }
  0x24   : > { %s207_s23 = sshrl.u32 %s206_s22, 2  ;;  %377 = vst [vmem:[#allocation8 + $0x20] sm:$0xf] %v375_v39  ;;  %393 = vst [vmem:[#allocation8 + $0x24] sm:$0xf] %v391_v40  ;;  %v488_v49 = vsel %vm190_vm2, %v479_v41, %v2993_v1  ;;  %v571_v50 = vsel %vm175_vm1, %v563_v42, %v2993_v1  ;;  %v761_v61 = vunpack.c.l.bf16 %v2518_v47  ;;  %v776_v2 = vunpack.c.h.bf16 %v2518_v47  ;;  %s2805_s14 = sshll.u32 (%p3020_p4), %s3008_s2, 4 }
  0x25   : > { %s208_s24 = sor.u32 %s207_s23, %s206_s22  ;;  %v490_v53 = vpack.c.bf16 %v2969_v29, %v488_v49  ;;  %v573_v54 = vpack.c.bf16 %v2969_v29, %v571_v50  ;;  %v587_v55 = vsel %vm190_vm2, %v578_v45, %v2993_v1  ;;  %v670_v56 = vsel %vm175_vm1, %v662_v46, %v2993_v1  ;;  %476 = vst [vmem:[#allocation8 + $0x30] sm:$0xf] %v474_v48  ;;  %s3603_s22 = scalar_lea.vmem [#allocation7], %s2467_s19 }
  0x26   : > { %s3132_s25 = sand.u32 15, %s208_s24  ;;  %v589_v58 = vpack.c.bf16 %v2969_v29, %v587_v55  ;;  %v672_v59 = vpack.c.bf16 %v2969_v29, %v670_v56  ;;  %v686_v60 = vsel %vm190_vm2, %v677_v51, %v2993_v1  ;;  %v860_v3 = vunpack.c.l.bf16 %v3119_v52 }
  0x27   : > { %v2474_v62 = vld [vmem:[%s3055_s7 + $0x8] sm:%s3132_s25]  ;;  %s234_s26 = scalar_select %p233_p9, 0, 255  ;;  %492 = vst [vmem:[#allocation8 + $0x34] sm:$0xf] %v490_v53  ;;  %v688_v0 = vpack.c.bf16 %v2969_v29, %v686_v60  ;;  %v875_v4 = vunpack.c.h.bf16 %v3119_v52  ;;  %v2490_v9 = vld [vmem:[%s3055_s7 + $0x80] sm:%s3132_s25]  ;;  %v769_v11 = vsel %vm175_vm1, %v761_v61, %v2993_v1  ;;  %v959_v12 = vunpack.c.l.bf16 %v3130_v57 }
  0x28   : > { %v2482_v63 = vld [vmem:[%s3055_s7 + $0x44] sm:%s3132_s25]  ;;  %575 = vst [vmem:[#allocation8 + $0x40] sm:$0xf] %v573_v54  ;;  %v211_v5 = vunpack.c.l.bf16 %v2474_v62  ;;  %v2498_v10 = vld [vmem:[%s3055_s7 + $0xbc] sm:%s3132_s25]  ;;  %591 = vst [vmem:[#allocation8 + $0x44] sm:$0xf] %v589_v58  ;;  %v409_v15 = vunpack.c.l.bf16 %v2490_v9  ;;  %v771_v17 = vpack.c.bf16 %v2969_v29, %v769_v11  ;;  %v785_v18 = vsel %vm190_vm2, %v776_v2, %v2993_v1 }
  0x29   : > { %v310_v6 = vunpack.c.l.bf16 %v2482_v63  ;;  %674 = vst [vmem:[#allocation8 + $0x50] sm:$0xf] %v672_v59  ;;  %s235_s27 = sshrl.u32 %s234_s26, 1  ;;  %v508_v16 = vunpack.c.l.bf16 %v2498_v10  ;;  %690 = vst [vmem:[#allocation8 + $0x54] sm:$0xf] %v688_v0  ;;  %vm3165_vm5 = vcmp.lt.s32.totalorder %v249_v35, 0  ;;  %v787_v25 = vpack.c.bf16 %v2969_v29, %v785_v18 }
  0x2a   : > { %v2885_v14 = vld [vmem:[#allocation8 + $0x4] ss:$16 sps:$4 sm:$0xff]   ;;  %v2887_v19 = vld [vmem:[#allocation8] ss:$16 sps:$4 sm:$0xff]   ;;  %v217_v20 = vsel %vm3081_vm3, %v2993_v1, %v211_v5  ;;  %s236_s28 = sor.u32 %s235_s27, %s234_s26  ;;  %v2506_v23 = vld [vmem:[%s3055_s7 + $0xf8] sm:%s3132_s25]  ;;  %v868_v26 = vsel %vm175_vm1, %v860_v3, %v2993_v1  ;;  %vm258_vm6 = vcmp.lt.s32.totalorder %v3105_v43, 1800  ;;  %v415_v31 = vsel %vm3081_vm3, %v2993_v1, %v409_v15 }
  0x2b   : > { %v316_v22 = vsel %vm3081_vm3, %v2993_v1, %v310_v6  ;;  %v2514_v24 = vld [vmem:[%s3055_s7 + $0x134] sm:%s3132_s25]  ;;  %2193 = vmatprep.subr.bf16.mxu0 %v2885_v14  ;;  %v225_v28 = vsel %vm224_vm4, %v217_v20, %v2993_v1  ;;  %s237_s29 = sand.u32 85, %s236_s28  ;;  %v514_v32 = vsel %vm3081_vm3, %v2993_v1, %v508_v16  ;;  %773 = vst [vmem:[#allocation8 + $0x60] sm:$0xf] %v771_v17  ;;  %v2530_v34 = vld [vmem:[%s3055_s7 + $0x1ac] sm:%s3132_s25]  ;;  %v607_v41 = vunpack.c.l.bf16 %v2506_v23 }
  0x2c   : > { %v324_v30 = vsel %vm224_vm4, %v316_v22, %v2993_v1  ;;  %v2522_v33 = vld [vmem:[%s3055_s7 + $0x170] sm:%s3132_s25]  ;;  %2194 = vmatpush1.bf16.msra.mxu0 %v2887_v19  ;;  %v227_v35 = vpack.c.bf16 %v2969_v29, %v225_v28  ;;  %s238_s30 = sshrl.u32 %s237_s29, 1  ;;  %v423_v37 = vsel %vm224_vm4, %v415_v31, %v2993_v1  ;;  %v522_v38 = vsel %vm224_vm4, %v514_v32, %v2993_v1  ;;  %v3234_v60 = vld [vmem:[%s3055_s7 + $0x21c] sm:$0xff]  }
  0x2d   : > { %v326_v36 = vpack.c.bf16 %v2969_v29, %v324_v30  ;;  %789 = vst [vmem:[#allocation8 + $0x64] sm:$0xf] %v787_v25  ;;  %s239_s4 = sor.u32 %s238_s30, %s237_s29  ;;  %v425_v39 = vpack.c.bf16 %v2969_v29, %v423_v37  ;;  %v524_v40 = vpack.c.bf16 %v2969_v29, %v522_v38  ;;  %v706_v42 = vunpack.c.l.bf16 %v2514_v24  ;;  %v2893_v45 = vld [vmem:[#allocation8 + $0x20] ss:$16 sps:$4 sm:$0xff]   ;;  %v3248_v3 = vld [vmem:[%s3055_s7 + $0x1e8] sm:%s3132_s25] }
  0x2e   : > { %229 = vst [vmem:[#allocation8 + $0x8] sm:$0xf] %v227_v35  ;;  %s240_s5 = sand.u32 51, %s239_s4  ;;  %v2890_v44 = vld [vmem:[#allocation8 + $0x24] ss:$16 sps:$4 sm:$0xff]   ;;  %v870_v46 = vpack.c.bf16 %v2969_v29, %v868_v26  ;;  %v884_v47 = vsel %vm190_vm2, %v875_v4, %v2993_v1  ;;  %v805_v48 = vunpack.c.l.bf16 %v2522_v33  ;;  %v904_v49 = vunpack.c.l.bf16 %v2530_v34 }
  0x2f   : > { %328 = vst [vmem:[#allocation8 + $0x18] sm:$0xf] %v326_v36  ;;  %s241_s6 = sshrl.u32 %s240_s5, 2  ;;  %427 = vst [vmem:[#allocation8 + $0x28] sm:$0xf] %v425_v39  ;;  %v613_v50 = vsel %vm3081_vm3, %v2993_v1, %v607_v41  ;;  %v712_v51 = vsel %vm3081_vm3, %v2993_v1, %v706_v42  ;;  %v886_v52 = vpack.c.bf16 %v2969_v29, %v884_v47  ;;  %2195 = vmatprep.subr.bf16.mxu0 %v2890_v44 }
  0x30   : > { %526 = vst [vmem:[#allocation8 + $0x38] sm:$0xf] %v524_v40  ;;  %v967_v53 = vsel %vm175_vm1, %v959_v12, %v2993_v1  ;;  %s242_s8 = sor.u32 %s241_s6, %s240_s5  ;;  %v2896_v54 = vld [vmem:[#allocation8 + $0x44] ss:$16 sps:$4 sm:$0xff]   ;;  %v621_v55 = vsel %vm224_vm4, %v613_v50, %v2993_v1  ;;  %v720_v56 = vsel %vm224_vm4, %v712_v51, %v2993_v1  ;;  %872 = vst [vmem:[#allocation8 + $0x70] sm:$0xf] %v870_v46  ;;  %2196 = vmatpush1.bf16.msra.mxu0 %v2893_v45 }
  0x31   : > { %v811_v58 = vsel %vm3081_vm3, %v2993_v1, %v805_v48  ;;  %v910_v59 = vsel %vm3081_vm3, %v2993_v1, %v904_v49  ;;  %s3236_s9 = sand.u32 15, %s242_s8  ;;  %v2899_v61 = vld [vmem:[#allocation8 + $0x40] ss:$16 sps:$4 sm:$0xff]   ;;  %v623_v62 = vpack.c.bf16 %v2969_v29, %v621_v55  ;;  %v722_v63 = vpack.c.bf16 %v2969_v29, %v720_v56  ;;  %888 = vst [vmem:[#allocation8 + $0x74] sm:$0xf] %v886_v52 }
  0x32   : > { %v819_v0 = vsel %vm224_vm4, %v811_v58, %v2993_v1  ;;  %v918_v2 = vsel %vm224_vm4, %v910_v59, %v2993_v1  ;;  %v2476_v4 = vld [vmem:[%s3055_s7 + $0xc] sm:%s3236_s9]  ;;  %2197 = vmatprep.subr.bf16.mxu0 %v2896_v54  ;;  %v969_v10 = vpack.c.bf16 %v2969_v29, %v967_v53  ;;  %v974_v11 = vunpack.c.h.bf16 %v3130_v57  ;;  %v2492_v15 = vld [vmem:[%s3055_s7 + $0x84] sm:%s3236_s9] }
  0x33   : > { %v2484_v5 = vld [vmem:[%s3055_s7 + $0x48] sm:%s3236_s9]  ;;  %v821_v6 = vpack.c.bf16 %v2969_v29, %v819_v0  ;;  %v920_v9 = vpack.c.bf16 %v2969_v29, %v918_v2  ;;  %v245_v12 = vunpack.c.l.bf16 %v2476_v4  ;;  %v2500_v16 = vld [vmem:[%s3055_s7 + $0xc0] sm:%s3236_s9]  ;;  %625 = vst [vmem:[#allocation8 + $0x48] sm:$0xf] %v623_v62  ;;  %724 = vst [vmem:[#allocation8 + $0x58] sm:$0xf] %v722_v63  ;;  %v1058_v17 = vunpack.c.l.bf16 %v3234_v60 }
  0x34   : > { %v344_v14 = vunpack.c.l.bf16 %v2484_v5  ;;  %v1073_v18 = vunpack.c.h.bf16 %v3234_v60  ;;  %v443_v19 = vunpack.c.l.bf16 %v2492_v15  ;;  %v542_v20 = vunpack.c.l.bf16 %v2500_v16  ;;  %v2508_v22 = vld [vmem:[%s3055_s7 + $0xfc] sm:%s3236_s9]  ;;  %971 = vst [vmem:[#allocation8 + $0x80] sm:$0xf] %v969_v10  ;;  %2198 = vmatpush1.bf16.msra.mxu0 %v2899_v61  ;;  %v2524_v35 = vld [vmem:[%s3055_s7 + $0x174] sm:%s3236_s9] }
  0x35   : > { %v2516_v23 = vld [vmem:[%s3055_s7 + $0x138] sm:%s3236_s9]  ;;  %823 = vst [vmem:[#allocation8 + $0x68] sm:$0xf] %v821_v6  ;;  %922 = vst [vmem:[#allocation8 + $0x78] sm:$0xf] %v920_v9  ;;  %v983_v57 = vsel %vm190_vm2, %v974_v11, %v2993_v1  ;;  %v1003_v24 = vunpack.c.l.bf16 %v3248_v3  ;;  %v251_v25 = vsel %vm3165_vm5, %v2993_v1, %v245_v12  ;;  %v641_v28 = vunpack.c.l.bf16 %v2508_v22  ;;  %v2532_v36 = vld [vmem:[%s3055_s7 + $0x1b0] sm:%s3236_s9] }
  0x36   : > { %v350_v26 = vsel %vm3165_vm5, %v2993_v1, %v344_v14  ;;  %v740_v30 = vunpack.c.l.bf16 %v2516_v23  ;;  %v259_v31 = vsel %vm258_vm6, %v251_v25, %v2993_v1  ;;  %v449_v33 = vsel %vm3165_vm5, %v2993_v1, %v443_v19  ;;  %v2540_v56 = vld [vmem:[%s3055_s7 + $0x1ec] sm:%s3236_s9]  ;;  %v2550_v58 = vld [vmem:[%s3055_s7 + $0x258] sm:$0xff]   ;;  %v2936_v43 = vld [vmem:[%s3637_s0] ss:$8 sps:$4 sm:$0xff]  }
  0x37   : > { %v358_v32 = vsel %vm258_vm6, %v350_v26, %v2993_v1  ;;  %v548_v34 = vsel %vm3165_vm5, %v2993_v1, %v542_v20  ;;  %v261_v37 = vpack.c.bf16 %v2969_v29, %v259_v31  ;;  %v457_v39 = vsel %vm258_vm6, %v449_v33, %v2993_v1  ;;  %v2905_v47 = vld [vmem:[#allocation8 + $0x60] ss:$16 sps:$4 sm:$0xff]   ;;  %v2546_v63 = vld [vmem:[%s3055_s7 + $0x224] sm:%s3132_s25]  ;;  %v2558_v6 = vld [vmem:[%s3055_s7 + $0x294] sm:$0xff]  }
  0x38   : > { %v360_v38 = vpack.c.bf16 %v2969_v29, %v358_v32  ;;  %v556_v40 = vsel %vm258_vm6, %v548_v34, %v2993_v1  ;;  %v459_v41 = vpack.c.bf16 %v2969_v29, %v457_v39  ;;  %v647_v44 = vsel %vm3165_vm5, %v2993_v1, %v641_v28  ;;  %v2902_v46 = vld [vmem:[#allocation8 + $0x64] ss:$16 sps:$4 sm:$0xff]   ;;  %v2548_v0 = vld [vmem:[%s3055_s7 + $0x228] sm:%s3236_s9] }
  0x39   : > { %v558_v42 = vpack.c.bf16 %v2969_v29, %v556_v40  ;;  %v746_v45 = vsel %vm3165_vm5, %v2993_v1, %v740_v30  ;;  %263 = vst [vmem:[#allocation8 + $0xc] sm:$0xf] %v261_v37  ;;  %v655_v48 = vsel %vm258_vm6, %v647_v44, %v2993_v1  ;;  %v839_v50 = vunpack.c.l.bf16 %v2524_v35  ;;  %2199 = vmatprep.subr.bf16.mxu0 %v2902_v46  ;;  %v2564_v25 = vld [vmem:[%s3055_s7 + $0x2a0] sm:%s3236_s9]  ;;  %v2892_v33 = vld [vmem:[#allocation8 + $0x8] ss:$16 sps:$4 sm:$0xff]   ;;  %v2566_v44 = vld [vmem:[%s3055_s7 + $0x2d0] sm:$0xff]  }
  0x3a   : > { %362 = vst [vmem:[#allocation8 + $0x1c] sm:$0xf] %v360_v38  ;;  %v754_v49 = vsel %vm258_vm6, %v746_v45, %v2993_v1  ;;  %v938_v51 = vunpack.c.l.bf16 %v2532_v36  ;;  %461 = vst [vmem:[#allocation8 + $0x2c] sm:$0xf] %v459_v41  ;;  %v657_v52 = vpack.c.bf16 %v2969_v29, %v655_v48  ;;  %v985_v54 = vpack.c.bf16 %v2969_v29, %v983_v57  ;;  %v2556_v57 = vld [vmem:[%s3055_s7 + $0x264] sm:%s3236_s9]  ;;  %v2574_v45 = vld [vmem:[%s3055_s7 + $0x30c] sm:$0xff]  }
  0x3b   : > { %560 = vst [vmem:[#allocation8 + $0x3c] sm:$0xf] %v558_v42  ;;  %v756_v53 = vpack.c.bf16 %v2969_v29, %v754_v49  ;;  %v1066_v55 = vsel %vm175_vm1, %v1058_v17, %v2993_v1  ;;  %2200 = vmatpush1.bf16.msra.mxu0 %v2905_v47  ;;  %v845_v59 = vsel %vm3165_vm5, %v2993_v1, %v839_v50  ;;  %v1037_v12 = vunpack.c.l.bf16 %v2540_v56  ;;  %v2898_v46 = vld [vmem:[#allocation8 + $0x28] ss:$16 sps:$4 sm:$0xff]  }
  0x3c   : > { %v944_v60 = vsel %vm3165_vm5, %v2993_v1, %v938_v51  ;;  %v1068_v61 = vpack.c.bf16 %v2969_v29, %v1066_v55  ;;  %v1082_v62 = vsel %vm190_vm2, %v1073_v18, %v2993_v1  ;;  %659 = vst [vmem:[#allocation8 + $0x4c] sm:$0xf] %v657_v52  ;;  %v853_v2 = vsel %vm258_vm6, %v845_v59, %v2993_v1  ;;  %v2554_v18 = vld [vmem:[%s3055_s7 + $0x260] sm:%s3132_s25]  ;;  %v2570_v56 = vld [vmem:[%s3055_s7 + $0x2d8] sm:%s3132_s25] }
  0x3d   : > { %758 = vst [vmem:[#allocation8 + $0x5c] sm:$0xf] %v756_v53  ;;  %v952_v3 = vsel %vm258_vm6, %v944_v60, %v2993_v1  ;;  %987 = vst [vmem:[#allocation8 + $0x84] sm:$0xf] %v985_v54  ;;  %v1084_v4 = vpack.c.bf16 %v2969_v29, %v1082_v62  ;;  %v1009_v5 = vsel %vm3081_vm3, %v2993_v1, %v1003_v24  ;;  %v1102_v15 = vunpack.c.l.bf16 %v2546_v63  ;;  %v2562_v24 = vld [vmem:[%s3055_s7 + $0x29c] sm:%s3132_s25] }
  0x3e   : > { %v855_v9 = vpack.c.bf16 %v2969_v29, %v853_v2  ;;  %v954_v10 = vpack.c.bf16 %v2969_v29, %v952_v3  ;;  %1070 = vst [vmem:[#allocation8 + $0x90] sm:$0xf] %v1068_v61  ;;  %v1017_v11 = vsel %vm224_vm4, %v1009_v5, %v2993_v1  ;;  %v1136_v16 = vunpack.c.l.bf16 %v2548_v0  ;;  %v2904_v5 = vld [vmem:[#allocation8 + $0x48] ss:$16 sps:$4 sm:$0xff]  }
  0x3f   : > { %1086 = vst [vmem:[#allocation8 + $0x94] sm:$0xf] %v1084_v4  ;;  %v1019_v14 = vpack.c.bf16 %v2969_v29, %v1017_v11  ;;  %v1157_v17 = vunpack.c.l.bf16 %v2550_v58  ;;  %v1043_v19 = vsel %vm3165_vm5, %v2993_v1, %v1037_v12  ;;  %v1172_v20 = vunpack.c.h.bf16 %v2550_v58 }
  0x40   : > { %857 = vst [vmem:[#allocation8 + $0x6c] sm:$0xf] %v855_v9  ;;  %956 = vst [vmem:[#allocation8 + $0x7c] sm:$0xf] %v954_v10  ;;  %v1256_v22 = vunpack.c.l.bf16 %v2558_v6  ;;  %v1271_v23 = vunpack.c.h.bf16 %v2558_v6  ;;  %v1051_v28 = vsel %vm258_vm6, %v1043_v19, %v2993_v1  ;;  %v1108_v30 = vsel %vm3081_vm3, %v2993_v1, %v1102_v15  ;;  %v2578_v19 = vld [vmem:[%s3055_s7 + $0x314] sm:%s3132_s25] }
  0x41   : > { %v2888_v26 = vld [vmem:[#allocation8 + $0xc] ss:$16 sps:$4 sm:$0xff]   ;;  %1021 = vst [vmem:[#allocation8 + $0x88] sm:$0xf] %v1019_v14  ;;  %v1142_v31 = vsel %vm3165_vm5, %v2993_v1, %v1136_v16  ;;  %v1165_v32 = vsel %vm175_vm1, %v1157_v17, %v2993_v1  ;;  %v1053_v34 = vpack.c.bf16 %v2969_v29, %v1051_v28  ;;  %v1116_v35 = vsel %vm224_vm4, %v1108_v30, %v2993_v1 }
  0x42   : > { %v1150_v36 = vsel %vm258_vm6, %v1142_v31, %v2993_v1  ;;  %v1167_v37 = vpack.c.bf16 %v2969_v29, %v1165_v32  ;;  %2246 = vmatprep.subr.bf16.mxu1 %v2888_v26  ;;  %v2894_v38 = vld [vmem:[#allocation8 + $0x2c] ss:$16 sps:$4 sm:$0xff]   ;;  %v1118_v39 = vpack.c.bf16 %v2969_v29, %v1116_v35  ;;  %v1181_v41 = vsel %vm190_vm2, %v1172_v20, %v2993_v1  ;;  %v2590_v32 = vld [vmem:[%s3055_s7 + $0x384] sm:$0xff]  }
  0x43   : > { %v1152_v40 = vpack.c.bf16 %v2969_v29, %v1150_v36  ;;  %v1264_v42 = vsel %vm175_vm1, %v1256_v22, %v2993_v1  ;;  %2247 = vmatpush1.bf16.msra.mxu1 %v2892_v33  ;;  %1055 = vst [vmem:[#allocation8 + $0x8c] sm:$0xf] %v1053_v34  ;;  %v1183_v47 = vpack.c.bf16 %v2969_v29, %v1181_v41  ;;  %v1201_v50 = vunpack.c.l.bf16 %v2554_v18  ;;  %v2572_v18 = vld [vmem:[%s3055_s7 + $0x2dc] sm:%s3236_s9]  ;;  %v2910_v33 = vld [vmem:[#allocation8 + $0x68] ss:$16 sps:$4 sm:$0xff]  }
  0x44   : > { %1169 = vst [vmem:[#allocation8 + $0xa0] sm:$0xf] %v1167_v37  ;;  %v1266_v48 = vpack.c.bf16 %v2969_v29, %v1264_v42  ;;  %v1280_v49 = vsel %vm190_vm2, %v1271_v23, %v2993_v1  ;;  %2248 = vmatprep.subr.bf16.mxu1 %v2894_v38  ;;  %v2900_v51 = vld [vmem:[#allocation8 + $0x4c] ss:$16 sps:$4 sm:$0xff]   ;;  %1120 = vst [vmem:[#allocation8 + $0x98] sm:$0xf] %v1118_v39  ;;  %v1235_v53 = vunpack.c.l.bf16 %v2556_v57  ;;  %v1300_v54 = vunpack.c.l.bf16 %v2562_v24 }
  0x45   : > { %1154 = vst [vmem:[#allocation8 + $0x9c] sm:$0xf] %v1152_v40  ;;  %v1282_v52 = vpack.c.bf16 %v2969_v29, %v1280_v49  ;;  %v1334_v55 = vunpack.c.l.bf16 %v2564_v25  ;;  %v2911_v59 = vld [vmem:[#allocation8 + $0x80] ss:$16 sps:$4 sm:$0xff]   ;;  %1185 = vst [vmem:[#allocation8 + $0xa4] sm:$0xf] %v1183_v47  ;;  %v1207_v60 = vsel %vm3081_vm3, %v2993_v1, %v1201_v50  ;;  %v1355_v61 = vunpack.c.l.bf16 %v2566_v44 }
  0x46   : > { %v2908_v58 = vld [vmem:[#allocation8 + $0x84] ss:$16 sps:$4 sm:$0xff]   ;;  %1268 = vst [vmem:[#allocation8 + $0xb0] sm:$0xf] %v1266_v48  ;;  %v1370_v62 = vunpack.c.h.bf16 %v2566_v44  ;;  %v1454_v63 = vunpack.c.l.bf16 %v2574_v45  ;;  %v1215_v0 = vsel %vm224_vm4, %v1207_v60, %v2993_v1  ;;  %v1241_v2 = vsel %vm3165_vm5, %v2993_v1, %v1235_v53  ;;  %v2580_v24 = vld [vmem:[%s3055_s7 + $0x318] sm:%s3236_s9]  ;;  %v2582_v25 = vld [vmem:[%s3055_s7 + $0x348] sm:$0xff]  }
  0x47   : > { %1284 = vst [vmem:[#allocation8 + $0xb4] sm:$0xf] %v1282_v52  ;;  %v1306_v3 = vsel %vm3081_vm3, %v2993_v1, %v1300_v54  ;;  %v1340_v4 = vsel %vm3165_vm5, %v2993_v1, %v1334_v55  ;;  %2249 = vmatpush1.bf16.msra.mxu1 %v2898_v46  ;;  %2201 = vmatprep.subr.bf16.mxu0 %v2908_v58  ;;  %v1469_v11 = vunpack.c.h.bf16 %v2574_v45  ;;  %v2906_v12 = vld [vmem:[#allocation8 + $0x6c] ss:$16 sps:$4 sm:$0xff]   ;;  %v1399_v17 = vunpack.c.l.bf16 %v2570_v56  ;;  %v2586_v44 = vld [vmem:[%s3055_s7 + $0x350] sm:%s3132_s25] }
  0x48   : > { %v1217_v6 = vpack.c.bf16 %v2969_v29, %v1215_v0  ;;  %v1249_v9 = vsel %vm258_vm6, %v1241_v2, %v2993_v1  ;;  %v1314_v10 = vsel %vm224_vm4, %v1306_v3, %v2993_v1  ;;  %2250 = vmatprep.subr.bf16.mxu1 %v2900_v51  ;;  %2202 = vmatpush1.bf16.msra.mxu0 %v2911_v59  ;;  %v1433_v36 = vunpack.c.l.bf16 %v2572_v18  ;;  %v2588_v55 = vld [vmem:[%s3055_s7 + $0x354] sm:%s3236_s9]  ;;  %v2606_v18 = vld [vmem:[%s3055_s7 + $0x3fc] sm:$0xff]  }
  0x49   : > { %v1251_v14 = vpack.c.bf16 %v2969_v29, %v1249_v9  ;;  %v1316_v15 = vpack.c.bf16 %v2969_v29, %v1314_v10  ;;  %v1348_v16 = vsel %vm258_vm6, %v1340_v4, %v2993_v1  ;;  %v1363_v22 = vsel %vm175_vm1, %v1355_v61, %v2993_v1  ;;  %v2596_v4 = vld [vmem:[%s3055_s7 + $0x390] sm:%s3236_s9] }
  0x4a   : > { %1219 = vst [vmem:[#allocation8 + $0xa8] sm:$0xf] %v1217_v6  ;;  %v1350_v20 = vpack.c.bf16 %v2969_v29, %v1348_v16  ;;  %v1379_v23 = vsel %vm190_vm2, %v1370_v62, %v2993_v1  ;;  %v1462_v57 = vsel %vm175_vm1, %v1454_v63, %v2993_v1  ;;  %v1365_v26 = vpack.c.bf16 %v2969_v29, %v1363_v22  ;;  %v2594_v62 = vld [vmem:[%s3055_s7 + $0x38c] sm:%s3132_s25] }
  0x4b   : > { %1253 = vst [vmem:[#allocation8 + $0xac] sm:$0xf] %v1251_v14  ;;  %1318 = vst [vmem:[#allocation8 + $0xb8] sm:$0xf] %v1316_v15  ;;  %v1381_v28 = vpack.c.bf16 %v2969_v29, %v1379_v23  ;;  %v1464_v30 = vpack.c.bf16 %v2969_v29, %v1462_v57  ;;  %v1478_v31 = vsel %vm190_vm2, %v1469_v11, %v2993_v1  ;;  %2251 = vmatpush1.bf16.msra.mxu1 %v2904_v5  ;;  %v2916_v56 = vld [vmem:[#allocation8 + $0x88] ss:$16 sps:$4 sm:$0xff]  }
  0x4c   : > { %1352 = vst [vmem:[#allocation8 + $0xbc] sm:$0xf] %v1350_v20  ;;  %v1480_v34 = vpack.c.bf16 %v2969_v29, %v1478_v31  ;;  %v1405_v35 = vsel %vm3081_vm3, %v2993_v1, %v1399_v17  ;;  %v1498_v37 = vunpack.c.l.bf16 %v2578_v19  ;;  %2252 = vmatprep.subr.bf16.mxu1 %v2906_v12  ;;  %v2912_v38 = vld [vmem:[#allocation8 + $0x8c] ss:$16 sps:$4 sm:$0xff]   ;;  %1367 = vst [vmem:[#allocation8 + $0xc0] sm:$0xf] %v1365_v26  ;;  %v1532_v40 = vunpack.c.l.bf16 %v2580_v24 }
  0x4d   : > { %1383 = vst [vmem:[#allocation8 + $0xc4] sm:$0xf] %v1381_v28  ;;  %1466 = vst [vmem:[#allocation8 + $0xd0] sm:$0xf] %v1464_v30  ;;  %v1413_v39 = vsel %vm224_vm4, %v1405_v35, %v2993_v1  ;;  %v1553_v41 = vunpack.c.l.bf16 %v2582_v25  ;;  %v1568_v42 = vunpack.c.h.bf16 %v2582_v25  ;;  %v2917_v46 = vld [vmem:[#allocation8 + $0xa0] ss:$16 sps:$4 sm:$0xff]   ;;  %v1439_v48 = vsel %vm3165_vm5, %v2993_v1, %v1433_v36 }
  0x4e   : > { %v2914_v45 = vld [vmem:[#allocation8 + $0xa4] ss:$16 sps:$4 sm:$0xff]   ;;  %1482 = vst [vmem:[#allocation8 + $0xd4] sm:$0xf] %v1480_v34  ;;  %v1415_v47 = vpack.c.bf16 %v2969_v29, %v1413_v39  ;;  %v1504_v49 = vsel %vm3081_vm3, %v2993_v1, %v1498_v37  ;;  %v1652_v50 = vunpack.c.l.bf16 %v2590_v32  ;;  %v1447_v51 = vsel %vm258_vm6, %v1439_v48, %v2993_v1  ;;  %v2602_v24 = vld [vmem:[%s3055_s7 + $0x3c8] sm:%s3132_s25] }
  0x4f   : > { %v1512_v52 = vsel %vm224_vm4, %v1504_v49, %v2993_v1  ;;  %v1538_v53 = vsel %vm3165_vm5, %v2993_v1, %v1532_v40  ;;  %v1561_v54 = vsel %vm175_vm1, %v1553_v41, %v2993_v1  ;;  %2253 = vmatpush1.bf16.msra.mxu1 %v2910_v33  ;;  %2203 = vmatprep.subr.bf16.mxu0 %v2914_v45  ;;  %v1667_v61 = vunpack.c.h.bf16 %v2590_v32  ;;  %v2598_v5 = vld [vmem:[%s3055_s7 + $0x3c0] sm:$0xff]   ;;  %v2604_v25 = vld [vmem:[%s3055_s7 + $0x3cc] sm:%s3236_s9] }
  0x50   : > { %1417 = vst [vmem:[#allocation8 + $0xc8] sm:$0xf] %v1415_v47  ;;  %v1449_v58 = vpack.c.bf16 %v2969_v29, %v1447_v51  ;;  %v1514_v59 = vpack.c.bf16 %v2969_v29, %v1512_v52  ;;  %v1546_v60 = vsel %vm258_vm6, %v1538_v53, %v2993_v1  ;;  %2254 = vmatprep.subr.bf16.mxu1 %v2912_v38  ;;  %v1597_v3 = vunpack.c.l.bf16 %v2586_v44  ;;  %v2610_v38 = vld [vmem:[%s3055_s7 + $0x404] sm:%s3132_s25]  ;;  %s2380_s25 = scalar_lea.vmem (%p3020_p4), %s3640_s3, %s2805_s14 }
  0x51   : > { %2204 = vmatpush1.bf16.msra.mxu0 %v2917_v46  ;;  %v1548_v63 = vpack.c.bf16 %v2969_v29, %v1546_v60  ;;  %v1563_v0 = vpack.c.bf16 %v2969_v29, %v1561_v54  ;;  %v1577_v2 = vsel %vm190_vm2, %v1568_v42, %v2993_v1  ;;  %v1660_v9 = vsel %vm175_vm1, %v1652_v50, %v2993_v1  ;;  %v2612_v39 = vld [vmem:[%s3055_s7 + $0x408] sm:%s3236_s9] }
  0x52   : > { %1451 = vst [vmem:[#allocation8 + $0xcc] sm:$0xf] %v1449_v58  ;;  %1516 = vst [vmem:[#allocation8 + $0xd8] sm:$0xf] %v1514_v59  ;;  %v1579_v6 = vpack.c.bf16 %v2969_v29, %v1577_v2  ;;  %v1676_v10 = vsel %vm190_vm2, %v1667_v61, %v2993_v1  ;;  %v1631_v11 = vunpack.c.l.bf16 %v2588_v55  ;;  %v1662_v14 = vpack.c.bf16 %v2969_v29, %v1660_v9  ;;  %v2922_v19 = vld [vmem:[#allocation8 + $0xa8] ss:$16 sps:$4 sm:$0xff]  }
  0x53   : > { %v2918_v12 = vld [vmem:[#allocation8 + $0xac] ss:$16 sps:$4 sm:$0xff]   ;;  %1550 = vst [vmem:[#allocation8 + $0xdc] sm:$0xf] %v1548_v63  ;;  %1565 = vst [vmem:[#allocation8 + $0xe0] sm:$0xf] %v1563_v0  ;;  %v1678_v15 = vpack.c.bf16 %v2969_v29, %v1676_v10  ;;  %v1603_v16 = vsel %vm3081_vm3, %v2993_v1, %v1597_v3  ;;  %v1696_v17 = vunpack.c.l.bf16 %v2594_v62  ;;  %2255 = vmatpush1.bf16.msra.mxu1 %v2916_v56  ;;  %v1730_v23 = vunpack.c.l.bf16 %v2596_v4 }
  0x54   : > { %1581 = vst [vmem:[#allocation8 + $0xe4] sm:$0xf] %v1579_v6  ;;  %v1611_v20 = vsel %vm224_vm4, %v1603_v16, %v2993_v1  ;;  %v1637_v22 = vsel %vm3165_vm5, %v2993_v1, %v1631_v11  ;;  %v1751_v57 = vunpack.c.l.bf16 %v2598_v5  ;;  %2256 = vmatprep.subr.bf16.mxu1 %v2918_v12  ;;  %v2923_v28 = vld [vmem:[#allocation8 + $0xc0] ss:$16 sps:$4 sm:$0xff]   ;;  %1664 = vst [vmem:[#allocation8 + $0xf0] sm:$0xf] %v1662_v14  ;;  %v1766_v33 = vunpack.c.h.bf16 %v2598_v5 }
  0x55   : > { %v2920_v26 = vld [vmem:[#allocation8 + $0xc4] ss:$16 sps:$4 sm:$0xff]   ;;  %1680 = vst [vmem:[#allocation8 + $0xf4] sm:$0xf] %v1678_v15  ;;  %v1613_v30 = vpack.c.bf16 %v2969_v29, %v1611_v20  ;;  %v1645_v31 = vsel %vm258_vm6, %v1637_v22, %v2993_v1  ;;  %v1702_v32 = vsel %vm3081_vm3, %v2993_v1, %v1696_v17  ;;  %v1736_v36 = vsel %vm3165_vm5, %v2993_v1, %v1730_v23  ;;  %v2944_v15 = vld [vmem:[%s3637_s0 + $0x10] ss:$8 sps:$4 sm:$0xff]  }
  0x56   : > { %v1647_v34 = vpack.c.bf16 %v2969_v29, %v1645_v31  ;;  %v1710_v35 = vsel %vm224_vm4, %v1702_v32, %v2993_v1  ;;  %v1759_v37 = vsel %vm175_vm1, %v1751_v57, %v2993_v1  ;;  %2205 = vmatprep.subr.bf16.mxu0 %v2920_v26  ;;  %v1744_v41 = vsel %vm258_vm6, %v1736_v36, %v2993_v1 }
  0x57   : > { %1615 = vst [vmem:[#allocation8 + $0xe8] sm:$0xf] %v1613_v30  ;;  %v1712_v40 = vpack.c.bf16 %v2969_v29, %v1710_v35  ;;  %v1761_v42 = vpack.c.bf16 %v2969_v29, %v1759_v37  ;;  %v1775_v44 = vsel %vm190_vm2, %v1766_v33, %v2993_v1  ;;  %2257 = vmatpush1.bf16.msra.mxu1 %v2922_v19  ;;  %v1850_v47 = vunpack.c.l.bf16 %v2606_v18 }
  0x58   : > { %2206 = vmatpush1.bf16.msra.mxu0 %v2923_v28  ;;  %1649 = vst [vmem:[#allocation8 + $0xec] sm:$0xf] %v1647_v34  ;;  %v1746_v45 = vpack.c.bf16 %v2969_v29, %v1744_v41  ;;  %v1777_v46 = vpack.c.bf16 %v2969_v29, %v1775_v44  ;;  %v1865_v48 = vunpack.c.h.bf16 %v2606_v18  ;;  %v1795_v49 = vunpack.c.l.bf16 %v2602_v24 }
  0x59   : > { %1714 = vst [vmem:[#allocation8 + $0xf8] sm:$0xf] %v1712_v40  ;;  %1763 = vst [vmem:[#allocation8 + $0x100] sm:$0xf] %v1761_v42  ;;  %v1829_v50 = vunpack.c.l.bf16 %v2604_v25  ;;  %v1894_v51 = vunpack.c.l.bf16 %v2610_v38  ;;  %v1928_v52 = vunpack.c.l.bf16 %v2612_v39  ;;  %v2928_v54 = vld [vmem:[#allocation8 + $0xc8] ss:$16 sps:$4 sm:$0xff]   ;;  %v1858_v55 = vsel %vm175_vm1, %v1850_v47, %v2993_v1 }
  0x5a   : > { %v2924_v53 = vld [vmem:[#allocation8 + $0xcc] ss:$16 sps:$4 sm:$0xff]   ;;  %1748 = vst [vmem:[#allocation8 + $0xfc] sm:$0xf] %v1746_v45  ;;  %1779 = vst [vmem:[#allocation8 + $0x104] sm:$0xf] %v1777_v46  ;;  %v1874_v56 = vsel %vm190_vm2, %v1865_v48, %v2993_v1  ;;  %v1860_v58 = vpack.c.bf16 %v2969_v29, %v1858_v55  ;;  %v1801_v60 = vsel %vm3081_vm3, %v2993_v1, %v1795_v49 }
  0x5b   : > { %v1876_v59 = vpack.c.bf16 %v2969_v29, %v1874_v56  ;;  %v1835_v61 = vsel %vm3165_vm5, %v2993_v1, %v1829_v50  ;;  %2258 = vmatprep.subr.bf16.mxu1 %v2924_v53  ;;  %v2929_v7 = vld [vmem:[#allocation8 + $0xe0] ss:$16 sps:$4 sm:$0xff]   ;;  %v1809_v8 = vsel %vm224_vm4, %v1801_v60, %v2993_v1  ;;  %v1900_v0 = vsel %vm3081_vm3, %v2993_v1, %v1894_v51 }
  0x5c   : > { %v2926_v62 = vld [vmem:[#allocation8 + $0xe4] ss:$16 sps:$4 sm:$0xff]   ;;  %v1843_v63 = vsel %vm258_vm6, %v1835_v61, %v2993_v1  ;;  %v1934_v2 = vsel %vm3165_vm5, %v2993_v1, %v1928_v52  ;;  %2259 = vmatpush1.bf16.msra.mxu1 %v2928_v54  ;;  %1862 = vst [vmem:[#allocation8 + $0x110] sm:$0xf] %v1860_v58  ;;  %v1811_v3 = vpack.c.bf16 %v2969_v29, %v1809_v8 }
  0x5d   : > { %1878 = vst [vmem:[#allocation8 + $0x114] sm:$0xf] %v1876_v59  ;;  %v1845_v4 = vpack.c.bf16 %v2969_v29, %v1843_v63  ;;  %v1908_v5 = vsel %vm224_vm4, %v1900_v0, %v2993_v1  ;;  %v1942_v27 = vsel %vm258_vm6, %v1934_v2, %v2993_v1  ;;  %2207 = vmatprep.subr.bf16.mxu0 %v2926_v62 }
  0x5e   : > { %v1910_v6 = vpack.c.bf16 %v2969_v29, %v1908_v5  ;;  %v1944_v21 = vpack.c.bf16 %v2969_v29, %v1942_v27  ;;  %2208 = vmatpush1.bf16.msra.mxu0 %v2929_v7  ;;  %1813 = vst [vmem:[#allocation8 + $0x108] sm:$0xf] %v1811_v3  ;;  %v2942_v29 = vld [vmem:[%s3637_s0 + $0x14] ss:$8 sps:$4 sm:$0xff]  }
  0x5f   : > { %1847 = vst [vmem:[#allocation8 + $0x10c] sm:$0xf] %v1845_v4 }
  0x60   : > { %1912 = vst [vmem:[#allocation8 + $0x118] sm:$0xf] %v1910_v6  ;;  %1946 = vst [vmem:[#allocation8 + $0x11c] sm:$0xf] %v1944_v21  ;;  %v2934_v10 = vld [vmem:[#allocation8 + $0xe8] ss:$16 sps:$4 sm:$0xff]  }
  0x61   : > { %v2930_v9 = vld [vmem:[#allocation8 + $0xec] ss:$16 sps:$4 sm:$0xff]  }
  0x62   : > { %2260 = vmatprep.subr.bf16.mxu1 %v2930_v9 }
  0x63   : > { %2261 = vmatpush1.bf16.msra.mxu1 %v2934_v10  ;;  %v2935_v13 = vld [vmem:[#allocation8 + $0x100] ss:$16 sps:$4 sm:$0xff]  }
  0x64   : > { %v2932_v11 = vld [vmem:[#allocation8 + $0x104] ss:$16 sps:$4 sm:$0xff]  }
  0x65   : > { %2209 = vmatprep.subr.bf16.mxu0 %v2932_v11 }
  0x66   : > { %2210 = vmatpush1.bf16.msra.mxu0 %v2935_v13 }
  0x67   : > { %v2939_v12 = vld [vmem:[#allocation8 + $0x10c] ss:$16 sps:$4 sm:$0xff]   ;;  %v2941_v14 = vld [vmem:[#allocation8 + $0x108] ss:$16 sps:$4 sm:$0xff]  }
  0x68   : > { %2262 = vmatprep.subr.bf16.mxu1 %v2939_v12 }
  0x69   : > { %2226 = vmatmul.mubr.bf16.vlgmr.msra.gmra.mrb[0].mxu0 %v2936_v43  ;;  %2263 = vmatpush1.bf16.msra.mxu1 %v2941_v14 }
  0x6a   : > { %2655 = vmatprep.mubr.msk.bf16.mxu0 %vm2186_vm0, %v2942_v29 }
  0x6c   : > { %2279 = vmatmul.mubr.bf16.vlgmr.msra.gmra.mrb[0].mxu1 %v2936_v43 }
  0x6d   : > { %2657 = vmatprep.mubr.msk.bf16.mxu1 %vm2186_vm0, %v2942_v29 }
  0x71   : > { %2236 = vmatmul.mubr.bf16.gmra.mrb[4].mxu0 %v2944_v15 }
  0x74   : > { %2289 = vmatmul.mubr.bf16.gmra.mrb[4].mxu1 %v2944_v15 }
 0x13c   : > { %v2227_v16 = vpop.f32.mrb[0].mxu0 }
 0x13d   : > { %v2299_v17 = vmax.f32 %v2227_v16, 0.0  ;;  %v2229_v18 = vpop.f32.mrb[1].mxu0 }
 0x13e   : > { %v2300_v19 = vmax.f32 %v2229_v18, 0.0  ;;  %v2231_v20 = vpop.f32.mrb[2].mxu0 }
 0x13f   : > { %v2303_v22 = vmax.f32 %v2231_v20, 0.0  ;;  %v2233_v23 = vpop.f32.mrb[3].mxu0  ;;  %v2280_v57 = vpop.f32.mrb[0].mxu1 }
 0x140   : > { %v2797_v24 = vpack.c.bf16 %v2300_v19, %v2299_v17  ;;  %v2304_v25 = vmax.f32 %v2233_v23, 0.0  ;;  %v2301_v26 = vmax.f32 %v2280_v57, 0.0  ;;  %v2282_v28 = vpop.f32.mrb[1].mxu1 }
 0x141   : > { %v2302_v30 = vmax.f32 %v2282_v28, 0.0  ;;  %v2284_v31 = vpop.f32.mrb[2].mxu1 }
 0x142   : > { %2363 = vst [vmem:[%s3603_s22] sm:$0xff] %v2797_v24  ;;  %v2799_v32 = vpack.c.bf16 %v2304_v25, %v2303_v22  ;;  %v2305_v33 = vmax.f32 %v2284_v31, 0.0  ;;  %v2286_v34 = vpop.f32.mrb[3].mxu1 }
 0x143   : > { %v2798_v35 = vpack.c.bf16 %v2302_v30, %v2301_v26  ;;  %v2306_v36 = vmax.f32 %v2286_v34, 0.0 }
 0x144   : > { %2365 = vst [vmem:[%s3603_s22 + $0x10] sm:$0xff] %v2799_v32  ;;  %v2237_v37 = vpop.f32.mrb[4].mxu0 }
 0x145   : > { %2364 = vst [vmem:[%s3603_s22 + $0x8] sm:$0xff] %v2798_v35  ;;  %v2800_v38 = vpack.c.bf16 %v2306_v36, %v2305_v33  ;;  %v2307_v39 = vmax.f32 %v2237_v37, 0.0  ;;  %v2239_v40 = vpop.f32.mrb[5].mxu0 }
 0x146   : > { %v2308_v41 = vmax.f32 %v2239_v40, 0.0  ;;  %v2241_v42 = vpop.f32.mrb[6].mxu0 }
 0x147   : > { %2366 = vst [vmem:[%s3603_s22 + $0x18] sm:$0xff] %v2800_v38  ;;  %v2311_v44 = vmax.f32 %v2241_v42, 0.0  ;;  %v2243_v45 = vpop.f32.mrb[7].mxu0  ;;  %v2290_v46 = vpop.f32.mrb[4].mxu1 }
 0x148   : > { %v2801_v47 = vpack.c.bf16 %v2308_v41, %v2307_v39  ;;  %v2312_v48 = vmax.f32 %v2243_v45, 0.0  ;;  %v2309_v49 = vmax.f32 %v2290_v46, 0.0  ;;  %v2292_v50 = vpop.f32.mrb[5].mxu1 }
 0x149   : > { %v2310_v51 = vmax.f32 %v2292_v50, 0.0  ;;  %v2294_v52 = vpop.f32.mrb[6].mxu1  ;;  %2377 = sbr.rel (!%p3020_p4) target bundleno = 344 (0x158), region = 32  ;;  %v2393_v60 = vld [vmem:[%s3603_s22] sm:$0xff] (%p3020_p4) }
 0x14a   : > { %2367 = vst [vmem:[%s3603_s22 + $0x20] sm:$0xff] %v2801_v47  ;;  %v2803_v53 = vpack.c.bf16 %v2312_v48, %v2311_v44  ;;  %v2313_v54 = vmax.f32 %v2294_v52, 0.0  ;;  %v2296_v55 = vpop.f32.mrb[7].mxu1  ;;  %2394 = vst [vmem:[%s2380_s25] sm:$0xff] (%p3020_p4), %v2393_v60 }
 0x14b   : > { %v2802_v56 = vpack.c.bf16 %v2310_v51, %v2309_v49  ;;  %v2314_v58 = vmax.f32 %v2296_v55, 0.0  ;;  %v2397_v62 = vld [vmem:[%s3603_s22 + $0x10] sm:$0xff] (%p3020_p4) }
 0x14c   : > { %2369 = vst [vmem:[%s3603_s22 + $0x30] sm:$0xff] %v2803_v53  ;;  %v2395_v61 = vld [vmem:[%s3603_s22 + $0x8] sm:$0xff] (%p3020_p4)  ;;  %2398 = vst [vmem:[%s2380_s25 + $0x40] sm:$0xff] (%p3020_p4), %v2397_v62 }
 0x14d   : > { %2368 = vst [vmem:[%s3603_s22 + $0x28] sm:$0xff] %v2802_v56  ;;  %v2804_v59 = vpack.c.bf16 %v2314_v58, %v2313_v54  ;;  %2396 = vst [vmem:[%s2380_s25 + $0x8] sm:$0xff] (%p3020_p4), %v2395_v61 }
 0x14e   : > { %v2399_v7 = vld [vmem:[%s3603_s22 + $0x18] sm:$0xff] (%p3020_p4) }
 0x14f   : > { %2370 = vst [vmem:[%s3603_s22 + $0x38] sm:$0xff] %v2804_v59  ;;  %2400 = vst [vmem:[%s2380_s25 + $0x48] sm:$0xff] (%p3020_p4), %v2399_v7 }
 0x151   : > { %v2401_v8 = vld [vmem:[%s3603_s22 + $0x20] sm:$0xff] }
 0x152   : > { %2402 = vst [vmem:[%s2380_s25 + $0x80] sm:$0xff] %v2401_v8 }
 0x153   : > { %v2405_v0 = vld [vmem:[%s3603_s22 + $0x30] sm:$0xff] }
 0x154   : > { %v2403_v63 = vld [vmem:[%s3603_s22 + $0x28] sm:$0xff]  ;;  %2406 = vst [vmem:[%s2380_s25 + $0xc0] sm:$0xff] %v2405_v0 }
 0x155   : > { %2404 = vst [vmem:[%s2380_s25 + $0x88] sm:$0xff] %v2403_v63 }
 0x156   : > { %v2407_v2 = vld [vmem:[%s3603_s22 + $0x38] sm:$0xff] }
 0x157   : > { %2408 = vst [vmem:[%s2380_s25 + $0xc8] sm:$0xff] %v2407_v2 }
 0x158 PF: > { %p15_p10 = scmp.ge.s32.totalorder %s3010_s17, 6   ;;  %s3646_s14 = smov %s2963_s15 }
 0x159   : > { %s3647_s15 = smov %s3018_s20  ;;  %s3648_s16 = smov %s3010_s17 }
 0x15a   :  { %17 = sbr.rel (!%p15_p10) target bundleno = 5 (0x5), region = 223 }

// kernel: netconv_forward.12
= control target key start
LH: loop header
LB: loop body
LE: loop exit
PB: predicated region body
PF: predicated region fallthrough
CT: control target
= control target key end

     0   :  { %s4471_s0 = inlined_call_operand.vmem [shape: bf16[64,288], index: 0, kind: input, shape index: {}]   ;;  %s4472_s1 = inlined_call_operand.vmem [shape: bf16[288,392], index: 1, kind: input, shape index: {}]   ;;  %s4473_s2 = inlined_call_operand.<no memory space> [shape: bf16[], index: 2, kind: input, shape index: {}]   ;;  %s4474_s3 = inlined_call_operand.vmem [shape: bf16[64,512], index: 3, kind: output, shape index: {}]  }
   0x1   :  { %v8_v0 = vstv %s4473_s2 }
   0x2   :  { %v3848_v1 = vunpack.i.l.bf16 %v8_v0 }
   0x3   :  { %v17_v2 = vld [vmem:[%s4472_s1] sm:$0xff]   ;;  %v67_v3 = vlaneseq  ;;  %v3684_v4 = vld [vmem:[%s4472_s1 + $0x10] sm:$0xff]   ;;  %v3174_v8 = vld [vmem:[%s4472_s1 + $0x8] sm:$0xf]  ;;  %v3823_v25 = vmov 0.0   ;;  %vm2720_vm1 = vcmask 261120  }
   0x4   :  { %27 = vst [vmem:[#allocation7] sm:$0xff] %v17_v2   ;;  %v3859_v5 = vld [vmem:[%s4472_s1 + $0x20] sm:$0xff]   ;;  %v3864_v7 = vld [vmem:[%s4472_s1 + $0x30] sm:$0xff]   ;;  %v3175_v9 = vld [vmem:[%s4472_s1 + $0xc] ss:$16 sps:$4 sm:$0xff]  }
   0x5   :  { %v68_v6 = vand.u32 127, %v67_v3  ;;  %53 = vst [vmem:[#allocation7 + $0x8] sm:$0xf] %v3174_v8  ;;  %v65_v10 = vunpack.c.l.bf16 %v3175_v9  ;;  %v3178_v12 = vld [vmem:[%s4472_s1 + $0x18] sm:$0xf]  ;;  %v126_v13 = vunpack.c.h.bf16 %v3175_v9  ;;  %v3880_v14 = vld [vmem:[%s4472_s1 + $0x40] sm:$0xff]   ;;  %v3333_v24 = vcombine.high %v3859_v5, %v3864_v7 }
   0x6   :  { %114 = vst [vmem:[#allocation7 + $0x18] sm:$0xf] %v3178_v12  ;;  %v3886_v15 = vld [vmem:[%s4472_s1 + $0x50] sm:$0xff]   ;;  %v3182_v16 = vld [vmem:[%s4472_s1 + $0x28] sm:$0xf]  ;;  %v3910_v28 = vld [vmem:[%s4472_s1 + $0x60] sm:$0xff]   ;;  %v3332_v42 = vcombine.low %v3859_v5, %v3864_v7 }
   0x7   :  { %v3872_v11 = vadd.s32 384, %v68_v6  ;;  %v3183_v17 = vld [vmem:[%s4472_s1 + $0x2c] ss:$16 sps:$4 sm:$0xff]   ;;  %175 = vst [vmem:[#allocation7 + $0x28] sm:$0xf] %v3182_v16  ;;  %v3921_v33 = vld [vmem:[%s4472_s1 + $0x70] sm:$0xff]   ;;  %v3337_v45 = vcombine.high %v3880_v14, %v3886_v15  ;;  %v3336_v57 = vcombine.low %v3880_v14, %v3886_v15 }
   0x8   :  { %v187_v20 = vunpack.c.l.bf16 %v3183_v17  ;;  %v3186_v21 = vld [vmem:[%s4472_s1 + $0x38] sm:$0xf]  ;;  %v248_v22 = vunpack.c.h.bf16 %v3183_v17  ;;  %v3190_v34 = vld [vmem:[%s4472_s1 + $0x48] sm:$0xf]  ;;  %v3191_v37 = vld [vmem:[%s4472_s1 + $0x4c] ss:$16 sps:$4 sm:$0xff]   ;;  %v3341_v61 = vcombine.high %v3910_v28, %v3921_v33  ;;  %v3340_v9 = vcombine.low %v3910_v28, %v3921_v33 }
   0x9   :  { %vm70_vm0 = vcmp.lt.s32.totalorder %v3872_v11, 392  ;;  %236 = vst [vmem:[#allocation7 + $0x38] sm:$0xf] %v3186_v21  ;;  %297 = vst [vmem:[#allocation7 + $0x48] sm:$0xf] %v3190_v34  ;;  %v309_v39 = vunpack.c.l.bf16 %v3191_v37  ;;  %v370_v40 = vunpack.c.h.bf16 %v3191_v37  ;;  %v3937_v41 = vld [vmem:[%s4472_s1 + $0x80] sm:$0xff]  }
   0xa   :  { %v71_v18 = vsel %vm70_vm0, %v65_v10, %v3848_v1  ;;  %v132_v19 = vsel %vm70_vm0, %v126_v13, %v3848_v1  ;;  %v193_v31 = vsel %vm70_vm0, %v187_v20, %v3848_v1  ;;  %v254_v32 = vsel %vm70_vm0, %v248_v22, %v3848_v1  ;;  %v3194_v38 = vld [vmem:[%s4472_s1 + $0x58] sm:$0xf]  ;;  %v3944_v43 = vld [vmem:[%s4472_s1 + $0x90] sm:$0xff]   ;;  %v3198_v44 = vld [vmem:[%s4472_s1 + $0x68] sm:$0xf] }
   0xb   :  { %v2228_v23 = vld [vmem:[#allocation7] sm:$0xff]  ;;  %v73_v26 = vpack.c.bf16 %v3823_v25, %v71_v18  ;;  %v134_v27 = vpack.c.bf16 %v3823_v25, %v132_v19  ;;  %v195_v35 = vpack.c.bf16 %v3823_v25, %v193_v31  ;;  %v256_v36 = vpack.c.bf16 %v3823_v25, %v254_v32  ;;  %358 = vst [vmem:[#allocation7 + $0x58] sm:$0xf] %v3194_v38  ;;  %v3199_v48 = vld [vmem:[%s4472_s1 + $0x6c] ss:$16 sps:$4 sm:$0xff]   ;;  %v3973_v55 = vld [vmem:[%s4472_s1 + $0xb0] sm:$0xff]  }
   0xc   :  { %v3329_v29 = vcombine.high %v2228_v23, %v3684_v4  ;;  %v3328_v30 = vcombine.low %v2228_v23, %v3684_v4  ;;  %v315_v46 = vsel %vm70_vm0, %v309_v39, %v3848_v1  ;;  %v376_v47 = vsel %vm70_vm0, %v370_v40, %v3848_v1  ;;  %419 = vst [vmem:[#allocation7 + $0x68] sm:$0xf] %v3198_v44  ;;  %v3202_v49 = vld [vmem:[%s4472_s1 + $0x78] sm:$0xf]  ;;  %v3968_v52 = vld [vmem:[%s4472_s1 + $0xa0] sm:$0xff]   ;;  %v4016_v16 = vld [vmem:[%s4472_s1 + $0xd0] sm:$0xff]  }
   0xd   :  { %75 = vst [vmem:[#allocation7 + $0xc] sm:$0xf] %v73_v26  ;;  %136 = vst [vmem:[#allocation7 + $0x1c] sm:$0xf] %v134_v27  ;;  %v317_v50 = vpack.c.bf16 %v3823_v25, %v315_v46  ;;  %v378_v51 = vpack.c.bf16 %v3823_v25, %v376_v47  ;;  %v431_v53 = vunpack.c.l.bf16 %v3199_v48  ;;  %v492_v54 = vunpack.c.h.bf16 %v3199_v48  ;;  %v3206_v56 = vld [vmem:[%s4472_s1 + $0x88] sm:$0xf] }
   0xe   :  { %2733 = vmatprep.subr.bf16.mxu0 %v3329_v29  ;;  %197 = vst [vmem:[#allocation7 + $0x2c] sm:$0xf] %v195_v35  ;;  %258 = vst [vmem:[#allocation7 + $0x3c] sm:$0xf] %v256_v36  ;;  %v3207_v58 = vld [vmem:[%s4472_s1 + $0x8c] ss:$16 sps:$4 sm:$0xff]   ;;  %v3345_v13 = vcombine.high %v3937_v41, %v3944_v43  ;;  %v3349_v29 = vcombine.high %v3968_v52, %v3973_v55  ;;  %v3348_v40 = vcombine.low %v3968_v52, %v3973_v55 }
   0xf   :  { %2734 = vmatpush1.bf16.msra.mxu0 %v3328_v30  ;;  %480 = vst [vmem:[#allocation7 + $0x78] sm:$0xf] %v3202_v49  ;;  %319 = vst [vmem:[#allocation7 + $0x4c] sm:$0xf] %v317_v50  ;;  %v3210_v59 = vld [vmem:[%s4472_s1 + $0x98] sm:$0xf]  ;;  %v437_v62 = vsel %vm70_vm0, %v431_v53, %v3848_v1  ;;  %v498_v63 = vsel %vm70_vm0, %v492_v54, %v3848_v1  ;;  %v553_v4 = vunpack.c.l.bf16 %v3207_v58  ;;  %v614_v5 = vunpack.c.h.bf16 %v3207_v58 }
  0x10   :  { %2735 = vmatprep.subr.bf16.mxu0 %v3333_v24  ;;  %380 = vst [vmem:[#allocation7 + $0x5c] sm:$0xf] %v378_v51  ;;  %541 = vst [vmem:[#allocation7 + $0x88] sm:$0xf] %v3206_v56  ;;  %v3694_v0 = vld [vmem:[#allocation7 + $0x8] ss:$16 sps:$4 sm:$0xff]   ;;  %v439_v2 = vpack.c.bf16 %v3823_v25, %v437_v62  ;;  %v500_v3 = vpack.c.bf16 %v3823_v25, %v498_v63  ;;  %v3344_v24 = vcombine.low %v3937_v41, %v3944_v43 }
  0x11   :  { %602 = vst [vmem:[#allocation7 + $0x98] sm:$0xf] %v3210_v59  ;;  %v3999_v6 = vld [vmem:[%s4472_s1 + $0xc0] sm:$0xff]   ;;  %v3701_v8 = vld [vmem:[#allocation7 + $0x28] ss:$16 sps:$4 sm:$0xff]   ;;  %v559_v10 = vsel %vm70_vm0, %v553_v4, %v3848_v1  ;;  %v620_v12 = vsel %vm70_vm0, %v614_v5, %v3848_v1  ;;  %v4047_v32 = vld [vmem:[%s4472_s1 + $0xf0] sm:$0xff]  }
  0x12   :  { %441 = vst [vmem:[#allocation7 + $0x6c] sm:$0xf] %v439_v2  ;;  %502 = vst [vmem:[#allocation7 + $0x7c] sm:$0xf] %v500_v3  ;;  %v561_v14 = vpack.c.bf16 %v3823_v25, %v559_v10  ;;  %v622_v15 = vpack.c.bf16 %v3823_v25, %v620_v12  ;;  %v3214_v17 = vld [vmem:[%s4472_s1 + $0xa8] sm:$0xf]  ;;  %v3352_v52 = vcombine.low %v3999_v6, %v4016_v16 }
  0x13   :  { %2736 = vmatpush1.bf16.msra.mxu0 %v3332_v42  ;;  %v3215_v18 = vld [vmem:[%s4472_s1 + $0xac] ss:$16 sps:$4 sm:$0xff]   ;;  %663 = vst [vmem:[#allocation7 + $0xa8] sm:$0xf] %v3214_v17  ;;  %v3218_v20 = vld [vmem:[%s4472_s1 + $0xb8] sm:$0xf]  ;;  %v3353_v42 = vcombine.high %v3999_v6, %v4016_v16 }
  0x14   :  { %v3689_v60 = vld [vmem:[#allocation7 + $0xc] ss:$16 sps:$4 sm:$0xff]   ;;  %2737 = vmatprep.subr.bf16.mxu0 %v3337_v45  ;;  %v675_v19 = vunpack.c.l.bf16 %v3215_v18  ;;  %v736_v21 = vunpack.c.h.bf16 %v3215_v18  ;;  %563 = vst [vmem:[#allocation7 + $0x8c] sm:$0xf] %v561_v14  ;;  %624 = vst [vmem:[#allocation7 + $0x9c] sm:$0xf] %v622_v15 }
  0x15   :  { %2879 = vmatprep.subr.bf16.mxu1 %v3689_v60  ;;  %v3696_v7 = vld [vmem:[#allocation7 + $0x2c] ss:$16 sps:$4 sm:$0xff]   ;;  %724 = vst [vmem:[#allocation7 + $0xb8] sm:$0xf] %v3218_v20  ;;  %v3708_v23 = vld [vmem:[#allocation7 + $0x48] ss:$16 sps:$4 sm:$0xff]  }
  0x16   :  { %2880 = vmatpush1.bf16.msra.mxu1 %v3694_v0  ;;  %v681_v26 = vsel %vm70_vm0, %v675_v19, %v3848_v1  ;;  %v742_v27 = vsel %vm70_vm0, %v736_v21, %v3848_v1  ;;  %v4038_v28 = vld [vmem:[%s4472_s1 + $0xe0] sm:$0xff]   ;;  %v3222_v33 = vld [vmem:[%s4472_s1 + $0xc8] sm:$0xf]  ;;  %v3223_v34 = vld [vmem:[%s4472_s1 + $0xcc] ss:$16 sps:$4 sm:$0xff]  }
  0x17   :  { %2738 = vmatpush1.bf16.msra.mxu0 %v3336_v57  ;;  %2881 = vmatprep.subr.bf16.mxu1 %v3696_v7  ;;  %v3703_v22 = vld [vmem:[#allocation7 + $0x4c] ss:$16 sps:$4 sm:$0xff]   ;;  %v683_v30 = vpack.c.bf16 %v3823_v25, %v681_v26  ;;  %v744_v31 = vpack.c.bf16 %v3823_v25, %v742_v27  ;;  %785 = vst [vmem:[#allocation7 + $0xc8] sm:$0xf] %v3222_v33  ;;  %v3226_v35 = vld [vmem:[%s4472_s1 + $0xd8] sm:$0xf]  ;;  %v797_v37 = vunpack.c.l.bf16 %v3223_v34  ;;  %v858_v38 = vunpack.c.h.bf16 %v3223_v34 }
  0x18   :  { %2739 = vmatprep.subr.bf16.mxu0 %v3341_v61  ;;  %846 = vst [vmem:[#allocation7 + $0xd8] sm:$0xf] %v3226_v35  ;;  %v3715_v39 = vld [vmem:[#allocation7 + $0x68] ss:$16 sps:$4 sm:$0xff]   ;;  %v4063_v41 = vld [vmem:[%s4472_s1 + $0x100] sm:$0xff]   ;;  %v4076_v45 = vld [vmem:[%s4472_s1 + $0x110] sm:$0xff]   ;;  %v3357_v56 = vcombine.high %v4038_v28, %v4047_v32  ;;  %v3356_v3 = vcombine.low %v4038_v28, %v4047_v32 }
  0x19   :  { %v3710_v36 = vld [vmem:[#allocation7 + $0x6c] ss:$16 sps:$4 sm:$0xff]   ;;  %685 = vst [vmem:[#allocation7 + $0xac] sm:$0xf] %v683_v30  ;;  %746 = vst [vmem:[#allocation7 + $0xbc] sm:$0xf] %v744_v31  ;;  %v803_v43 = vsel %vm70_vm0, %v797_v37, %v3848_v1  ;;  %v864_v44 = vsel %vm70_vm0, %v858_v38, %v3848_v1  ;;  %v3361_v6 = vcombine.high %v4063_v41, %v4076_v45 }
  0x1a   :  { %2882 = vmatpush1.bf16.msra.mxu1 %v3701_v8  ;;  %v805_v47 = vpack.c.bf16 %v3823_v25, %v803_v43  ;;  %v866_v48 = vpack.c.bf16 %v3823_v25, %v864_v44  ;;  %v3722_v49 = vld [vmem:[#allocation7 + $0x88] ss:$16 sps:$4 sm:$0xff]   ;;  %v3231_v51 = vld [vmem:[%s4472_s1 + $0xec] ss:$16 sps:$4 sm:$0xff]   ;;  %v4096_v57 = vld [vmem:[%s4472_s1 + $0x120] sm:$0xff]   ;;  %v3360_v17 = vcombine.low %v4063_v41, %v4076_v45 }
  0x1b   :  { %2740 = vmatpush1.bf16.msra.mxu0 %v3340_v9  ;;  %2883 = vmatprep.subr.bf16.mxu1 %v3703_v22  ;;  %v3717_v46 = vld [vmem:[#allocation7 + $0x8c] ss:$16 sps:$4 sm:$0xff]   ;;  %v3230_v50 = vld [vmem:[%s4472_s1 + $0xe8] sm:$0xf]  ;;  %v919_v53 = vunpack.c.l.bf16 %v3231_v51  ;;  %v3234_v54 = vld [vmem:[%s4472_s1 + $0xf8] sm:$0xf]  ;;  %v980_v55 = vunpack.c.h.bf16 %v3231_v51 }
  0x1c   :  { %2741 = vmatprep.subr.bf16.mxu0 %v3345_v13  ;;  %807 = vst [vmem:[#allocation7 + $0xcc] sm:$0xf] %v805_v47  ;;  %868 = vst [vmem:[#allocation7 + $0xdc] sm:$0xf] %v866_v48  ;;  %v3729_v61 = vld [vmem:[#allocation7 + $0xa8] ss:$16 sps:$4 sm:$0xff]  }
  0x1d   :  { %907 = vst [vmem:[#allocation7 + $0xe8] sm:$0xf] %v3230_v50  ;;  %968 = vst [vmem:[#allocation7 + $0xf8] sm:$0xf] %v3234_v54  ;;  %v925_v59 = vsel %vm70_vm0, %v919_v53, %v3848_v1  ;;  %v986_v60 = vsel %vm70_vm0, %v980_v55, %v3848_v1  ;;  %v4109_v0 = vld [vmem:[%s4472_s1 + $0x130] sm:$0xff]   ;;  %v4127_v9 = vld [vmem:[%s4472_s1 + $0x140] sm:$0xff]  }
  0x1e   :  { %2884 = vmatpush1.bf16.msra.mxu1 %v3708_v23  ;;  %v927_v62 = vpack.c.bf16 %v3823_v25, %v925_v59  ;;  %v988_v63 = vpack.c.bf16 %v3823_v25, %v986_v60  ;;  %v3238_v2 = vld [vmem:[%s4472_s1 + $0x108] sm:$0xf]  ;;  %v3239_v4 = vld [vmem:[%s4472_s1 + $0x10c] ss:$16 sps:$4 sm:$0xff]   ;;  %v3242_v5 = vld [vmem:[%s4472_s1 + $0x118] sm:$0xf]  ;;  %v3365_v22 = vcombine.high %v4096_v57, %v4109_v0  ;;  %v3364_v34 = vcombine.low %v4096_v57, %v4109_v0 }
  0x1f   :  { %2742 = vmatpush1.bf16.msra.mxu0 %v3344_v24  ;;  %2885 = vmatprep.subr.bf16.mxu1 %v3710_v36  ;;  %1029 = vst [vmem:[#allocation7 + $0x108] sm:$0xf] %v3238_v2  ;;  %v1041_v7 = vunpack.c.l.bf16 %v3239_v4  ;;  %1090 = vst [vmem:[#allocation7 + $0x118] sm:$0xf] %v3242_v5  ;;  %v1102_v8 = vunpack.c.h.bf16 %v3239_v4  ;;  %v4132_v10 = vld [vmem:[%s4472_s1 + $0x150] sm:$0xff]   ;;  %v4158_v26 = vld [vmem:[%s4472_s1 + $0x160] sm:$0xff]  }
  0x20   :  { %2743 = vmatprep.subr.bf16.mxu0 %v3349_v29  ;;  %v3724_v58 = vld [vmem:[#allocation7 + $0xac] ss:$16 sps:$4 sm:$0xff]   ;;  %929 = vst [vmem:[#allocation7 + $0xec] sm:$0xf] %v927_v62  ;;  %990 = vst [vmem:[#allocation7 + $0xfc] sm:$0xf] %v988_v63  ;;  %v3368_v48 = vcombine.low %v4127_v9, %v4132_v10 }
  0x21   :  { %v3246_v12 = vld [vmem:[%s4472_s1 + $0x128] sm:$0xf]  ;;  %v1047_v14 = vsel %vm70_vm0, %v1041_v7, %v3848_v1  ;;  %v1108_v15 = vsel %vm70_vm0, %v1102_v8, %v3848_v1  ;;  %v3247_v20 = vld [vmem:[%s4472_s1 + $0x12c] ss:$16 sps:$4 sm:$0xff]   ;;  %v3250_v21 = vld [vmem:[%s4472_s1 + $0x138] sm:$0xf] }
  0x22   :  { %2886 = vmatpush1.bf16.msra.mxu1 %v3715_v39  ;;  %1151 = vst [vmem:[#allocation7 + $0x128] sm:$0xf] %v3246_v12  ;;  %v3736_v16 = vld [vmem:[#allocation7 + $0xc8] ss:$16 sps:$4 sm:$0xff]   ;;  %v1049_v18 = vpack.c.bf16 %v3823_v25, %v1047_v14  ;;  %v1110_v19 = vpack.c.bf16 %v3823_v25, %v1108_v15  ;;  %v1163_v23 = vunpack.c.l.bf16 %v3247_v20  ;;  %1212 = vst [vmem:[#allocation7 + $0x138] sm:$0xf] %v3250_v21  ;;  %v1224_v24 = vunpack.c.h.bf16 %v3247_v20 }
  0x23   :  { %2744 = vmatpush1.bf16.msra.mxu0 %v3348_v40  ;;  %2887 = vmatprep.subr.bf16.mxu1 %v3717_v46  ;;  %v3731_v13 = vld [vmem:[#allocation7 + $0xcc] ss:$16 sps:$4 sm:$0xff]   ;;  %v4163_v27 = vld [vmem:[%s4472_s1 + $0x170] sm:$0xff]   ;;  %v3254_v30 = vld [vmem:[%s4472_s1 + $0x148] sm:$0xf]  ;;  %v3369_v39 = vcombine.high %v4127_v9, %v4132_v10 }
  0x24   :  { %2745 = vmatprep.subr.bf16.mxu0 %v3353_v42  ;;  %1051 = vst [vmem:[#allocation7 + $0x10c] sm:$0xf] %v1049_v18  ;;  %1112 = vst [vmem:[#allocation7 + $0x11c] sm:$0xf] %v1110_v19  ;;  %v1169_v28 = vsel %vm70_vm0, %v1163_v23, %v3848_v1  ;;  %v1230_v29 = vsel %vm70_vm0, %v1224_v24, %v3848_v1  ;;  %v3255_v31 = vld [vmem:[%s4472_s1 + $0x14c] ss:$16 sps:$4 sm:$0xff]   ;;  %v3373_v54 = vcombine.high %v4158_v26, %v4163_v27 }
  0x25   :  { %v3258_v32 = vld [vmem:[%s4472_s1 + $0x158] sm:$0xf]  ;;  %v1171_v35 = vpack.c.bf16 %v3823_v25, %v1169_v28  ;;  %v1232_v36 = vpack.c.bf16 %v3823_v25, %v1230_v29  ;;  %1273 = vst [vmem:[#allocation7 + $0x148] sm:$0xf] %v3254_v30  ;;  %v1285_v37 = vunpack.c.l.bf16 %v3255_v31  ;;  %v1346_v40 = vunpack.c.h.bf16 %v3255_v31  ;;  %v4192_v42 = vld [vmem:[%s4472_s1 + $0x180] sm:$0xff]   ;;  %v4201_v45 = vld [vmem:[%s4472_s1 + $0x190] sm:$0xff]  }
  0x26   :  { %2888 = vmatpush1.bf16.msra.mxu1 %v3722_v49  ;;  %1334 = vst [vmem:[#allocation7 + $0x158] sm:$0xf] %v3258_v32  ;;  %v3743_v38 = vld [vmem:[#allocation7 + $0xe8] ss:$16 sps:$4 sm:$0xff]   ;;  %v3263_v47 = vld [vmem:[%s4472_s1 + $0x16c] ss:$16 sps:$4 sm:$0xff]   ;;  %v3372_v63 = vcombine.low %v4158_v26, %v4163_v27  ;;  %v3377_v4 = vcombine.high %v4192_v42, %v4201_v45 }
  0x27   :  { %2746 = vmatpush1.bf16.msra.mxu0 %v3352_v52  ;;  %2889 = vmatprep.subr.bf16.mxu1 %v3724_v58  ;;  %v3738_v33 = vld [vmem:[#allocation7 + $0xec] ss:$16 sps:$4 sm:$0xff]   ;;  %1173 = vst [vmem:[#allocation7 + $0x12c] sm:$0xf] %v1171_v35  ;;  %1234 = vst [vmem:[#allocation7 + $0x13c] sm:$0xf] %v1232_v36  ;;  %v1291_v41 = vsel %vm70_vm0, %v1285_v37, %v3848_v1  ;;  %v1352_v44 = vsel %vm70_vm0, %v1346_v40, %v3848_v1  ;;  %v1407_v50 = vunpack.c.l.bf16 %v3263_v47 }
  0x28   :  { %2747 = vmatprep.subr.bf16.mxu0 %v3357_v56  ;;  %v1293_v43 = vpack.c.bf16 %v3823_v25, %v1291_v41  ;;  %v3262_v46 = vld [vmem:[%s4472_s1 + $0x168] sm:$0xf]  ;;  %v1354_v49 = vpack.c.bf16 %v3823_v25, %v1352_v44  ;;  %v3266_v51 = vld [vmem:[%s4472_s1 + $0x178] sm:$0xf]  ;;  %v1468_v52 = vunpack.c.h.bf16 %v3263_v47  ;;  %v4226_v58 = vld [vmem:[%s4472_s1 + $0x1a0] sm:$0xff]  }
  0x29   :  { %1395 = vst [vmem:[#allocation7 + $0x168] sm:$0xf] %v3262_v46  ;;  %1456 = vst [vmem:[#allocation7 + $0x178] sm:$0xf] %v3266_v51  ;;  %v3750_v55 = vld [vmem:[#allocation7 + $0x108] ss:$16 sps:$4 sm:$0xff]   ;;  %v1413_v56 = vsel %vm70_vm0, %v1407_v50, %v3848_v1 }
  0x2a   :  { %2890 = vmatpush1.bf16.msra.mxu1 %v3729_v61  ;;  %1295 = vst [vmem:[#allocation7 + $0x14c] sm:$0xf] %v1293_v43  ;;  %1356 = vst [vmem:[#allocation7 + $0x15c] sm:$0xf] %v1354_v49  ;;  %v1474_v57 = vsel %vm70_vm0, %v1468_v52, %v3848_v1  ;;  %v1415_v59 = vpack.c.bf16 %v3823_v25, %v1413_v56  ;;  %v3769_v61 = vld [vmem:[%s4472_s1 + $0x1b0] sm:$0xff]   ;;  %v4249_v8 = vld [vmem:[%s4472_s1 + $0x1c0] sm:$0xff]  }
  0x2b   :  { %2748 = vmatpush1.bf16.msra.mxu0 %v3356_v3  ;;  %2891 = vmatprep.subr.bf16.mxu1 %v3731_v13  ;;  %v3745_v53 = vld [vmem:[#allocation7 + $0x10c] ss:$16 sps:$4 sm:$0xff]   ;;  %v1476_v60 = vpack.c.bf16 %v3823_v25, %v1474_v57  ;;  %v3270_v62 = vld [vmem:[%s4472_s1 + $0x188] sm:$0xf]  ;;  %v3274_v2 = vld [vmem:[%s4472_s1 + $0x198] sm:$0xf]  ;;  %v3376_v13 = vcombine.low %v4192_v42, %v4201_v45  ;;  %v3381_v20 = vcombine.high %v4226_v58, %v3769_v61 }
  0x2c   :  { %2749 = vmatprep.subr.bf16.mxu0 %v3361_v6  ;;  %1517 = vst [vmem:[#allocation7 + $0x188] sm:$0xf] %v3270_v62  ;;  %v3271_v0 = vld [vmem:[%s4472_s1 + $0x18c] ss:$16 sps:$4 sm:$0xff]   ;;  %1417 = vst [vmem:[#allocation7 + $0x16c] sm:$0xf] %v1415_v59  ;;  %v3380_v29 = vcombine.low %v4226_v58, %v3769_v61 }
  0x2d   :  { %1478 = vst [vmem:[#allocation7 + $0x17c] sm:$0xf] %v1476_v60  ;;  %v1529_v5 = vunpack.c.l.bf16 %v3271_v0  ;;  %1578 = vst [vmem:[#allocation7 + $0x198] sm:$0xf] %v3274_v2  ;;  %v1590_v6 = vunpack.c.h.bf16 %v3271_v0  ;;  %v3757_v7 = vld [vmem:[#allocation7 + $0x128] ss:$16 sps:$4 sm:$0xff]  }
  0x2e   :  { %2892 = vmatpush1.bf16.msra.mxu1 %v3736_v16  ;;  %v3752_v3 = vld [vmem:[#allocation7 + $0x12c] ss:$16 sps:$4 sm:$0xff]   ;;  %v4260_v12 = vld [vmem:[%s4472_s1 + $0x1d0] sm:$0xff]   ;;  %v3278_v16 = vld [vmem:[%s4472_s1 + $0x1a8] sm:$0xf] }
  0x2f   :  { %2750 = vmatpush1.bf16.msra.mxu0 %v3360_v17  ;;  %2893 = vmatprep.subr.bf16.mxu1 %v3738_v33  ;;  %v1535_v9 = vsel %vm70_vm0, %v1529_v5, %v3848_v1  ;;  %v1596_v10 = vsel %vm70_vm0, %v1590_v6, %v3848_v1  ;;  %v3279_v17 = vld [vmem:[%s4472_s1 + $0x1ac] ss:$16 sps:$4 sm:$0xff]   ;;  %v3764_v19 = vld [vmem:[#allocation7 + $0x148] ss:$16 sps:$4 sm:$0xff]   ;;  %1639 = vst [vmem:[#allocation7 + $0x1a8] sm:$0xf] %v3278_v16 }
  0x30   :  { %2751 = vmatprep.subr.bf16.mxu0 %v3365_v22  ;;  %v1537_v14 = vpack.c.bf16 %v3823_v25, %v1535_v9  ;;  %v1598_v15 = vpack.c.bf16 %v3823_v25, %v1596_v10  ;;  %v1651_v21 = vunpack.c.l.bf16 %v3279_v17  ;;  %v1712_v22 = vunpack.c.h.bf16 %v3279_v17  ;;  %v3282_v23 = vld [vmem:[%s4472_s1 + $0x1b8] sm:$0xf]  ;;  %v4285_v27 = vld [vmem:[%s4472_s1 + $0x1e0] sm:$0xff]   ;;  %v3286_v36 = vld [vmem:[%s4472_s1 + $0x1c8] sm:$0xf] }
  0x31   :  { %v3759_v18 = vld [vmem:[#allocation7 + $0x14c] ss:$16 sps:$4 sm:$0xff]   ;;  %1700 = vst [vmem:[#allocation7 + $0x1b8] sm:$0xf] %v3282_v23  ;;  %v3771_v32 = vld [vmem:[#allocation7 + $0x168] ss:$16 sps:$4 sm:$0xff]   ;;  %v3385_v33 = vcombine.high %v4249_v8, %v4260_v12 }
  0x32   :  { %2894 = vmatpush1.bf16.msra.mxu1 %v3743_v38  ;;  %1539 = vst [vmem:[#allocation7 + $0x18c] sm:$0xf] %v1537_v14  ;;  %1600 = vst [vmem:[#allocation7 + $0x19c] sm:$0xf] %v1598_v15  ;;  %v1657_v24 = vsel %vm70_vm0, %v1651_v21, %v3848_v1  ;;  %v1718_v26 = vsel %vm70_vm0, %v1712_v22, %v3848_v1  ;;  %v3789_v35 = vld [vmem:[%s4471_s0 + $0x4] ss:$12 sps:$4 sm:$0xff]  }
  0x33   :  { %2752 = vmatpush1.bf16.msra.mxu0 %v3364_v34  ;;  %2895 = vmatprep.subr.bf16.mxu1 %v3745_v53  ;;  %v1659_v30 = vpack.c.bf16 %v3823_v25, %v1657_v24  ;;  %v1720_v31 = vpack.c.bf16 %v3823_v25, %v1718_v26  ;;  %v3783_v34 = vld [vmem:[%s4472_s1 + $0x1f0] sm:$0xff]   ;;  %v3287_v37 = vld [vmem:[%s4472_s1 + $0x1cc] ss:$16 sps:$4 sm:$0xff]   ;;  %v3290_v38 = vld [vmem:[%s4472_s1 + $0x1d8] sm:$0xf] }
  0x34   :  { %2753 = vmatprep.subr.bf16.mxu0 %v3369_v39  ;;  %v3766_v28 = vld [vmem:[#allocation7 + $0x16c] ss:$16 sps:$4 sm:$0xff]   ;;  %v3384_v39 = vcombine.low %v4249_v8, %v4260_v12  ;;  %1761 = vst [vmem:[#allocation7 + $0x1c8] sm:$0xf] %v3286_v36  ;;  %v1773_v40 = vunpack.c.l.bf16 %v3287_v37  ;;  %1822 = vst [vmem:[#allocation7 + $0x1d8] sm:$0xf] %v3290_v38  ;;  %v1834_v41 = vunpack.c.h.bf16 %v3287_v37  ;;  %v3389_v46 = vcombine.high %v4285_v27, %v3783_v34 }
  0x35   :  { %1661 = vst [vmem:[#allocation7 + $0x1ac] sm:$0xf] %v1659_v30  ;;  %1722 = vst [vmem:[#allocation7 + $0x1bc] sm:$0xf] %v1720_v31  ;;  %v3294_v42 = vld [vmem:[%s4472_s1 + $0x1e8] sm:$0xf]  ;;  %2765 = vmatprep.mubr.bf16.mxu0 %v3789_v35  ;;  %2911 = vmatprep.mubr.bf16.mxu1 %v3789_v35  ;;  %v3388_v56 = vcombine.low %v4285_v27, %v3783_v34 }
  0x36   :  { %2896 = vmatpush1.bf16.msra.mxu1 %v3750_v55  ;;  %v3295_v43 = vld [vmem:[%s4472_s1 + $0x1ec] ss:$16 sps:$4 sm:$0xff]   ;;  %v3298_v44 = vld [vmem:[%s4472_s1 + $0x1f8] sm:$0xf]  ;;  %1883 = vst [vmem:[#allocation7 + $0x1e8] sm:$0xf] %v3294_v42  ;;  %v1779_v50 = vsel %vm70_vm0, %v1773_v40, %v3848_v1  ;;  %v1840_v51 = vsel %vm70_vm0, %v1834_v41, %v3848_v1 }
  0x37   :  { %2754 = vmatpush1.bf16.msra.mxu0 %v3368_v48  ;;  %2897 = vmatprep.subr.bf16.mxu1 %v3752_v3  ;;  %v1895_v47 = vunpack.c.l.bf16 %v3295_v43  ;;  %1944 = vst [vmem:[#allocation7 + $0x1f8] sm:$0xf] %v3298_v44  ;;  %v1956_v48 = vunpack.c.h.bf16 %v3295_v43  ;;  %v3778_v49 = vld [vmem:[#allocation7 + $0x188] ss:$16 sps:$4 sm:$0xff]   ;;  %v1781_v52 = vpack.c.bf16 %v3823_v25, %v1779_v50  ;;  %v1842_v53 = vpack.c.bf16 %v3823_v25, %v1840_v51  ;;  %v3798_v59 = vld [vmem:[%s4472_s1 + $0x200] sm:$0xff]   ;;  %v3799_v62 = vld [vmem:[%s4472_s1 + $0x210] sm:$0xff]  }
  0x38   :  { %2755 = vmatprep.subr.bf16.mxu0 %v3373_v54  ;;  %v3785_v61 = vld [vmem:[#allocation7 + $0x1a8] ss:$16 sps:$4 sm:$0xff]   ;;  %v3787_v0 = vld [vmem:[%s4471_s0] ss:$12 sps:$4 sm:$0xff]   ;;  %v3392_v5 = vcombine.low %v3798_v59, %v3799_v62  ;;  %v3393_v6 = vcombine.high %v3798_v59, %v3799_v62  ;;  %v3808_v11 = vld [vmem:[%s4471_s0 + $0x30] ss:$12 sps:$4 sm:$0xff]  }
  0x39   :  { %v3773_v45 = vld [vmem:[#allocation7 + $0x18c] ss:$16 sps:$4 sm:$0xff]   ;;  %v1901_v54 = vsel %vm70_vm0, %v1895_v47, %v3848_v1  ;;  %v1962_v55 = vsel %vm70_vm0, %v1956_v48, %v3848_v1  ;;  %1783 = vst [vmem:[#allocation7 + $0x1cc] sm:$0xf] %v1781_v52  ;;  %1844 = vst [vmem:[#allocation7 + $0x1dc] sm:$0xf] %v1842_v53 }
  0x3a   :  { %2898 = vmatpush1.bf16.msra.mxu1 %v3757_v7  ;;  %v1903_v57 = vpack.c.bf16 %v3823_v25, %v1901_v54  ;;  %v1964_v58 = vpack.c.bf16 %v3823_v25, %v1962_v55  ;;  %v3303_v2 = vld [vmem:[%s4472_s1 + $0x20c] ss:$16 sps:$4 sm:$0xff]   ;;  %v3306_v3 = vld [vmem:[%s4472_s1 + $0x218] sm:$0xf]  ;;  %v3811_v14 = vld [vmem:[%s4472_s1 + $0x220] sm:$0xff]   ;;  %v3824_v38 = vmov 0  }
  0x3b   :  { %2756 = vmatpush1.bf16.msra.mxu0 %v3372_v63  ;;  %2899 = vmatprep.subr.bf16.mxu1 %v3759_v18  ;;  %v3302_v63 = vld [vmem:[%s4472_s1 + $0x208] sm:$0xf]  ;;  %v2017_v7 = vunpack.c.l.bf16 %v3303_v2  ;;  %2066 = vst [vmem:[#allocation7 + $0x218] sm:$0xf] %v3306_v3  ;;  %v2078_v8 = vunpack.c.h.bf16 %v3303_v2  ;;  %v3805_v17 = vld [vmem:[%s4471_s0 + $0x18] ss:$12 sps:$4 sm:$0xff]  }
  0x3c   :  { %2757 = vmatprep.subr.bf16.mxu0 %v3377_v4  ;;  %v3780_v60 = vld [vmem:[#allocation7 + $0x1ac] ss:$16 sps:$4 sm:$0xff]   ;;  %1905 = vst [vmem:[#allocation7 + $0x1ec] sm:$0xf] %v1903_v57  ;;  %1966 = vst [vmem:[#allocation7 + $0x1fc] sm:$0xf] %v1964_v58 }
  0x3d   :  { %2005 = vst [vmem:[#allocation7 + $0x208] sm:$0xf] %v3302_v63  ;;  %v3796_v4 = vld [vmem:[%s4471_s0 + $0x1c] ss:$12 sps:$4 sm:$0xff]   ;;  %v2023_v9 = vsel %vm70_vm0, %v2017_v7, %v3848_v1  ;;  %v2084_v10 = vsel %vm70_vm0, %v2078_v8, %v3848_v1  ;;  %v3314_v23 = vld [vmem:[%s4472_s1 + $0x238] sm:$0xf] }
  0x3e   :  { %2900 = vmatpush1.bf16.msra.mxu1 %v3764_v19  ;;  %v2025_v12 = vpack.c.bf16 %v3823_v25, %v2023_v9  ;;  %v3792_v16 = vld [vmem:[#allocation7 + $0x1c8] ss:$16 sps:$4 sm:$0xff]   ;;  %v3311_v22 = vld [vmem:[%s4472_s1 + $0x22c] ss:$16 sps:$4 sm:$0xff]   ;;  %v3806_v24 = vld [vmem:[%s4471_s0 + $0x34] ss:$12 sps:$4 sm:$0xff]  }
  0x3f   :  { %2758 = vmatpush1.bf16.msra.mxu0 %v3376_v13  ;;  %2901 = vmatprep.subr.bf16.mxu1 %v3766_v28  ;;  %v2086_v13 = vpack.c.bf16 %v3823_v25, %v2084_v10  ;;  %v3795_v19 = vld [vmem:[#allocation7 + $0x1e8] ss:$16 sps:$4 sm:$0xff]   ;;  %v2139_v28 = vunpack.c.l.bf16 %v3311_v22  ;;  %2188 = vst [vmem:[#allocation7 + $0x238] sm:$0xf] %v3314_v23  ;;  %v3820_v40 = vld [vmem:[%s4471_s0 + $0x20] ss:$12 sps:$4 sm:$0xff]  }
  0x40   :  { %2759 = vmatprep.subr.bf16.mxu0 %v3381_v20  ;;  %v3790_v15 = vld [vmem:[#allocation7 + $0x1cc] ss:$16 sps:$4 sm:$0xff]   ;;  %2027 = vst [vmem:[#allocation7 + $0x20c] sm:$0xf] %v2025_v12  ;;  %v3812_v20 = vld [vmem:[%s4472_s1 + $0x230] sm:$0xff]  }
  0x41   :  { %2088 = vst [vmem:[#allocation7 + $0x21c] sm:$0xf] %v2086_v13  ;;  %v3310_v21 = vld [vmem:[%s4472_s1 + $0x228] sm:$0xf]  ;;  %v3396_v26 = vcombine.low %v3811_v14, %v3812_v20  ;;  %v3397_v27 = vcombine.high %v3811_v14, %v3812_v20  ;;  %v2145_v30 = vsel %vm70_vm0, %v2139_v28, %v3848_v1  ;;  %v3821_v41 = vld [vmem:[%s4471_s0 + $0x38] ss:$12 sps:$4 sm:$0xff]  }
  0x42   :  { %2902 = vmatpush1.bf16.msra.mxu1 %v3771_v32  ;;  %2127 = vst [vmem:[#allocation7 + $0x228] sm:$0xf] %v3310_v21  ;;  %v2147_v32 = vpack.c.bf16 %v3823_v25, %v2145_v30  ;;  %v3818_v37 = vld [vmem:[%s4471_s0 + $0x48] ss:$12 sps:$4 sm:$0xff]   ;;  %v3822_v42 = vld [vmem:[%s4471_s0 + $0x50] ss:$12 sps:$4 sm:$0xff]  }
  0x43   :  { %2760 = vmatpush1.bf16.msra.mxu0 %v3380_v29  ;;  %2903 = vmatprep.subr.bf16.mxu1 %v3773_v45  ;;  %v3793_v18 = vld [vmem:[#allocation7 + $0x1ec] ss:$16 sps:$4 sm:$0xff]   ;;  %v2200_v29 = vunpack.c.h.bf16 %v3311_v22 }
  0x44   :  { %2761 = vmatprep.subr.bf16.mxu0 %v3385_v33  ;;  %v3802_v34 = vld [vmem:[#allocation7 + $0x208] ss:$16 sps:$4 sm:$0xff]   ;;  %2149 = vst [vmem:[#allocation7 + $0x22c] sm:$0xf] %v2147_v32 }
  0x45   :  { %v2206_v31 = vsel %vm70_vm0, %v2200_v29, %v3848_v1  ;;  %v3809_v1 = vld [vmem:[%s4471_s0 + $0x4c] ss:$12 sps:$4 sm:$0xff]  }
  0x46   :  { %2904 = vmatpush1.bf16.msra.mxu1 %v3778_v49  ;;  %v2208_v33 = vpack.c.bf16 %v3823_v25, %v2206_v31 }
  0x47   :  { %2762 = vmatpush1.bf16.msra.mxu0 %v3384_v39  ;;  %2905 = vmatprep.subr.bf16.mxu1 %v3780_v60  ;;  %v3819_v39 = vld [vmem:[%s4471_s0 + $0x8] ss:$12 sps:$4 sm:$0xff]  }
  0x48   :  { %2763 = vmatprep.subr.bf16.mxu0 %v3389_v46  ;;  %v3804_v35 = vld [vmem:[#allocation7 + $0x20c] ss:$16 sps:$4 sm:$0xff]   ;;  %2210 = vst [vmem:[#allocation7 + $0x23c] sm:$0xf] %v2208_v33 }
  0x49   :  { %v3815_v25 = vld [vmem:[#allocation7 + $0x228] ss:$16 sps:$4 sm:$0xff]  }
  0x4a   :  { %2906 = vmatpush1.bf16.msra.mxu1 %v3785_v61 }
  0x4b   :  { %2764 = vmatpush1.bf16.msra.mxu0 %v3388_v56  ;;  %2907 = vmatprep.subr.bf16.mxu1 %v3790_v15 }
  0x4c   :  { %2806 = vmatprep.subr.bf16.mxu0 %v3393_v6 }
  0x4e   :  { %2766 = vmatmul.mubr.bf16.vlgmr.msra.gmra.mrb[0].mxu0 %v3787_v0  ;;  %2908 = vmatpush1.bf16.msra.mxu1 %v3792_v16 }
  0x4f   :  { %2775 = vmatprep.mubr.bf16.mxu0 %v3796_v4  ;;  %2807 = vmatpush1.bf16.msra.mxu0 %v3392_v5  ;;  %v3817_v36 = vld [vmem:[#allocation7 + $0x22c] ss:$16 sps:$4 sm:$0xff]  }
  0x50   :  { %2909 = vmatprep.subr.bf16.mxu1 %v3793_v18  ;;  %2808 = vmatprep.subr.bf16.mxu0 %v3397_v27 }
  0x52   :  { %2910 = vmatpush1.bf16.msra.mxu1 %v3795_v19 }
  0x53   :  { %2809 = vmatpush1.bf16.msra.mxu0 %v3396_v26  ;;  %2952 = vmatprep.subr.bf16.mxu1 %v3804_v35 }
  0x55   :  { %2912 = vmatmul.mubr.bf16.vlgmr.msra.gmra.mrb[0].mxu1 %v3787_v0 }
  0x56   :  { %2776 = vmatmul.mubr.bf16.gmra.mrb[4].mxu0 %v3805_v17  ;;  %2921 = vmatprep.mubr.bf16.mxu1 %v3796_v4 }
  0x57   :  { %2785 = vmatprep.mubr.bf16.mxu0 %v3806_v24  ;;  %2953 = vmatpush1.bf16.msra.mxu1 %v3802_v34 }
  0x58   :  { %2954 = vmatprep.subr.bf16.mxu1 %v3817_v36 }
  0x5b   :  { %2955 = vmatpush1.bf16.msra.mxu1 %v3815_v25 }
  0x5d   :  { %2922 = vmatmul.mubr.bf16.gmra.mrb[4].mxu1 %v3805_v17 }
  0x5e   :  { %2786 = vmatmul.mubr.bf16.gmra.mrb[8].mxu0 %v3808_v11  ;;  %2931 = vmatprep.mubr.bf16.mxu1 %v3806_v24 }
  0x5f   :  { %2795 = vmatprep.mubr.bf16.mxu0 %v3809_v1 }
  0x65   :  { %2932 = vmatmul.mubr.bf16.gmra.mrb[8].mxu1 %v3808_v11 }
  0x66   :  { %2796 = vmatmul.mubr.bf16.gmra.mrb[12].mxu0 %v3818_v37  ;;  %2941 = vmatprep.mubr.bf16.mxu1 %v3809_v1 }
  0x67   :  { %2838 = vmatprep.mubr.bf16.mxu0 %v3824_v38 }
  0x6d   :  { %2942 = vmatmul.mubr.bf16.gmra.mrb[12].mxu1 %v3818_v37 }
  0x6e   :  { %3400 = vmatmul.mubr.msk.bf16.vlgmr.msra.gmra.mrb[0].mxu0 %vm2720_vm1, %v3819_v39  ;;  %2984 = vmatprep.mubr.bf16.mxu1 %v3824_v38 }
  0x6f   :  { %2848 = vmatprep.mubr.bf16.mxu0 %v3824_v38 }
  0x75   :  { %3404 = vmatmul.mubr.msk.bf16.vlgmr.msra.gmra.mrb[0].mxu1 %vm2720_vm1, %v3819_v39 }
  0x76   :  { %3401 = vmatmul.mubr.msk.bf16.gmra.mrb[4].mxu0 %vm2720_vm1, %v3820_v40  ;;  %2994 = vmatprep.mubr.bf16.mxu1 %v3824_v38 }
  0x77   :  { %2858 = vmatprep.mubr.bf16.mxu0 %v3824_v38 }
  0x7d   :  { %3405 = vmatmul.mubr.msk.bf16.gmra.mrb[4].mxu1 %vm2720_vm1, %v3820_v40 }
  0x7e   :  { %3402 = vmatmul.mubr.msk.bf16.gmra.mrb[8].mxu0 %vm2720_vm1, %v3821_v41  ;;  %3004 = vmatprep.mubr.bf16.mxu1 %v3824_v38 }
  0x7f   :  { %2868 = vmatprep.mubr.bf16.mxu0 %v3824_v38 }
  0x85   :  { %3406 = vmatmul.mubr.msk.bf16.gmra.mrb[8].mxu1 %vm2720_vm1, %v3821_v41 }
  0x86   :  { %3403 = vmatmul.mubr.msk.bf16.gmra.mrb[12].mxu0 %vm2720_vm1, %v3822_v42  ;;  %3014 = vmatprep.mubr.bf16.mxu1 %v3824_v38 }
  0x8d   :  { %3407 = vmatmul.mubr.msk.bf16.gmra.mrb[12].mxu1 %vm2720_vm1, %v3822_v42 }
 0x141   :  { %v2840_v43 = vpop.f32.mrb[0].mxu0 }
 0x142   :  { %v3025_v44 = vmax.f32 %v2840_v43, 0.0  ;;  %v2842_v45 = vpop.f32.mrb[1].mxu0 }
 0x143   :  { %v3026_v46 = vmax.f32 %v2842_v45, 0.0  ;;  %v2844_v47 = vpop.f32.mrb[2].mxu0 }
 0x144   :  { %v3029_v48 = vmax.f32 %v2844_v47, 0.0  ;;  %v2846_v49 = vpop.f32.mrb[3].mxu0 }
 0x145   :  { %v3424_v50 = vpack.c.bf16 %v3026_v46, %v3025_v44  ;;  %v3030_v51 = vmax.f32 %v2846_v49, 0.0 }
 0x147   :  { %3153 = vst [vmem:[%s4474_s3] sm:$0xff] %v3424_v50  ;;  %v3426_v52 = vpack.c.bf16 %v3030_v51, %v3029_v48 }
 0x148   :  { %v2986_v58 = vpop.f32.mrb[0].mxu1 }
 0x149   :  { %3155 = vst [vmem:[%s4474_s3 + $0x10] sm:$0xff] %v3426_v52  ;;  %v2850_v53 = vpop.f32.mrb[4].mxu0  ;;  %v3027_v61 = vmax.f32 %v2986_v58, 0.0  ;;  %v2988_v62 = vpop.f32.mrb[1].mxu1 }
 0x14a   :  { %v3033_v54 = vmax.f32 %v2850_v53, 0.0  ;;  %v2852_v55 = vpop.f32.mrb[5].mxu0  ;;  %v3028_v2 = vmax.f32 %v2988_v62, 0.0  ;;  %v2990_v3 = vpop.f32.mrb[2].mxu1 }
 0x14b   :  { %v3034_v56 = vmax.f32 %v2852_v55, 0.0  ;;  %v2854_v57 = vpop.f32.mrb[6].mxu0  ;;  %v3031_v4 = vmax.f32 %v2990_v3, 0.0  ;;  %v2992_v5 = vpop.f32.mrb[3].mxu1 }
 0x14c   :  { %v3037_v59 = vmax.f32 %v2854_v57, 0.0  ;;  %v2856_v60 = vpop.f32.mrb[7].mxu0  ;;  %v3425_v7 = vpack.c.bf16 %v3028_v2, %v3027_v61  ;;  %v3032_v8 = vmax.f32 %v2992_v5, 0.0 }
 0x14d   :  { %v3428_v63 = vpack.c.bf16 %v3034_v56, %v3033_v54  ;;  %v3038_v0 = vmax.f32 %v2856_v60, 0.0 }
 0x14e   :  { %3154 = vst [vmem:[%s4474_s3 + $0x8] sm:$0xff] %v3425_v7  ;;  %v3427_v10 = vpack.c.bf16 %v3032_v8, %v3031_v4 }
 0x14f   :  { %3157 = vst [vmem:[%s4474_s3 + $0x20] sm:$0xff] %v3428_v63  ;;  %v3430_v6 = vpack.c.bf16 %v3038_v0, %v3037_v59 }
 0x150   :  { %3156 = vst [vmem:[%s4474_s3 + $0x18] sm:$0xff] %v3427_v10  ;;  %v2996_v16 = vpop.f32.mrb[4].mxu1 }
 0x151   :  { %3159 = vst [vmem:[%s4474_s3 + $0x30] sm:$0xff] %v3430_v6  ;;  %v2860_v9 = vpop.f32.mrb[8].mxu0  ;;  %v3035_v19 = vmax.f32 %v2996_v16, 0.0  ;;  %v2998_v20 = vpop.f32.mrb[5].mxu1 }
 0x152   :  { %v3041_v12 = vmax.f32 %v2860_v9, 0.0  ;;  %v2862_v13 = vpop.f32.mrb[9].mxu0  ;;  %v3036_v23 = vmax.f32 %v2998_v20, 0.0  ;;  %v3000_v24 = vpop.f32.mrb[6].mxu1 }
 0x153   :  { %v3042_v14 = vmax.f32 %v2862_v13, 0.0  ;;  %v2864_v15 = vpop.f32.mrb[10].mxu0  ;;  %v3039_v26 = vmax.f32 %v3000_v24, 0.0  ;;  %v3002_v27 = vpop.f32.mrb[7].mxu1 }
 0x154   :  { %v3045_v17 = vmax.f32 %v2864_v15, 0.0  ;;  %v2866_v18 = vpop.f32.mrb[11].mxu0  ;;  %v3429_v29 = vpack.c.bf16 %v3036_v23, %v3035_v19  ;;  %v3040_v30 = vmax.f32 %v3002_v27, 0.0 }
 0x155   :  { %v3432_v21 = vpack.c.bf16 %v3042_v14, %v3041_v12  ;;  %v3046_v22 = vmax.f32 %v2866_v18, 0.0 }
 0x156   :  { %3158 = vst [vmem:[%s4474_s3 + $0x28] sm:$0xff] %v3429_v29  ;;  %v3431_v32 = vpack.c.bf16 %v3040_v30, %v3039_v26 }
 0x157   :  { %3161 = vst [vmem:[%s4474_s3 + $0x40] sm:$0xff] %v3432_v21  ;;  %v3434_v28 = vpack.c.bf16 %v3046_v22, %v3045_v17 }
 0x158   :  { %3160 = vst [vmem:[%s4474_s3 + $0x38] sm:$0xff] %v3431_v32  ;;  %v3006_v1 = vpop.f32.mrb[8].mxu1 }
 0x159   :  { %3163 = vst [vmem:[%s4474_s3 + $0x50] sm:$0xff] %v3434_v28  ;;  %v2870_v31 = vpop.f32.mrb[12].mxu0  ;;  %v3043_v37 = vmax.f32 %v3006_v1, 0.0  ;;  %v3008_v38 = vpop.f32.mrb[9].mxu1 }
 0x15a   :  { %v3049_v33 = vmax.f32 %v2870_v31, 0.0  ;;  %v2872_v34 = vpop.f32.mrb[13].mxu0  ;;  %v3044_v41 = vmax.f32 %v3008_v38, 0.0  ;;  %v3010_v42 = vpop.f32.mrb[10].mxu1 }
 0x15b   :  { %v3050_v35 = vmax.f32 %v2872_v34, 0.0  ;;  %v2874_v11 = vpop.f32.mrb[14].mxu0  ;;  %v3047_v43 = vmax.f32 %v3010_v42, 0.0  ;;  %v3012_v44 = vpop.f32.mrb[11].mxu1 }
 0x15c   :  { %v3053_v25 = vmax.f32 %v2874_v11, 0.0  ;;  %v2876_v36 = vpop.f32.mrb[15].mxu0  ;;  %v3433_v46 = vpack.c.bf16 %v3044_v41, %v3043_v37  ;;  %v3048_v47 = vmax.f32 %v3012_v44, 0.0 }
 0x15d   :  { %v3436_v39 = vpack.c.bf16 %v3050_v35, %v3049_v33  ;;  %v3054_v40 = vmax.f32 %v2876_v36, 0.0 }
 0x15e   :  { %3162 = vst [vmem:[%s4474_s3 + $0x48] sm:$0xff] %v3433_v46  ;;  %v3435_v48 = vpack.c.bf16 %v3048_v47, %v3047_v43 }
 0x15f   :  { %3165 = vst [vmem:[%s4474_s3 + $0x60] sm:$0xff] %v3436_v39  ;;  %v3438_v45 = vpack.c.bf16 %v3054_v40, %v3053_v25 }
 0x160   :  { %3164 = vst [vmem:[%s4474_s3 + $0x58] sm:$0xff] %v3435_v48  ;;  %v3016_v49 = vpop.f32.mrb[12].mxu1 }
 0x161   :  { %3167 = vst [vmem:[%s4474_s3 + $0x70] sm:$0xff] %v3438_v45  ;;  %v3051_v50 = vmax.f32 %v3016_v49, 0.0  ;;  %v3018_v51 = vpop.f32.mrb[13].mxu1 }
 0x162   :  { %v3052_v52 = vmax.f32 %v3018_v51, 0.0  ;;  %v3020_v53 = vpop.f32.mrb[14].mxu1 }
 0x163   :  { %v3055_v54 = vmax.f32 %v3020_v53, 0.0  ;;  %v3022_v55 = vpop.f32.mrb[15].mxu1 }
 0x164   :  { %v3437_v56 = vpack.c.bf16 %v3052_v52, %v3051_v50  ;;  %v3056_v57 = vmax.f32 %v3022_v55, 0.0 }
 0x166   :  { %3166 = vst [vmem:[%s4474_s3 + $0x68] sm:$0xff] %v3437_v56  ;;  %v3439_v58 = vpack.c.bf16 %v3056_v57, %v3055_v54 }
 0x168   :  { %3168 = vst [vmem:[%s4474_s3 + $0x78] sm:$0xff] %v3439_v58 }

// kernel: netconv_forward.13
= control target key start
LH: loop header
LB: loop body
LE: loop exit
PB: predicated region body
PF: predicated region fallthrough
CT: control target
= control target key end

     0   :  { %s3655_s0 = inlined_call_operand.vmem [shape: bf16[128,576], index: 0, kind: input, shape index: {}]   ;;  %s3656_s1 = inlined_call_operand.vmem [shape: bf16[576,72], index: 1, kind: input, shape index: {}]   ;;  %s3657_s2 = inlined_call_operand.<no memory space> [shape: bf16[], index: 2, kind: input, shape index: {}]   ;;  %s3658_s3 = inlined_call_operand.vmem [shape: bf16[128,128], index: 3, kind: output, shape index: {}]  }
   0x1   :  { %v8_v0 = vstv %s3657_s2 }
   0x2   :  { %v3075_v1 = vunpack.i.l.bf16 %v8_v0 }
   0x3   :  { %v29_v2 = vlaneseq  ;;  %v2567_v3 = vld [vmem:[%s3656_s1 + $0x40] sm:$0xff]   ;;  %v2569_v11 = vld [vmem:[%s3656_s1 + $0x48] sm:$0xff]   ;;  %v3051_v29 = vmov 0.0   ;;  %v2571_v47 = vld [vmem:[%s3656_s1 + $0x50] sm:$0xff]   ;;  %vm2136_vm1 = vcmask 523264  }
   0x4   :  { %v2599_v4 = vld [vmem:[%s3656_s1 + $0xc0] sm:$0xff]   ;;  %v378_v6 = vunpack.c.l.bf16 %v2567_v3  ;;  %v400_v7 = vunpack.c.h.bf16 %v2567_v3  ;;  %v2601_v12 = vld [vmem:[%s3656_s1 + $0xc8] sm:$0xff]   ;;  %v422_v19 = vunpack.c.l.bf16 %v2569_v11  ;;  %v444_v20 = vunpack.c.h.bf16 %v2569_v11  ;;  %v2603_v52 = vld [vmem:[%s3656_s1 + $0xd0] sm:$0xff]  }
   0x5   :  { %v26_v5 = vld [vmem:[%s3656_s1] sm:$0xff]   ;;  %v1082_v8 = vunpack.c.l.bf16 %v2599_v4  ;;  %v1104_v9 = vunpack.c.h.bf16 %v2599_v4  ;;  %v3095_v13 = vand.u32 127, %v29_v2  ;;  %v2553_v17 = vld [vmem:[%s3656_s1 + $0x8] sm:$0xff]   ;;  %v1126_v21 = vunpack.c.l.bf16 %v2601_v12  ;;  %v2555_v57 = vld [vmem:[%s3656_s1 + $0x10] sm:$0xff]  }
   0x6   :  { %v2583_v10 = vld [vmem:[%s3656_s1 + $0x80] sm:$0xff]   ;;  %v27_v14 = vunpack.c.l.bf16 %v26_v5  ;;  %v48_v15 = vunpack.c.h.bf16 %v26_v5  ;;  %v1148_v22 = vunpack.c.h.bf16 %v2601_v12  ;;  %v70_v23 = vunpack.c.l.bf16 %v2553_v17  ;;  %v2585_v42 = vld [vmem:[%s3656_s1 + $0x88] sm:$0xff]   ;;  %v2587_v63 = vld [vmem:[%s3656_s1 + $0x90] sm:$0xff]  }
   0x7   :  { %v730_v16 = vunpack.c.l.bf16 %v2583_v10  ;;  %v752_v18 = vunpack.c.h.bf16 %v2583_v10  ;;  %vm32_vm0 = vcmp.lt.s32.totalorder %v3095_v13, 72  ;;  %v92_v24 = vunpack.c.h.bf16 %v2553_v17  ;;  %v2993_v58 = vld [vmem:[%s3655_s0 + $0x4] ss:$20 sps:$4 sm:$0xff]  }
   0x8   :  { %v384_v25 = vsel %vm32_vm0, %v378_v6, %v3075_v1  ;;  %v406_v26 = vsel %vm32_vm0, %v400_v7, %v3075_v1  ;;  %v1088_v27 = vsel %vm32_vm0, %v1082_v8, %v3075_v1  ;;  %v1110_v28 = vsel %vm32_vm0, %v1104_v9, %v3075_v1  ;;  %v2573_v5 = vld [vmem:[%s3656_s1 + $0x58] sm:$0xff]   ;;  %2193 = vmatprep.mubr.bf16.mxu0 %v2993_v58  ;;  %v2996_v6 = vld [vmem:[%s3655_s0 + $0xc] ss:$20 sps:$4 sm:$0xff]  }
   0x9   :  { %v386_v30 = vpack.c.bf16 %v3051_v29, %v384_v25  ;;  %v408_v31 = vpack.c.bf16 %v3051_v29, %v406_v26  ;;  %v1090_v32 = vpack.c.bf16 %v3051_v29, %v1088_v27  ;;  %v1112_v33 = vpack.c.bf16 %v3051_v29, %v1110_v28  ;;  %v2605_v11 = vld [vmem:[%s3656_s1 + $0xd8] sm:$0xff]   ;;  %2290 = vmatprep.mubr.bf16.mxu1 %v2996_v6 }
   0xa   :  { %v33_v34 = vsel %vm32_vm0, %v27_v14, %v3075_v1  ;;  %v54_v35 = vsel %vm32_vm0, %v48_v15, %v3075_v1  ;;  %v736_v36 = vsel %vm32_vm0, %v730_v16, %v3075_v1  ;;  %v758_v37 = vsel %vm32_vm0, %v752_v18, %v3075_v1  ;;  %v2557_v28 = vld [vmem:[%s3656_s1 + $0x18] sm:$0xff]  }
   0xb   :  { %388 = vst [vmem:[#allocation7 + $0x40] sm:$0xf] %v386_v30  ;;  %410 = vst [vmem:[#allocation7 + $0x44] sm:$0xf] %v408_v31  ;;  %v34_v38 = vpack.c.bf16 %v3051_v29, %v33_v34  ;;  %v56_v39 = vpack.c.bf16 %v3051_v29, %v54_v35  ;;  %v738_v40 = vpack.c.bf16 %v3051_v29, %v736_v36  ;;  %v774_v55 = vunpack.c.l.bf16 %v2585_v42  ;;  %v2589_v35 = vld [vmem:[%s3656_s1 + $0x98] sm:$0xff]   ;;  %v2575_v36 = vld [vmem:[%s3656_s1 + $0x60] sm:$0xff]  }
   0xc   :  { %1092 = vst [vmem:[#allocation7 + $0xc0] sm:$0xf] %v1090_v32  ;;  %1114 = vst [vmem:[#allocation7 + $0xc4] sm:$0xf] %v1112_v33  ;;  %v760_v41 = vpack.c.bf16 %v3051_v29, %v758_v37  ;;  %v428_v43 = vsel %vm32_vm0, %v422_v19, %v3075_v1  ;;  %v450_v44 = vsel %vm32_vm0, %v444_v20, %v3075_v1  ;;  %v796_v56 = vunpack.c.h.bf16 %v2585_v42  ;;  %v2607_v42 = vld [vmem:[%s3656_s1 + $0xe0] sm:$0xff]  }
   0xd   :  { %v1132_v45 = vsel %vm32_vm0, %v1126_v21, %v3075_v1  ;;  %v1154_v46 = vsel %vm32_vm0, %v1148_v22, %v3075_v1  ;;  %36 = vst [vmem:[#allocation7] sm:$0xf] %v34_v38  ;;  %58 = vst [vmem:[#allocation7 + $0x4] sm:$0xf] %v56_v39  ;;  %v430_v48 = vpack.c.bf16 %v3051_v29, %v428_v43  ;;  %v466_v61 = vunpack.c.l.bf16 %v2571_v47  ;;  %v3009_v13 = vld [vmem:[%s3655_s0 + $0x58] ss:$20 sps:$4 sm:$0xff]  }
   0xe   :  { %740 = vst [vmem:[#allocation7 + $0x80] sm:$0xf] %v738_v40  ;;  %762 = vst [vmem:[#allocation7 + $0x84] sm:$0xf] %v760_v41  ;;  %v452_v49 = vpack.c.bf16 %v3051_v29, %v450_v44  ;;  %v1134_v50 = vpack.c.bf16 %v3051_v29, %v1132_v45  ;;  %v1156_v51 = vpack.c.bf16 %v3051_v29, %v1154_v46  ;;  %v488_v62 = vunpack.c.h.bf16 %v2571_v47 }
   0xf   :  { %v76_v53 = vsel %vm32_vm0, %v70_v23, %v3075_v1  ;;  %v98_v54 = vsel %vm32_vm0, %v92_v24, %v3075_v1  ;;  %432 = vst [vmem:[#allocation7 + $0x48] sm:$0xf] %v430_v48  ;;  %v780_v0 = vsel %vm32_vm0, %v774_v55, %v3075_v1  ;;  %v802_v2 = vsel %vm32_vm0, %v796_v56, %v3075_v1 }
  0x10   :  { %454 = vst [vmem:[#allocation7 + $0x4c] sm:$0xf] %v452_v49  ;;  %1136 = vst [vmem:[#allocation7 + $0xc8] sm:$0xf] %v1134_v50  ;;  %v78_v59 = vpack.c.bf16 %v3051_v29, %v76_v53  ;;  %v100_v60 = vpack.c.bf16 %v3051_v29, %v98_v54  ;;  %v1170_v3 = vunpack.c.l.bf16 %v2603_v52  ;;  %v1192_v4 = vunpack.c.h.bf16 %v2603_v52 }
  0x11   :  { %1158 = vst [vmem:[#allocation7 + $0xcc] sm:$0xf] %v1156_v51  ;;  %v782_v7 = vpack.c.bf16 %v3051_v29, %v780_v0  ;;  %v804_v8 = vpack.c.bf16 %v3051_v29, %v802_v2  ;;  %v472_v9 = vsel %vm32_vm0, %v466_v61, %v3075_v1  ;;  %v494_v10 = vsel %vm32_vm0, %v488_v62, %v3075_v1  ;;  %v2559_v62 = vld [vmem:[%s3656_s1 + $0x20] sm:$0xff]  }
  0x12   :  { %80 = vst [vmem:[#allocation7 + $0x8] sm:$0xf] %v78_v59  ;;  %102 = vst [vmem:[#allocation7 + $0xc] sm:$0xf] %v100_v60  ;;  %v2959_v12 = vld [vmem:[#allocation7 + $0x40] sm:$0xff]   ;;  %v474_v14 = vpack.c.bf16 %v3051_v29, %v472_v9  ;;  %v496_v15 = vpack.c.bf16 %v3051_v29, %v494_v10  ;;  %v1176_v16 = vsel %vm32_vm0, %v1170_v3, %v3075_v1  ;;  %v114_v21 = vunpack.c.l.bf16 %v2555_v57 }
  0x13   :  { %v1198_v17 = vsel %vm32_vm0, %v1192_v4, %v3075_v1  ;;  %v2960_v18 = vld [vmem:[#allocation7 + $0xc0] sm:$0xff]   ;;  %784 = vst [vmem:[#allocation7 + $0x88] sm:$0xf] %v782_v7  ;;  %806 = vst [vmem:[#allocation7 + $0x8c] sm:$0xf] %v804_v8  ;;  %v1178_v19 = vpack.c.bf16 %v3051_v29, %v1176_v16  ;;  %v136_v22 = vunpack.c.h.bf16 %v2555_v57  ;;  %2786 = vmatprep.subr.bf16.mxu0 %v2959_v12  ;;  %v818_v24 = vunpack.c.l.bf16 %v2587_v63  ;;  %v2577_v16 = vld [vmem:[%s3656_s1 + $0x68] sm:$0xff]  }
  0x14   :  { %v1200_v20 = vpack.c.bf16 %v3051_v29, %v1198_v17  ;;  %v2961_v23 = vld [vmem:[#allocation7] sm:$0xff]   ;;  %476 = vst [vmem:[#allocation7 + $0x50] sm:$0xf] %v474_v14  ;;  %498 = vst [vmem:[#allocation7 + $0x54] sm:$0xf] %v496_v15  ;;  %v840_v25 = vunpack.c.h.bf16 %v2587_v63  ;;  %v510_v26 = vunpack.c.l.bf16 %v2573_v5  ;;  %v532_v27 = vunpack.c.h.bf16 %v2573_v5  ;;  %2850 = vmatprep.subr.bf16.mxu1 %v2960_v18 }
  0x15   :  { %v2962_v30 = vld [vmem:[#allocation7 + $0x80] sm:$0xff]   ;;  %1180 = vst [vmem:[#allocation7 + $0xd0] sm:$0xf] %v1178_v19  ;;  %v120_v31 = vsel %vm32_vm0, %v114_v21, %v3075_v1  ;;  %v142_v32 = vsel %vm32_vm0, %v136_v22, %v3075_v1  ;;  %v1214_v33 = vunpack.c.l.bf16 %v2605_v11  ;;  %v1236_v34 = vunpack.c.h.bf16 %v2605_v11  ;;  %2787 = vmatpush3.bf16.msra.mxu0 %v2961_v23  ;;  %v2609_v21 = vld [vmem:[%s3656_s1 + $0xe8] sm:$0xff]  }
  0x16   :  { %1202 = vst [vmem:[#allocation7 + $0xd4] sm:$0xf] %v1200_v20  ;;  %v122_v38 = vpack.c.bf16 %v3051_v29, %v120_v31  ;;  %v144_v39 = vpack.c.bf16 %v3051_v29, %v142_v32  ;;  %v824_v40 = vsel %vm32_vm0, %v818_v24, %v3075_v1  ;;  %v846_v41 = vsel %vm32_vm0, %v840_v25, %v3075_v1  ;;  %v2591_v5 = vld [vmem:[%s3656_s1 + $0xa0] sm:$0xff]  }
  0x17   :  { %v2963_v37 = vld [vmem:[#allocation7 + $0x48] sm:$0xff]   ;;  %2851 = vmatpush3.bf16.msra.mxu1 %v2962_v30  ;;  %v826_v44 = vpack.c.bf16 %v3051_v29, %v824_v40  ;;  %v848_v45 = vpack.c.bf16 %v3051_v29, %v846_v41  ;;  %v516_v46 = vsel %vm32_vm0, %v510_v26, %v3075_v1  ;;  %v538_v47 = vsel %vm32_vm0, %v532_v27, %v3075_v1 }
  0x18   :  { %v2964_v43 = vld [vmem:[#allocation7 + $0xc8] sm:$0xff]   ;;  %2788 = vmatprep.subr.bf16.mxu0 %v2963_v37  ;;  %124 = vst [vmem:[#allocation7 + $0x10] sm:$0xf] %v122_v38  ;;  %146 = vst [vmem:[#allocation7 + $0x14] sm:$0xf] %v144_v39  ;;  %v518_v49 = vpack.c.bf16 %v3051_v29, %v516_v46  ;;  %v540_v50 = vpack.c.bf16 %v3051_v29, %v538_v47  ;;  %v1220_v51 = vsel %vm32_vm0, %v1214_v33, %v3075_v1 }
  0x19   :  { %v2965_v48 = vld [vmem:[#allocation7 + $0x8] sm:$0xff]   ;;  %v1242_v52 = vsel %vm32_vm0, %v1236_v34, %v3075_v1  ;;  %2852 = vmatprep.subr.bf16.mxu1 %v2964_v43  ;;  %828 = vst [vmem:[#allocation7 + $0x90] sm:$0xf] %v826_v44  ;;  %850 = vst [vmem:[#allocation7 + $0x94] sm:$0xf] %v848_v45  ;;  %v1222_v53 = vpack.c.bf16 %v3051_v29, %v1220_v51  ;;  %v158_v55 = vunpack.c.l.bf16 %v2557_v28  ;;  %v180_v56 = vunpack.c.h.bf16 %v2557_v28 }
  0x1a   :  { %v1244_v54 = vpack.c.bf16 %v3051_v29, %v1242_v52  ;;  %2789 = vmatpush3.bf16.msra.mxu0 %v2965_v48  ;;  %v2966_v57 = vld [vmem:[#allocation7 + $0x88] sm:$0xff]   ;;  %520 = vst [vmem:[#allocation7 + $0x58] sm:$0xf] %v518_v49  ;;  %542 = vst [vmem:[#allocation7 + $0x5c] sm:$0xf] %v540_v50  ;;  %v862_v58 = vunpack.c.l.bf16 %v2589_v35  ;;  %v884_v59 = vunpack.c.h.bf16 %v2589_v35  ;;  %v554_v60 = vunpack.c.l.bf16 %v2575_v36  ;;  %v2579_v49 = vld [vmem:[%s3656_s1 + $0x70] sm:$0xff]  }
  0x1b   :  { %v576_v61 = vunpack.c.h.bf16 %v2575_v36  ;;  %v2967_v63 = vld [vmem:[#allocation7 + $0x50] sm:$0xff]   ;;  %1224 = vst [vmem:[#allocation7 + $0xd8] sm:$0xf] %v1222_v53  ;;  %v164_v0 = vsel %vm32_vm0, %v158_v55, %v3075_v1  ;;  %v186_v2 = vsel %vm32_vm0, %v180_v56, %v3075_v1  ;;  %v1258_v3 = vunpack.c.l.bf16 %v2607_v42  ;;  %2853 = vmatpush3.bf16.msra.mxu1 %v2966_v57  ;;  %v2561_v33 = vld [vmem:[%s3656_s1 + $0x28] sm:$0xff]  }
  0x1c   :  { %1246 = vst [vmem:[#allocation7 + $0xdc] sm:$0xf] %v1244_v54  ;;  %v1280_v4 = vunpack.c.h.bf16 %v2607_v42  ;;  %v166_v7 = vpack.c.bf16 %v3051_v29, %v164_v0  ;;  %v188_v8 = vpack.c.bf16 %v3051_v29, %v186_v2  ;;  %v868_v9 = vsel %vm32_vm0, %v862_v58, %v3075_v1  ;;  %2790 = vmatprep.subr.bf16.mxu0 %v2967_v63  ;;  %v2593_v48 = vld [vmem:[%s3656_s1 + $0xa8] sm:$0xff]   ;;  %v2611_v54 = vld [vmem:[%s3656_s1 + $0xf0] sm:$0xff]  }
  0x1d   :  { %v2968_v6 = vld [vmem:[#allocation7 + $0xd0] sm:$0xff]   ;;  %v890_v10 = vsel %vm32_vm0, %v884_v59, %v3075_v1  ;;  %v870_v11 = vpack.c.bf16 %v3051_v29, %v868_v9  ;;  %v560_v14 = vsel %vm32_vm0, %v554_v60, %v3075_v1  ;;  %v582_v15 = vsel %vm32_vm0, %v576_v61, %v3075_v1 }
  0x1e   :  { %v892_v12 = vpack.c.bf16 %v3051_v29, %v890_v10  ;;  %2854 = vmatprep.subr.bf16.mxu1 %v2968_v6  ;;  %168 = vst [vmem:[#allocation7 + $0x18] sm:$0xf] %v166_v7  ;;  %190 = vst [vmem:[#allocation7 + $0x1c] sm:$0xf] %v188_v8  ;;  %v562_v17 = vpack.c.bf16 %v3051_v29, %v560_v14  ;;  %v584_v18 = vpack.c.bf16 %v3051_v29, %v582_v15  ;;  %v2563_v2 = vld [vmem:[%s3656_s1 + $0x30] sm:$0xff]  }
  0x1f   :  { %v1264_v19 = vsel %vm32_vm0, %v1258_v3, %v3075_v1  ;;  %v1286_v20 = vsel %vm32_vm0, %v1280_v4, %v3075_v1  ;;  %v2969_v22 = vld [vmem:[#allocation7 + $0x10] sm:$0xff]   ;;  %872 = vst [vmem:[#allocation7 + $0x98] sm:$0xf] %v870_v11  ;;  %v202_v25 = vunpack.c.l.bf16 %v2559_v62  ;;  %v224_v26 = vunpack.c.h.bf16 %v2559_v62 }
  0x20   :  { %894 = vst [vmem:[#allocation7 + $0x9c] sm:$0xf] %v892_v12  ;;  %v1266_v23 = vpack.c.bf16 %v3051_v29, %v1264_v19  ;;  %v1288_v24 = vpack.c.bf16 %v3051_v29, %v1286_v20  ;;  %v2970_v27 = vld [vmem:[#allocation7 + $0x90] sm:$0xff]   ;;  %564 = vst [vmem:[#allocation7 + $0x60] sm:$0xf] %v562_v17  ;;  %v906_v28 = vunpack.c.l.bf16 %v2591_v5  ;;  %v928_v30 = vunpack.c.h.bf16 %v2591_v5  ;;  %2791 = vmatpush3.bf16.msra.mxu0 %v2969_v22  ;;  %v2581_v19 = vld [vmem:[%s3656_s1 + $0x78] sm:$0xff]  }
  0x21   :  { %586 = vst [vmem:[#allocation7 + $0x64] sm:$0xf] %v584_v18  ;;  %v598_v31 = vunpack.c.l.bf16 %v2577_v16  ;;  %v620_v32 = vunpack.c.h.bf16 %v2577_v16  ;;  %v2971_v34 = vld [vmem:[#allocation7 + $0x58] sm:$0xff]   ;;  %v208_v35 = vsel %vm32_vm0, %v202_v25, %v3075_v1  ;;  %v230_v36 = vsel %vm32_vm0, %v224_v26, %v3075_v1  ;;  %2855 = vmatpush3.bf16.msra.mxu1 %v2970_v27  ;;  %v2595_v8 = vld [vmem:[%s3656_s1 + $0xb0] sm:$0xff]  }
  0x22   :  { %1268 = vst [vmem:[#allocation7 + $0xe0] sm:$0xf] %v1266_v23  ;;  %1290 = vst [vmem:[#allocation7 + $0xe4] sm:$0xf] %v1288_v24  ;;  %v1302_v37 = vunpack.c.l.bf16 %v2609_v21  ;;  %v1324_v38 = vunpack.c.h.bf16 %v2609_v21  ;;  %v210_v40 = vpack.c.bf16 %v3051_v29, %v208_v35  ;;  %v232_v41 = vpack.c.bf16 %v3051_v29, %v230_v36  ;;  %2792 = vmatprep.subr.bf16.mxu0 %v2971_v34  ;;  %v2613_v24 = vld [vmem:[%s3656_s1 + $0xf8] sm:$0xff]  }
  0x23   :  { %v2972_v39 = vld [vmem:[#allocation7 + $0xd8] sm:$0xff]   ;;  %v912_v42 = vsel %vm32_vm0, %v906_v28, %v3075_v1  ;;  %v934_v43 = vsel %vm32_vm0, %v928_v30, %v3075_v1  ;;  %v604_v46 = vsel %vm32_vm0, %v598_v31, %v3075_v1  ;;  %v626_v47 = vsel %vm32_vm0, %v620_v32, %v3075_v1 }
  0x24   :  { %v914_v44 = vpack.c.bf16 %v3051_v29, %v912_v42  ;;  %v936_v45 = vpack.c.bf16 %v3051_v29, %v934_v43  ;;  %2856 = vmatprep.subr.bf16.mxu1 %v2972_v39  ;;  %212 = vst [vmem:[#allocation7 + $0x20] sm:$0xf] %v210_v40  ;;  %234 = vst [vmem:[#allocation7 + $0x24] sm:$0xf] %v232_v41  ;;  %v606_v50 = vpack.c.bf16 %v3051_v29, %v604_v46  ;;  %v2565_v36 = vld [vmem:[%s3656_s1 + $0x38] sm:$0xff]  }
  0x25   :  { %v628_v51 = vpack.c.bf16 %v3051_v29, %v626_v47  ;;  %v1308_v52 = vsel %vm32_vm0, %v1302_v37, %v3075_v1  ;;  %v1330_v53 = vsel %vm32_vm0, %v1324_v38, %v3075_v1  ;;  %v2973_v55 = vld [vmem:[#allocation7 + $0x18] sm:$0xff]   ;;  %v246_v58 = vunpack.c.l.bf16 %v2561_v33 }
  0x26   :  { %916 = vst [vmem:[#allocation7 + $0xa0] sm:$0xf] %v914_v44  ;;  %938 = vst [vmem:[#allocation7 + $0xa4] sm:$0xf] %v936_v45  ;;  %v1310_v56 = vpack.c.bf16 %v3051_v29, %v1308_v52  ;;  %v1332_v57 = vpack.c.bf16 %v3051_v29, %v1330_v53  ;;  %v268_v59 = vunpack.c.h.bf16 %v2561_v33  ;;  %v950_v61 = vunpack.c.l.bf16 %v2593_v48  ;;  %2793 = vmatpush3.bf16.msra.mxu0 %v2973_v55  ;;  %v2597_v42 = vld [vmem:[%s3656_s1 + $0xb8] sm:$0xff]   ;;  %v2615_v52 = vld [vmem:[%s3656_s1 + $0x100] sm:$0xff]  }
  0x27   :  { %v2974_v60 = vld [vmem:[#allocation7 + $0x98] sm:$0xff]   ;;  %608 = vst [vmem:[#allocation7 + $0x68] sm:$0xf] %v606_v50  ;;  %630 = vst [vmem:[#allocation7 + $0x6c] sm:$0xf] %v628_v51  ;;  %v972_v62 = vunpack.c.h.bf16 %v2593_v48  ;;  %v642_v63 = vunpack.c.l.bf16 %v2579_v49  ;;  %v664_v0 = vunpack.c.h.bf16 %v2579_v49  ;;  %v252_v4 = vsel %vm32_vm0, %v246_v58, %v3075_v1 }
  0x28   :  { %v2975_v3 = vld [vmem:[#allocation7 + $0x60] sm:$0xff]   ;;  %1312 = vst [vmem:[#allocation7 + $0xe8] sm:$0xf] %v1310_v56  ;;  %1334 = vst [vmem:[#allocation7 + $0xec] sm:$0xf] %v1332_v57  ;;  %v274_v5 = vsel %vm32_vm0, %v268_v59, %v3075_v1  ;;  %v1346_v6 = vunpack.c.l.bf16 %v2611_v54  ;;  %v1368_v7 = vunpack.c.h.bf16 %v2611_v54  ;;  %2857 = vmatpush3.bf16.msra.mxu1 %v2974_v60  ;;  %v254_v10 = vpack.c.bf16 %v3051_v29, %v252_v4  ;;  %v2617_v57 = vld [vmem:[%s3656_s1 + $0x108] sm:$0xff]  }
  0x29   :  { %v2976_v9 = vld [vmem:[#allocation7 + $0xe0] sm:$0xff]   ;;  %v276_v11 = vpack.c.bf16 %v3051_v29, %v274_v5  ;;  %v956_v12 = vsel %vm32_vm0, %v950_v61, %v3075_v1  ;;  %v978_v14 = vsel %vm32_vm0, %v972_v62, %v3075_v1  ;;  %2794 = vmatprep.subr.bf16.mxu0 %v2975_v3  ;;  %v648_v17 = vsel %vm32_vm0, %v642_v63, %v3075_v1 }
  0x2a   :  { %v958_v15 = vpack.c.bf16 %v3051_v29, %v956_v12  ;;  %v980_v16 = vpack.c.bf16 %v3051_v29, %v978_v14  ;;  %v670_v18 = vsel %vm32_vm0, %v664_v0, %v3075_v1  ;;  %2858 = vmatprep.subr.bf16.mxu1 %v2976_v9  ;;  %256 = vst [vmem:[#allocation7 + $0x28] sm:$0xf] %v254_v10  ;;  %v290_v28 = vunpack.c.l.bf16 %v2563_v2 }
  0x2b   :  { %278 = vst [vmem:[#allocation7 + $0x2c] sm:$0xf] %v276_v11  ;;  %v650_v20 = vpack.c.bf16 %v3051_v29, %v648_v17  ;;  %v672_v21 = vpack.c.bf16 %v3051_v29, %v670_v18  ;;  %v1352_v22 = vsel %vm32_vm0, %v1346_v6, %v3075_v1  ;;  %v1374_v23 = vsel %vm32_vm0, %v1368_v7, %v3075_v1  ;;  %v2977_v25 = vld [vmem:[#allocation7 + $0x20] sm:$0xff]  }
  0x2c   :  { %960 = vst [vmem:[#allocation7 + $0xa8] sm:$0xf] %v958_v15  ;;  %982 = vst [vmem:[#allocation7 + $0xac] sm:$0xf] %v980_v16  ;;  %v1354_v26 = vpack.c.bf16 %v3051_v29, %v1352_v22  ;;  %v1376_v27 = vpack.c.bf16 %v3051_v29, %v1374_v23  ;;  %v312_v30 = vunpack.c.h.bf16 %v2563_v2  ;;  %v994_v32 = vunpack.c.l.bf16 %v2595_v8  ;;  %2795 = vmatpush3.bf16.msra.mxu0 %v2977_v25 }
  0x2d   :  { %v2978_v31 = vld [vmem:[#allocation7 + $0xa0] sm:$0xff]   ;;  %652 = vst [vmem:[#allocation7 + $0x70] sm:$0xf] %v650_v20  ;;  %674 = vst [vmem:[#allocation7 + $0x74] sm:$0xf] %v672_v21  ;;  %v1016_v33 = vunpack.c.h.bf16 %v2595_v8  ;;  %v686_v34 = vunpack.c.l.bf16 %v2581_v19  ;;  %v708_v35 = vunpack.c.h.bf16 %v2581_v19  ;;  %v296_v38 = vsel %vm32_vm0, %v290_v28, %v3075_v1  ;;  %v2619_v20 = vld [vmem:[%s3656_s1 + $0x110] sm:$0xff]  }
  0x2e   :  { %v2979_v37 = vld [vmem:[#allocation7 + $0x68] sm:$0xff]   ;;  %1356 = vst [vmem:[#allocation7 + $0xf0] sm:$0xf] %v1354_v26  ;;  %1378 = vst [vmem:[#allocation7 + $0xf4] sm:$0xf] %v1376_v27  ;;  %v318_v39 = vsel %vm32_vm0, %v312_v30, %v3075_v1  ;;  %v1390_v40 = vunpack.c.l.bf16 %v2613_v24  ;;  %v1412_v41 = vunpack.c.h.bf16 %v2613_v24  ;;  %2859 = vmatpush3.bf16.msra.mxu1 %v2978_v31  ;;  %v298_v44 = vpack.c.bf16 %v3051_v29, %v296_v38 }
  0x2f   :  { %v2980_v43 = vld [vmem:[#allocation7 + $0xe8] sm:$0xff]   ;;  %v320_v45 = vpack.c.bf16 %v3051_v29, %v318_v39  ;;  %v1000_v46 = vsel %vm32_vm0, %v994_v32, %v3075_v1  ;;  %v1022_v47 = vsel %vm32_vm0, %v1016_v33, %v3075_v1  ;;  %2796 = vmatprep.subr.bf16.mxu0 %v2979_v37  ;;  %v692_v50 = vsel %vm32_vm0, %v686_v34, %v3075_v1  ;;  %v2991_v38 = vld [vmem:[%s3655_s0] ss:$20 sps:$4 sm:$0xff]  }
  0x30   :  { %v1002_v48 = vpack.c.bf16 %v3051_v29, %v1000_v46  ;;  %v1024_v49 = vpack.c.bf16 %v3051_v29, %v1022_v47  ;;  %v714_v51 = vsel %vm32_vm0, %v708_v35, %v3075_v1  ;;  %2860 = vmatprep.subr.bf16.mxu1 %v2980_v43  ;;  %300 = vst [vmem:[#allocation7 + $0x30] sm:$0xf] %v298_v44  ;;  %v334_v61 = vunpack.c.l.bf16 %v2565_v36  ;;  %v3000_v44 = vld [vmem:[%s3655_s0 + $0x34] ss:$20 sps:$4 sm:$0xff]   ;;  %v2621_v47 = vld [vmem:[%s3656_s1 + $0x118] sm:$0xff]  }
  0x31   :  { %322 = vst [vmem:[#allocation7 + $0x34] sm:$0xf] %v320_v45  ;;  %v694_v53 = vpack.c.bf16 %v3051_v29, %v692_v50  ;;  %v716_v54 = vpack.c.bf16 %v3051_v29, %v714_v51  ;;  %v1396_v55 = vsel %vm32_vm0, %v1390_v40, %v3075_v1  ;;  %v1418_v56 = vsel %vm32_vm0, %v1412_v41, %v3075_v1  ;;  %v2994_v40 = vld [vmem:[%s3655_s0 + $0x8] ss:$20 sps:$4 sm:$0xff]   ;;  %v3003_v51 = vld [vmem:[%s3655_s0 + $0x30] ss:$20 sps:$4 sm:$0xff]  }
  0x32   :  { %v2981_v58 = vld [vmem:[#allocation7 + $0x28] sm:$0xff]   ;;  %1004 = vst [vmem:[#allocation7 + $0xb0] sm:$0xf] %v1002_v48  ;;  %1026 = vst [vmem:[#allocation7 + $0xb4] sm:$0xf] %v1024_v49  ;;  %v1398_v59 = vpack.c.bf16 %v3051_v29, %v1396_v55  ;;  %v1420_v60 = vpack.c.bf16 %v3051_v29, %v1418_v56  ;;  %v356_v62 = vunpack.c.h.bf16 %v2565_v36  ;;  %v1038_v0 = vunpack.c.l.bf16 %v2597_v42 }
  0x33   :  { %v2982_v63 = vld [vmem:[#allocation7 + $0xa8] sm:$0xff]   ;;  %696 = vst [vmem:[#allocation7 + $0x78] sm:$0xf] %v694_v53  ;;  %718 = vst [vmem:[#allocation7 + $0x7c] sm:$0xf] %v716_v54  ;;  %v1060_v2 = vunpack.c.h.bf16 %v2597_v42  ;;  %v1434_v3 = vunpack.c.l.bf16 %v2615_v52  ;;  %v1456_v4 = vunpack.c.h.bf16 %v2615_v52  ;;  %2797 = vmatpush3.bf16.msra.mxu0 %v2981_v58  ;;  %v340_v6 = vsel %vm32_vm0, %v334_v61, %v3075_v1 }
  0x34   :  { %v2983_v5 = vld [vmem:[#allocation7 + $0x70] sm:$0xff]   ;;  %1400 = vst [vmem:[#allocation7 + $0xf8] sm:$0xf] %v1398_v59  ;;  %1422 = vst [vmem:[#allocation7 + $0xfc] sm:$0xf] %v1420_v60  ;;  %v362_v7 = vsel %vm32_vm0, %v356_v62, %v3075_v1  ;;  %v1478_v8 = vunpack.c.l.bf16 %v2617_v57  ;;  %v1500_v9 = vunpack.c.h.bf16 %v2617_v57  ;;  %2861 = vmatpush3.bf16.msra.mxu1 %v2982_v63  ;;  %v342_v11 = vpack.c.bf16 %v3051_v29, %v340_v6 }
  0x35   :  { %v2984_v10 = vld [vmem:[#allocation7 + $0xf0] sm:$0xff]   ;;  %v364_v12 = vpack.c.bf16 %v3051_v29, %v362_v7  ;;  %v1044_v14 = vsel %vm32_vm0, %v1038_v0, %v3075_v1  ;;  %v1066_v15 = vsel %vm32_vm0, %v1060_v2, %v3075_v1  ;;  %2798 = vmatprep.subr.bf16.mxu0 %v2983_v5  ;;  %v1440_v18 = vsel %vm32_vm0, %v1434_v3, %v3075_v1  ;;  %v2998_v42 = vld [vmem:[%s3655_s0 + $0x2c] ss:$20 sps:$4 sm:$0xff]   ;;  %v3002_v50 = vld [vmem:[%s3655_s0 + $0x28] ss:$20 sps:$4 sm:$0xff]  }
  0x36   :  { %v1046_v16 = vpack.c.bf16 %v3051_v29, %v1044_v14  ;;  %v1068_v17 = vpack.c.bf16 %v3051_v29, %v1066_v15  ;;  %v1462_v19 = vsel %vm32_vm0, %v1456_v4, %v3075_v1  ;;  %2862 = vmatprep.subr.bf16.mxu1 %v2984_v10  ;;  %344 = vst [vmem:[#allocation7 + $0x38] sm:$0xf] %v342_v11  ;;  %v1522_v28 = vunpack.c.l.bf16 %v2619_v20  ;;  %v3004_v52 = vld [vmem:[%s3655_s0 + $0x54] ss:$20 sps:$4 sm:$0xff]   ;;  %v3006_v55 = vld [vmem:[%s3655_s0 + $0x5c] ss:$20 sps:$4 sm:$0xff]  }
  0x37   :  { %366 = vst [vmem:[#allocation7 + $0x3c] sm:$0xf] %v364_v12  ;;  %v1442_v21 = vpack.c.bf16 %v3051_v29, %v1440_v18  ;;  %v1464_v22 = vpack.c.bf16 %v3051_v29, %v1462_v19  ;;  %v1484_v23 = vsel %vm32_vm0, %v1478_v8, %v3075_v1  ;;  %v1506_v24 = vsel %vm32_vm0, %v1500_v9, %v3075_v1  ;;  %v3013_v58 = vld [vmem:[%s3655_s0 + $0x84] ss:$20 sps:$4 sm:$0xff]   ;;  %v3016_v61 = vld [vmem:[%s3655_s0 + $0x80] ss:$20 sps:$4 sm:$0xff]  }
  0x38   :  { %v2985_v25 = vld [vmem:[#allocation7 + $0x30] sm:$0xff]   ;;  %1048 = vst [vmem:[#allocation7 + $0xb8] sm:$0xf] %v1046_v16  ;;  %1070 = vst [vmem:[#allocation7 + $0xbc] sm:$0xf] %v1068_v17  ;;  %v1486_v26 = vpack.c.bf16 %v3051_v29, %v1484_v23  ;;  %v1508_v27 = vpack.c.bf16 %v3051_v29, %v1506_v24  ;;  %v1544_v30 = vunpack.c.h.bf16 %v2619_v20  ;;  %v1528_v33 = vsel %vm32_vm0, %v1522_v28, %v3075_v1 }
  0x39   :  { %v2986_v31 = vld [vmem:[#allocation7 + $0xb0] sm:$0xff]   ;;  %1444 = vst [vmem:[#allocation7 + $0x100] sm:$0xf] %v1442_v21  ;;  %1466 = vst [vmem:[#allocation7 + $0x104] sm:$0xf] %v1464_v22  ;;  %2799 = vmatpush3.bf16.msra.mxu0 %v2985_v25  ;;  %v1530_v36 = vpack.c.bf16 %v3051_v29, %v1528_v33  ;;  %v1566_v48 = vunpack.c.l.bf16 %v2621_v47  ;;  %v1588_v49 = vunpack.c.h.bf16 %v2621_v47 }
  0x3a   :  { %v2987_v32 = vld [vmem:[#allocation7 + $0x78] sm:$0xff]   ;;  %1488 = vst [vmem:[#allocation7 + $0x108] sm:$0xf] %v1486_v26  ;;  %1510 = vst [vmem:[#allocation7 + $0x10c] sm:$0xf] %v1508_v27  ;;  %v1550_v34 = vsel %vm32_vm0, %v1544_v30, %v3075_v1  ;;  %2863 = vmatpush3.bf16.msra.mxu1 %v2986_v31 }
  0x3b   :  { %v2988_v35 = vld [vmem:[#allocation7 + $0xf8] sm:$0xff]   ;;  %v1552_v37 = vpack.c.bf16 %v3051_v29, %v1550_v34  ;;  %2800 = vmatprep.subr.bf16.mxu0 %v2987_v32  ;;  %1532 = vst [vmem:[#allocation7 + $0x110] sm:$0xf] %v1530_v36  ;;  %v1572_v53 = vsel %vm32_vm0, %v1566_v48, %v3075_v1  ;;  %v1594_v54 = vsel %vm32_vm0, %v1588_v49, %v3075_v1  ;;  %v3008_v1 = vld [vmem:[%s3655_s0 + $0x50] ss:$20 sps:$4 sm:$0xff]  }
  0x3c   :  { %2864 = vmatprep.subr.bf16.mxu1 %v2988_v35  ;;  %v1574_v56 = vpack.c.bf16 %v3051_v29, %v1572_v53  ;;  %v1596_v57 = vpack.c.bf16 %v3051_v29, %v1594_v54  ;;  %v3011_v29 = vld [vmem:[%s3655_s0 + $0x7c] ss:$20 sps:$4 sm:$0xff]   ;;  %v3015_v60 = vld [vmem:[%s3655_s0 + $0x78] ss:$20 sps:$4 sm:$0xff]   ;;  %v3021_v0 = vld [vmem:[%s3655_s0 + $0xa0] ss:$20 sps:$4 sm:$0xff]  }
  0x3d   :  { %1554 = vst [vmem:[#allocation7 + $0x114] sm:$0xf] %v1552_v37  ;;  %v3017_v62 = vld [vmem:[%s3655_s0 + $0xa4] ss:$20 sps:$4 sm:$0xff]   ;;  %v3019_v63 = vld [vmem:[%s3655_s0 + $0xac] ss:$20 sps:$4 sm:$0xff]  }
  0x3e   :  { %v2989_v39 = vld [vmem:[#allocation7 + $0x38] sm:$0xff]   ;;  %1576 = vst [vmem:[#allocation7 + $0x118] sm:$0xf] %v1574_v56  ;;  %1598 = vst [vmem:[#allocation7 + $0x11c] sm:$0xf] %v1596_v57 }
  0x3f   :  { %v2990_v41 = vld [vmem:[#allocation7 + $0xb8] sm:$0xff]   ;;  %2801 = vmatpush3.bf16.msra.mxu0 %v2989_v39  ;;  %v3024_v3 = vld [vmem:[%s3655_s0 + $0xcc] ss:$20 sps:$4 sm:$0xff]   ;;  %v3026_v4 = vld [vmem:[%s3655_s0 + $0xd4] ss:$20 sps:$4 sm:$0xff]  }
  0x40   :  { %v2997_v43 = vld [vmem:[#allocation7 + $0x100] sm:$0xff]   ;;  %2865 = vmatpush3.bf16.msra.mxu1 %v2990_v41  ;;  %v3022_v2 = vld [vmem:[%s3655_s0 + $0xa8] ss:$20 sps:$4 sm:$0xff]   ;;  %v3035_v10 = vld [vmem:[%s3655_s0 + $0xf8] ss:$20 sps:$4 sm:$0xff]  }
  0x41   :  { %2926 = vmatprep.subr.bf16.mxu0 %v2997_v43  ;;  %2950 = vmatprep.subr.bf16.mxu1 %v2997_v43  ;;  %v3010_v45 = vld [vmem:[#allocation7 + $0x108] sm:$0xff]   ;;  %v3029_v6 = vld [vmem:[%s3655_s0 + $0xd0] ss:$20 sps:$4 sm:$0xff]   ;;  %v3042_v15 = vld [vmem:[%s3655_s0 + $0x120] ss:$20 sps:$4 sm:$0xff]  }
  0x42   :  { %2194 = vmatmul.mubr.bf16.vlgmr.msra.gmra.mrb[0].mxu0 %v2991_v38  ;;  %v3028_v5 = vld [vmem:[%s3655_s0 + $0xc8] ss:$20 sps:$4 sm:$0xff]   ;;  %v3034_v9 = vld [vmem:[%s3655_s0 + $0xf0] ss:$20 sps:$4 sm:$0xff]   ;;  %v3041_v14 = vld [vmem:[%s3655_s0 + $0x118] ss:$20 sps:$4 sm:$0xff]  }
  0x43   :  { %2291 = vmatmul.mubr.bf16.vlgmr.msra.gmra.mrb[0].mxu1 %v2994_v40  ;;  %2927 = vmatpush3.bf16.msra.mxu0 %v2997_v43  ;;  %v3030_v7 = vld [vmem:[%s3655_s0 + $0xf4] ss:$20 sps:$4 sm:$0xff]   ;;  %v3032_v8 = vld [vmem:[%s3655_s0 + $0xfc] ss:$20 sps:$4 sm:$0xff]   ;;  %v3039_v12 = vld [vmem:[%s3655_s0 + $0x124] ss:$20 sps:$4 sm:$0xff]  }
  0x44   :  { %2954 = vmatpush3.bf16.msra.mxu1 %v2997_v43  ;;  %2201 = vmatprep.mubr.bf16.mxu0 %v2998_v42  ;;  %v3023_v46 = vld [vmem:[#allocation7 + $0x110] sm:$0xff]   ;;  %v3045_v18 = vld [vmem:[%s3655_s0 + $0x38] ss:$20 sps:$4 sm:$0xff]   ;;  %v3049_v22 = vld [vmem:[%s3655_s0 + $0x88] ss:$20 sps:$4 sm:$0xff]  }
  0x45   :  { %2298 = vmatprep.mubr.bf16.mxu1 %v3000_v44  ;;  %2928 = vmatprep.subr.bf16.mxu0 %v3010_v45  ;;  %v3036_v59 = vld [vmem:[#allocation7 + $0x118] sm:$0xff]   ;;  %v3043_v16 = vld [vmem:[%s3655_s0 + $0x10] ss:$20 sps:$4 sm:$0xff]   ;;  %v3047_v20 = vld [vmem:[%s3655_s0 + $0x60] ss:$20 sps:$4 sm:$0xff]  }
  0x46   :  { %2951 = vmatprep.subr.bf16.mxu1 %v3010_v45  ;;  %v3037_v11 = vld [vmem:[%s3655_s0 + $0x11c] ss:$20 sps:$4 sm:$0xff]   ;;  %v3046_v19 = vld [vmem:[%s3655_s0 + $0xd8] ss:$20 sps:$4 sm:$0xff]   ;;  %v3048_v21 = vld [vmem:[%s3655_s0 + $0x100] ss:$20 sps:$4 sm:$0xff]  }
  0x47   :  { %2929 = vmatpush3.bf16.msra.mxu0 %v3010_v45  ;;  %v3044_v17 = vld [vmem:[%s3655_s0 + $0xb0] ss:$20 sps:$4 sm:$0xff]   ;;  %v3050_v23 = vld [vmem:[%s3655_s0 + $0x128] ss:$20 sps:$4 sm:$0xff]  }
  0x48   :  { %2955 = vmatpush3.bf16.msra.mxu1 %v3010_v45  ;;  %2930 = vmatprep.subr.bf16.mxu0 %v3023_v46 }
  0x49   :  { %2952 = vmatprep.subr.bf16.mxu1 %v3023_v46 }
  0x4a   :  { %2202 = vmatmul.mubr.bf16.gmra.mrb[4].mxu0 %v3002_v50 }
  0x4b   :  { %2299 = vmatmul.mubr.bf16.gmra.mrb[4].mxu1 %v3003_v51  ;;  %2209 = vmatprep.mubr.bf16.mxu0 %v3004_v52 }
  0x4c   :  { %2306 = vmatprep.mubr.bf16.mxu1 %v3006_v55  ;;  %2931 = vmatpush3.bf16.msra.mxu0 %v3023_v46 }
  0x4d   :  { %2956 = vmatpush3.bf16.msra.mxu1 %v3023_v46  ;;  %2932 = vmatprep.subr.bf16.mxu0 %v3036_v59 }
  0x4e   :  { %2953 = vmatprep.subr.bf16.mxu1 %v3036_v59 }
  0x50   :  { %2933 = vmatpush3.bf16.msra.mxu0 %v3036_v59 }
  0x51   :  { %2957 = vmatpush3.bf16.msra.mxu1 %v3036_v59 }
  0x52   :  { %2210 = vmatmul.mubr.bf16.gmra.mrb[8].mxu0 %v3008_v1 }
  0x53   :  { %2307 = vmatmul.mubr.bf16.gmra.mrb[8].mxu1 %v3009_v13  ;;  %2217 = vmatprep.mubr.bf16.mxu0 %v3011_v29 }
  0x54   :  { %2314 = vmatprep.mubr.bf16.mxu1 %v3013_v58 }
  0x5a   :  { %2218 = vmatmul.mubr.bf16.gmra.mrb[12].mxu0 %v3015_v60 }
  0x5b   :  { %2315 = vmatmul.mubr.bf16.gmra.mrb[12].mxu1 %v3016_v61  ;;  %2225 = vmatprep.mubr.bf16.mxu0 %v3017_v62 }
  0x5c   :  { %2322 = vmatprep.mubr.bf16.mxu1 %v3019_v63 }
  0x62   :  { %2226 = vmatmul.mubr.bf16.gmra.mrb[16].mxu0 %v3021_v0 }
  0x63   :  { %2323 = vmatmul.mubr.bf16.gmra.mrb[16].mxu1 %v3022_v2  ;;  %2233 = vmatprep.mubr.bf16.mxu0 %v3024_v3 }
  0x64   :  { %2330 = vmatprep.mubr.bf16.mxu1 %v3026_v4 }
  0x6a   :  { %2234 = vmatmul.mubr.bf16.gmra.mrb[20].mxu0 %v3028_v5 }
  0x6b   :  { %2331 = vmatmul.mubr.bf16.gmra.mrb[20].mxu1 %v3029_v6  ;;  %2241 = vmatprep.mubr.bf16.mxu0 %v3030_v7 }
  0x6c   :  { %2338 = vmatprep.mubr.bf16.mxu1 %v3032_v8 }
  0x72   :  { %2242 = vmatmul.mubr.bf16.gmra.mrb[24].mxu0 %v3034_v9 }
  0x73   :  { %2339 = vmatmul.mubr.bf16.gmra.mrb[24].mxu1 %v3035_v10  ;;  %2249 = vmatprep.mubr.bf16.mxu0 %v3037_v11 }
  0x74   :  { %2346 = vmatprep.mubr.bf16.mxu1 %v3039_v12 }
  0x7a   :  { %2250 = vmatmul.mubr.bf16.gmra.mrb[28].mxu0 %v3041_v14 }
  0x7b   :  { %2347 = vmatmul.mubr.bf16.gmra.mrb[28].mxu1 %v3042_v15  ;;  %2934 = vmatprep.mubr.msk.bf16.mxu0 %vm2136_vm1, %v3043_v16 }
  0x7c   :  { %2942 = vmatprep.mubr.msk.bf16.mxu1 %vm2136_vm1, %v3044_v17 }
  0x82   :  { %2935 = vmatmul.mubr.msk.bf16.vlgmr.msra.gmra.mrb[32].mxu0 %vm2136_vm1, %v3045_v18 }
  0x83   :  { %2943 = vmatmul.mubr.msk.bf16.vlgmr.msra.gmra.mrb[32].mxu1 %vm2136_vm1, %v3046_v19  ;;  %2938 = vmatprep.mubr.msk.bf16.mxu0 %vm2136_vm1, %v3047_v20 }
  0x84   :  { %2946 = vmatprep.mubr.msk.bf16.mxu1 %vm2136_vm1, %v3048_v21 }
  0x8a   :  { %2939 = vmatmul.mubr.msk.bf16.gmra.mrb[36].mxu0 %vm2136_vm1, %v3049_v22 }
  0x8b   :  { %2947 = vmatmul.mubr.msk.bf16.gmra.mrb[36].mxu1 %vm2136_vm1, %v3050_v23 }
 0x115   :  { %v2802_v24 = vpop.f32.mrb[0].mxu0 }
 0x116   :  { %v2866_v25 = vpop.f32.mrb[0].mxu1  ;;  %v2803_v26 = vpop.f32.mrb[1].mxu0 }
 0x117   :  { %v2804_v27 = vadd.f32 %v2803_v26, %v2802_v24  ;;  %v2867_v28 = vpop.f32.mrb[1].mxu1  ;;  %v2805_v30 = vpop.f32.mrb[2].mxu0 }
 0x118   :  { %v2868_v31 = vadd.f32 %v2867_v28, %v2866_v25  ;;  %v2869_v32 = vpop.f32.mrb[2].mxu1  ;;  %v2806_v33 = vpop.f32.mrb[3].mxu0 }
 0x119   :  { %v2807_v34 = vadd.f32 %v2806_v33, %v2805_v30  ;;  %v2870_v35 = vpop.f32.mrb[3].mxu1 }
 0x11a   :  { %v2871_v36 = vadd.f32 %v2870_v35, %v2869_v32  ;;  %v3604_v37 = vadd.f32 %v2868_v31, %v2804_v27 }
 0x11c   :  { %v3606_v38 = vadd.f32 %v2871_v36, %v2807_v34 }
 0x11d   :  { %v2808_v39 = vpop.f32.mrb[4].mxu0 }
 0x11e   :  { %v2872_v40 = vpop.f32.mrb[4].mxu1  ;;  %v2809_v41 = vpop.f32.mrb[5].mxu0 }
 0x11f   :  { %v2810_v42 = vadd.f32 %v2809_v41, %v2808_v39  ;;  %v2873_v43 = vpop.f32.mrb[5].mxu1  ;;  %v2811_v44 = vpop.f32.mrb[6].mxu0 }
 0x120   :  { %v2874_v45 = vadd.f32 %v2873_v43, %v2872_v40  ;;  %v2875_v46 = vpop.f32.mrb[6].mxu1  ;;  %v2812_v47 = vpop.f32.mrb[7].mxu0 }
 0x121   :  { %v2813_v48 = vadd.f32 %v2812_v47, %v2811_v44  ;;  %v2876_v49 = vpop.f32.mrb[7].mxu1 }
 0x122   :  { %v2877_v50 = vadd.f32 %v2876_v49, %v2875_v46  ;;  %v3608_v51 = vadd.f32 %v2874_v45, %v2810_v42 }
 0x124   :  { %v3610_v52 = vadd.f32 %v2877_v50, %v2813_v48 }
 0x125   :  { %v2814_v53 = vpop.f32.mrb[8].mxu0 }
 0x126   :  { %v2878_v54 = vpop.f32.mrb[8].mxu1  ;;  %v2815_v55 = vpop.f32.mrb[9].mxu0 }
 0x127   :  { %v2816_v56 = vadd.f32 %v2815_v55, %v2814_v53  ;;  %v2879_v57 = vpop.f32.mrb[9].mxu1  ;;  %v2817_v1 = vpop.f32.mrb[10].mxu0 }
 0x128   :  { %v2880_v13 = vadd.f32 %v2879_v57, %v2878_v54  ;;  %v2881_v29 = vpop.f32.mrb[10].mxu1  ;;  %v2818_v58 = vpop.f32.mrb[11].mxu0 }
 0x129   :  { %v2819_v59 = vadd.f32 %v2818_v58, %v2817_v1  ;;  %v2882_v60 = vpop.f32.mrb[11].mxu1 }
 0x12a   :  { %v2883_v61 = vadd.f32 %v2882_v60, %v2881_v29  ;;  %v3612_v62 = vadd.f32 %v2880_v13, %v2816_v56 }
 0x12c   :  { %v3614_v63 = vadd.f32 %v2883_v61, %v2819_v59 }
 0x12d   :  { %v2820_v0 = vpop.f32.mrb[12].mxu0 }
 0x12e   :  { %v2884_v2 = vpop.f32.mrb[12].mxu1  ;;  %v2821_v3 = vpop.f32.mrb[13].mxu0 }
 0x12f   :  { %v2822_v4 = vadd.f32 %v2821_v3, %v2820_v0  ;;  %v2885_v5 = vpop.f32.mrb[13].mxu1  ;;  %v2823_v6 = vpop.f32.mrb[14].mxu0 }
 0x130   :  { %v2886_v7 = vadd.f32 %v2885_v5, %v2884_v2  ;;  %v2887_v8 = vpop.f32.mrb[14].mxu1  ;;  %v2824_v9 = vpop.f32.mrb[15].mxu0 }
 0x131   :  { %v2825_v10 = vadd.f32 %v2824_v9, %v2823_v6  ;;  %v2888_v11 = vpop.f32.mrb[15].mxu1 }
 0x132   :  { %v2889_v12 = vadd.f32 %v2888_v11, %v2887_v8  ;;  %v3616_v14 = vadd.f32 %v2886_v7, %v2822_v4 }
 0x134   :  { %v3618_v15 = vadd.f32 %v2889_v12, %v2825_v10 }
 0x135   :  { %v2826_v16 = vpop.f32.mrb[16].mxu0 }
 0x136   :  { %v2890_v17 = vpop.f32.mrb[16].mxu1  ;;  %v2827_v18 = vpop.f32.mrb[17].mxu0 }
 0x137   :  { %v2828_v19 = vadd.f32 %v2827_v18, %v2826_v16  ;;  %v2891_v20 = vpop.f32.mrb[17].mxu1  ;;  %v2829_v21 = vpop.f32.mrb[18].mxu0 }
 0x138   :  { %v2892_v22 = vadd.f32 %v2891_v20, %v2890_v17  ;;  %v2893_v23 = vpop.f32.mrb[18].mxu1  ;;  %v2830_v24 = vpop.f32.mrb[19].mxu0 }
 0x139   :  { %v2831_v25 = vadd.f32 %v2830_v24, %v2829_v21  ;;  %v2894_v26 = vpop.f32.mrb[19].mxu1 }
 0x13a   :  { %v2895_v27 = vadd.f32 %v2894_v26, %v2893_v23  ;;  %v2325_v28 = vadd.f32 %v2892_v22, %v2828_v19 }
 0x13c   :  { %v2328_v30 = vadd.f32 %v2895_v27, %v2831_v25 }
 0x13d   :  { %v2832_v31 = vpop.f32.mrb[20].mxu0 }
 0x13e   :  { %v2896_v32 = vpop.f32.mrb[20].mxu1  ;;  %v2833_v33 = vpop.f32.mrb[21].mxu0 }
 0x13f   :  { %v2834_v34 = vadd.f32 %v2833_v33, %v2832_v31  ;;  %v2897_v35 = vpop.f32.mrb[21].mxu1  ;;  %v2835_v36 = vpop.f32.mrb[22].mxu0 }
 0x140   :  { %v2898_v39 = vadd.f32 %v2897_v35, %v2896_v32  ;;  %v2899_v40 = vpop.f32.mrb[22].mxu1  ;;  %v2836_v41 = vpop.f32.mrb[23].mxu0 }
 0x141   :  { %v2837_v42 = vadd.f32 %v2836_v41, %v2835_v36  ;;  %v2900_v43 = vpop.f32.mrb[23].mxu1 }
 0x142   :  { %v2901_v44 = vadd.f32 %v2900_v43, %v2899_v40  ;;  %v2333_v45 = vadd.f32 %v2898_v39, %v2834_v34 }
 0x144   :  { %v2336_v46 = vadd.f32 %v2901_v44, %v2837_v42 }
 0x145   :  { %v2838_v47 = vpop.f32.mrb[24].mxu0 }
 0x146   :  { %v2902_v48 = vpop.f32.mrb[24].mxu1  ;;  %v2839_v49 = vpop.f32.mrb[25].mxu0 }
 0x147   :  { %v2840_v50 = vadd.f32 %v2839_v49, %v2838_v47  ;;  %v2903_v53 = vpop.f32.mrb[25].mxu1  ;;  %v2841_v54 = vpop.f32.mrb[26].mxu0 }
 0x148   :  { %v2904_v55 = vadd.f32 %v2903_v53, %v2902_v48  ;;  %v2905_v56 = vpop.f32.mrb[26].mxu1  ;;  %v2842_v57 = vpop.f32.mrb[27].mxu0 }
 0x149   :  { %v2843_v1 = vadd.f32 %v2842_v57, %v2841_v54  ;;  %v2906_v13 = vpop.f32.mrb[27].mxu1 }
 0x14a   :  { %v2907_v29 = vadd.f32 %v2906_v13, %v2905_v56  ;;  %v2341_v58 = vadd.f32 %v2904_v55, %v2840_v50 }
 0x14c   :  { %v3620_v59 = vadd.f32 %v2907_v29, %v2843_v1 }
 0x14d   :  { %v2844_v60 = vpop.f32.mrb[28].mxu0 }
 0x14e   :  { %v2908_v61 = vpop.f32.mrb[28].mxu1  ;;  %v2845_v0 = vpop.f32.mrb[29].mxu0 }
 0x14f   :  { %v2846_v2 = vadd.f32 %v2845_v0, %v2844_v60  ;;  %v2909_v3 = vpop.f32.mrb[29].mxu1  ;;  %v2847_v4 = vpop.f32.mrb[30].mxu0 }
 0x150   :  { %v2910_v5 = vadd.f32 %v2909_v3, %v2908_v61  ;;  %v2911_v6 = vpop.f32.mrb[30].mxu1  ;;  %v2848_v7 = vpop.f32.mrb[31].mxu0 }
 0x151   :  { %v2849_v8 = vadd.f32 %v2848_v7, %v2847_v4  ;;  %v2912_v9 = vpop.f32.mrb[31].mxu1 }
 0x152   :  { %v2913_v10 = vadd.f32 %v2912_v9, %v2911_v6  ;;  %v2349_v11 = vadd.f32 %v2910_v5, %v2846_v2 }
 0x154   :  { %v2352_v12 = vadd.f32 %v2913_v10, %v2849_v8 }
 0x155   :  { %v2936_v16 = vpop.f32.mrb[32].mxu0 }
 0x156   :  { %v2398_v17 = vadd.f32 %v2936_v16, %v3608_v51  ;;  %v2944_v18 = vpop.f32.mrb[32].mxu1  ;;  %v2389_v19 = vpop.f32.mrb[33].mxu0 }
 0x157   :  { %v2430_v20 = vadd.f32 %v2944_v18, %v2333_v45  ;;  %v2390_v21 = vadd.f32 %v2389_v19, %v3604_v37  ;;  %v2421_v22 = vpop.f32.mrb[33].mxu1  ;;  %v2937_v23 = vpop.f32.mrb[34].mxu0 }
 0x158   :  { %v2422_v24 = vadd.f32 %v2421_v22, %v2325_v28  ;;  %v2401_v25 = vadd.f32 %v2937_v23, %v3610_v52  ;;  %v2945_v26 = vpop.f32.mrb[34].mxu1  ;;  %v2392_v27 = vpop.f32.mrb[35].mxu0  ;;  %v2454_v34 = vmax.f32 %v2398_v17, 0.0 }
 0x159   :  { %v2433_v31 = vadd.f32 %v2945_v26, %v2336_v46  ;;  %v2393_v32 = vadd.f32 %v2392_v27, %v3606_v38  ;;  %v2424_v33 = vpop.f32.mrb[35].mxu1  ;;  %v2462_v51 = vmax.f32 %v2430_v20, 0.0  ;;  %v2452_v39 = vmax.f32 %v2390_v21, 0.0 }
 0x15a   :  { %v2455_v35 = vmax.f32 %v2401_v25, 0.0  ;;  %v2425_v36 = vadd.f32 %v2424_v33, %v2328_v30  ;;  %v2460_v42 = vmax.f32 %v2422_v24, 0.0 }
 0x15b   :  { %v2463_v40 = vmax.f32 %v2433_v31, 0.0  ;;  %v2453_v41 = vmax.f32 %v2393_v32, 0.0 }
 0x15c   :  { %v2747_v37 = vpack.c.bf16 %v2455_v35, %v2454_v34  ;;  %v2461_v43 = vmax.f32 %v2425_v36, 0.0 }
 0x15d   :  { %v2767_v44 = vpack.c.bf16 %v2463_v40, %v2462_v51  ;;  %v2742_v28 = vpack.c.bf16 %v2453_v41, %v2452_v39  ;;  %v2940_v45 = vpop.f32.mrb[36].mxu0 }
 0x15e   :  { %2779 = vst [vmem:[%s3658_s3 + $0x8] sm:$0xff] %v2747_v37   ;;  %v2762_v52 = vpack.c.bf16 %v2461_v43, %v2460_v42  ;;  %v2414_v38 = vadd.f32 %v2940_v45, %v3616_v14  ;;  %v2948_v46 = vpop.f32.mrb[36].mxu1  ;;  %v2405_v47 = vpop.f32.mrb[37].mxu0 }
 0x15f   :  { %2783 = vst [vmem:[%s3658_s3 + $0x28] sm:$0xff] %v2767_v44   ;;  %2743 = vst [vmem:[%s3658_s3] sm:$0xff] %v2742_v28   ;;  %v2446_v30 = vadd.f32 %v2948_v46, %v2349_v11  ;;  %v2406_v48 = vadd.f32 %v2405_v47, %v3612_v62  ;;  %v2437_v49 = vpop.f32.mrb[37].mxu1  ;;  %v2941_v50 = vpop.f32.mrb[38].mxu0 }
 0x160   :  { %2782 = vst [vmem:[%s3658_s3 + $0x20] sm:$0xff] %v2762_v52   ;;  %v2438_v14 = vadd.f32 %v2437_v49, %v2341_v58  ;;  %v2417_v53 = vadd.f32 %v2941_v50, %v3618_v15  ;;  %v2949_v54 = vpop.f32.mrb[38].mxu1  ;;  %v2408_v55 = vpop.f32.mrb[39].mxu0  ;;  %v2458_v13 = vmax.f32 %v2414_v38, 0.0 }
 0x161   :  { %v2449_v56 = vadd.f32 %v2949_v54, %v2352_v12  ;;  %v2409_v57 = vadd.f32 %v2408_v55, %v3614_v63  ;;  %v2440_v1 = vpop.f32.mrb[39].mxu1  ;;  %v2466_v62 = vmax.f32 %v2446_v30, 0.0  ;;  %v2456_v61 = vmax.f32 %v2406_v48, 0.0 }
 0x162   :  { %v2459_v29 = vmax.f32 %v2417_v53, 0.0  ;;  %v2441_v60 = vadd.f32 %v2440_v1, %v3620_v59  ;;  %v2464_v3 = vmax.f32 %v2438_v14, 0.0 }
 0x163   :  { %v2467_v0 = vmax.f32 %v2449_v56, 0.0  ;;  %v2457_v2 = vmax.f32 %v2409_v57, 0.0 }
 0x164   :  { %v2757_v4 = vpack.c.bf16 %v2459_v29, %v2458_v13  ;;  %v2465_v5 = vmax.f32 %v2441_v60, 0.0 }
 0x165   :  { %v2777_v58 = vpack.c.bf16 %v2467_v0, %v2466_v62  ;;  %v2752_v6 = vpack.c.bf16 %v2457_v2, %v2456_v61 }
 0x166   :  { %2781 = vst [vmem:[%s3658_s3 + $0x18] sm:$0xff] %v2757_v4   ;;  %v2772_v15 = vpack.c.bf16 %v2465_v5, %v2464_v3 }
 0x167   :  { %2785 = vst [vmem:[%s3658_s3 + $0x38] sm:$0xff] %v2777_v58   ;;  %2780 = vst [vmem:[%s3658_s3 + $0x10] sm:$0xff] %v2752_v6  }
 0x168   :  { %2784 = vst [vmem:[%s3658_s3 + $0x30] sm:$0xff] %v2772_v15  }

// kernel: netconv_forward.9
= control target key start
LH: loop header
LB: loop body
LE: loop exit
PB: predicated region body
PF: predicated region fallthrough
CT: control target
= control target key end

     0   :  { %vm1177_vm0 = vmmov 0   ;;  %s1440_s0 = inlined_call_operand.vmem [shape: bf16[8,1152], index: 0, kind: input, shape index: {}]   ;;  %s1441_s1 = inlined_call_operand.vmem [shape: bf16[1152,10], index: 1, kind: input, shape index: {}]   ;;  %s1442_s2 = inlined_call_operand.hbm [shape: f32[2,10], index: 2, kind: output, shape index: {}]  }
   0x1   :  { %v1067_v0 = vld [vmem:[%s1441_s1 + $0x40] sm:$0xff]   ;;  %v1071_v4 = vld [vmem:[%s1441_s1 + $0x48] sm:$0xff]   ;;  %v1075_v8 = vld [vmem:[%s1441_s1 + $0x50] sm:$0xff]  }
   0x2   :  { %v1068_v1 = vld [vmem:[%s1441_s1 + $0xc0] sm:$0xff]   ;;  %947 = vmatprep.subr.bf16.mxu0 %v1067_v0  ;;  %v1072_v5 = vld [vmem:[%s1441_s1 + $0xc8] sm:$0xff]   ;;  %v1076_v9 = vld [vmem:[%s1441_s1 + $0xd0] sm:$0xff]  }
   0x3   :  { %v1069_v2 = vld [vmem:[%s1441_s1] sm:$0xff]   ;;  %969 = vmatprep.subr.bf16.mxu1 %v1068_v1  ;;  %v1073_v6 = vld [vmem:[%s1441_s1 + $0x8] sm:$0xff]   ;;  %v1077_v10 = vld [vmem:[%s1441_s1 + $0x10] sm:$0xff]  }
   0x4   :  { %v1070_v3 = vld [vmem:[%s1441_s1 + $0x80] sm:$0xff]   ;;  %948 = vmatpush3.bf16.msra.mxu0 %v1069_v2  ;;  %v1074_v7 = vld [vmem:[%s1441_s1 + $0x88] sm:$0xff]   ;;  %v1078_v11 = vld [vmem:[%s1441_s1 + $0x90] sm:$0xff]  }
   0x5   :  { %970 = vmatpush3.bf16.msra.mxu1 %v1070_v3  ;;  %949 = vmatprep.subr.bf16.mxu0 %v1071_v4  ;;  %v1079_v12 = vld [vmem:[%s1441_s1 + $0x58] sm:$0xff]   ;;  %v1083_v16 = vld [vmem:[%s1441_s1 + $0x60] sm:$0xff]   ;;  %v1087_v20 = vld [vmem:[%s1441_s1 + $0x68] sm:$0xff]  }
   0x6   :  { %971 = vmatprep.subr.bf16.mxu1 %v1072_v5  ;;  %v1080_v13 = vld [vmem:[%s1441_s1 + $0xd8] sm:$0xff]   ;;  %v1084_v17 = vld [vmem:[%s1441_s1 + $0xe0] sm:$0xff]   ;;  %v1088_v21 = vld [vmem:[%s1441_s1 + $0xe8] sm:$0xff]  }
   0x7   :  { %v1081_v14 = vld [vmem:[%s1441_s1 + $0x18] sm:$0xff]   ;;  %v1085_v18 = vld [vmem:[%s1441_s1 + $0x20] sm:$0xff]   ;;  %v1089_v22 = vld [vmem:[%s1441_s1 + $0x28] sm:$0xff]  }
   0x8   :  { %950 = vmatpush3.bf16.msra.mxu0 %v1073_v6  ;;  %v1082_v15 = vld [vmem:[%s1441_s1 + $0x98] sm:$0xff]   ;;  %v1086_v19 = vld [vmem:[%s1441_s1 + $0xa0] sm:$0xff]   ;;  %v1090_v23 = vld [vmem:[%s1441_s1 + $0xa8] sm:$0xff]  }
   0x9   :  { %972 = vmatpush3.bf16.msra.mxu1 %v1074_v7  ;;  %951 = vmatprep.subr.bf16.mxu0 %v1075_v8  ;;  %v1091_v24 = vld [vmem:[%s1441_s1 + $0x70] sm:$0xff]   ;;  %v1095_v28 = vld [vmem:[%s1441_s1 + $0x78] sm:$0xff]   ;;  %v13_v32 = vld [vmem:[%s1440_s0] sm:$0xff] }
   0xa   :  { %973 = vmatprep.subr.bf16.mxu1 %v1076_v9  ;;  %v1092_v25 = vld [vmem:[%s1441_s1 + $0xf0] sm:$0xff]   ;;  %v1096_v29 = vld [vmem:[%s1441_s1 + $0xf8] sm:$0xff]   ;;  %v14_v33 = vld [vmem:[%s1440_s0 + $0x8] sm:$0xff]  ;;  %v866_v34 = vcombine.low %v13_v32, %v13_v32  ;;  %v867_v35 = vcombine.high %v13_v32, %v13_v32 }
   0xb   :  { %v1093_v26 = vld [vmem:[%s1441_s1 + $0x30] sm:$0xff]   ;;  %v1097_v30 = vld [vmem:[%s1441_s1 + $0x38] sm:$0xff]   ;;  %v868_v36 = vcombine.low %v14_v33, %v14_v33  ;;  %v869_v37 = vcombine.high %v14_v33, %v14_v33  ;;  %v1103_v38 = vld [vmem:[%s1441_s1 + $0x140] sm:$0xff]  }
   0xc   :  { %952 = vmatpush3.bf16.msra.mxu0 %v1077_v10  ;;  %v1094_v27 = vld [vmem:[%s1441_s1 + $0xb0] sm:$0xff]   ;;  %v1098_v31 = vld [vmem:[%s1441_s1 + $0xb8] sm:$0xff]   ;;  %v1104_v39 = vld [vmem:[%s1441_s1 + $0x100] sm:$0xff]   ;;  %658 = vmatprep.mubr.bf16.mxu0 %v867_v35 }
   0xd   :  { %974 = vmatpush3.bf16.msra.mxu1 %v1078_v11  ;;  %953 = vmatprep.subr.bf16.mxu0 %v1079_v12  ;;  %v1105_v40 = vld [vmem:[%s1441_s1 + $0x1c0] sm:$0xff]   ;;  %v1107_v42 = vld [vmem:[%s1441_s1 + $0x148] sm:$0xff]   ;;  %v1111_v46 = vld [vmem:[%s1441_s1 + $0x150] sm:$0xff]  }
   0xe   :  { %975 = vmatprep.subr.bf16.mxu1 %v1080_v13  ;;  %698 = vmatprep.mubr.bf16.mxu1 %v869_v37  ;;  %v1106_v41 = vld [vmem:[%s1441_s1 + $0x180] sm:$0xff]   ;;  %v1108_v43 = vld [vmem:[%s1441_s1 + $0x108] sm:$0xff]   ;;  %v1112_v47 = vld [vmem:[%s1441_s1 + $0x110] sm:$0xff]   ;;  %v1176_v13 = vmov 0.0  }
   0xf   :  { %v1109_v44 = vld [vmem:[%s1441_s1 + $0x1c8] sm:$0xff]   ;;  %v1113_v48 = vld [vmem:[%s1441_s1 + $0x1d0] sm:$0xff]   ;;  %v1115_v50 = vld [vmem:[%s1441_s1 + $0x158] sm:$0xff]  }
  0x10   :  { %954 = vmatpush3.bf16.msra.mxu0 %v1081_v14  ;;  %v1110_v45 = vld [vmem:[%s1441_s1 + $0x188] sm:$0xff]   ;;  %v1114_v49 = vld [vmem:[%s1441_s1 + $0x190] sm:$0xff]   ;;  %v1116_v51 = vld [vmem:[%s1441_s1 + $0x118] sm:$0xff]  }
  0x11   :  { %976 = vmatpush3.bf16.msra.mxu1 %v1082_v15  ;;  %955 = vmatprep.subr.bf16.mxu0 %v1083_v16  ;;  %v1117_v52 = vld [vmem:[%s1441_s1 + $0x1d8] sm:$0xff]   ;;  %v1119_v54 = vld [vmem:[%s1441_s1 + $0x160] sm:$0xff]   ;;  %v1123_v58 = vld [vmem:[%s1441_s1 + $0x168] sm:$0xff]  }
  0x12   :  { %977 = vmatprep.subr.bf16.mxu1 %v1084_v17  ;;  %v1118_v53 = vld [vmem:[%s1441_s1 + $0x198] sm:$0xff]   ;;  %v1120_v55 = vld [vmem:[%s1441_s1 + $0x120] sm:$0xff]   ;;  %v1124_v59 = vld [vmem:[%s1441_s1 + $0x128] sm:$0xff]  }
  0x13   :  { %v1121_v56 = vld [vmem:[%s1441_s1 + $0x1e0] sm:$0xff]   ;;  %v1125_v60 = vld [vmem:[%s1441_s1 + $0x1e8] sm:$0xff]   ;;  %v1127_v62 = vld [vmem:[%s1441_s1 + $0x170] sm:$0xff]  }
  0x14   :  { %956 = vmatpush3.bf16.msra.mxu0 %v1085_v18  ;;  %v1122_v57 = vld [vmem:[%s1441_s1 + $0x1a0] sm:$0xff]   ;;  %v1126_v61 = vld [vmem:[%s1441_s1 + $0x1a8] sm:$0xff]   ;;  %v1128_v63 = vld [vmem:[%s1441_s1 + $0x130] sm:$0xff]  }
  0x15   :  { %978 = vmatpush3.bf16.msra.mxu1 %v1086_v19  ;;  %957 = vmatprep.subr.bf16.mxu0 %v1087_v20  ;;  %v1129_v0 = vld [vmem:[%s1441_s1 + $0x1f0] sm:$0xff]   ;;  %v1131_v2 = vld [vmem:[%s1441_s1 + $0x178] sm:$0xff]   ;;  %v1139_v12 = vld [vmem:[%s1441_s1 + $0x200] sm:$0xff]  }
  0x16   :  { %979 = vmatprep.subr.bf16.mxu1 %v1088_v21  ;;  %v1130_v1 = vld [vmem:[%s1441_s1 + $0x1b0] sm:$0xff]   ;;  %v1132_v3 = vld [vmem:[%s1441_s1 + $0x138] sm:$0xff]   ;;  %v1140_v14 = vld [vmem:[%s1441_s1 + $0x208] sm:$0xff]  }
  0x17   :  { %v1133_v4 = vld [vmem:[%s1441_s1 + $0x1f8] sm:$0xff]   ;;  %v15_v5 = vld [vmem:[%s1440_s0 + $0x10] sm:$0xff] }
  0x18   :  { %958 = vmatpush3.bf16.msra.mxu0 %v1089_v22  ;;  %v871_v6 = vcombine.high %v15_v5, %v15_v5  ;;  %v1136_v7 = vld [vmem:[%s1441_s1 + $0x1b8] sm:$0xff]   ;;  %v870_v8 = vcombine.low %v15_v5, %v15_v5  ;;  %v1141_v15 = vld [vmem:[%s1441_s1 + $0x210] sm:$0xff]  }
  0x19   :  { %980 = vmatpush3.bf16.msra.mxu1 %v1090_v23  ;;  %959 = vmatprep.subr.bf16.mxu0 %v1091_v24  ;;  %v16_v9 = vld [vmem:[%s1440_s0 + $0x18] sm:$0xff] }
  0x1a   :  { %981 = vmatprep.subr.bf16.mxu1 %v1092_v25  ;;  %v872_v10 = vcombine.low %v16_v9, %v16_v9  ;;  %v873_v11 = vcombine.high %v16_v9, %v16_v9 }
  0x1c   :  { %960 = vmatpush3.bf16.msra.mxu0 %v1093_v26 }
  0x1d   :  { %982 = vmatpush3.bf16.msra.mxu1 %v1094_v27  ;;  %961 = vmatprep.subr.bf16.mxu0 %v1095_v28 }
  0x1e   :  { %983 = vmatprep.subr.bf16.mxu1 %v1096_v29 }
  0x20   :  { %962 = vmatpush3.bf16.msra.mxu0 %v1097_v30 }
  0x21   :  { %984 = vmatpush3.bf16.msra.mxu1 %v1098_v31  ;;  %991 = vmatprep.subr.bf16.mxu0 %v1103_v38 }
  0x22   :  { %1013 = vmatprep.subr.bf16.mxu1 %v1105_v40 }
  0x23   :  { %659 = vmatmul.mubr.bf16.vlgmr.msra.gmra.mrb[0].mxu0 %v866_v34 }
  0x24   :  { %699 = vmatmul.mubr.bf16.vlgmr.msra.gmra.mrb[0].mxu1 %v868_v36  ;;  %992 = vmatpush3.bf16.msra.mxu0 %v1104_v39 }
  0x25   :  { %1014 = vmatpush3.bf16.msra.mxu1 %v1106_v41  ;;  %993 = vmatprep.subr.bf16.mxu0 %v1107_v42 }
  0x26   :  { %1015 = vmatprep.subr.bf16.mxu1 %v1109_v44  ;;  %738 = vmatprep.mubr.bf16.mxu0 %v871_v6 }
  0x27   :  { %778 = vmatprep.mubr.bf16.mxu1 %v873_v11 }
  0x28   :  { %994 = vmatpush3.bf16.msra.mxu0 %v1108_v43 }
  0x29   :  { %1016 = vmatpush3.bf16.msra.mxu1 %v1110_v45  ;;  %995 = vmatprep.subr.bf16.mxu0 %v1111_v46 }
  0x2a   :  { %1017 = vmatprep.subr.bf16.mxu1 %v1113_v48 }
  0x2c   :  { %996 = vmatpush3.bf16.msra.mxu0 %v1112_v47 }
  0x2d   :  { %1018 = vmatpush3.bf16.msra.mxu1 %v1114_v49  ;;  %997 = vmatprep.subr.bf16.mxu0 %v1115_v50 }
  0x2e   :  { %1019 = vmatprep.subr.bf16.mxu1 %v1117_v52 }
  0x30   :  { %998 = vmatpush3.bf16.msra.mxu0 %v1116_v51 }
  0x31   :  { %1020 = vmatpush3.bf16.msra.mxu1 %v1118_v53  ;;  %999 = vmatprep.subr.bf16.mxu0 %v1119_v54 }
  0x32   :  { %1021 = vmatprep.subr.bf16.mxu1 %v1121_v56 }
  0x34   :  { %1000 = vmatpush3.bf16.msra.mxu0 %v1120_v55 }
  0x35   :  { %1022 = vmatpush3.bf16.msra.mxu1 %v1122_v57  ;;  %1001 = vmatprep.subr.bf16.mxu0 %v1123_v58 }
  0x36   :  { %1023 = vmatprep.subr.bf16.mxu1 %v1125_v60 }
  0x38   :  { %1002 = vmatpush3.bf16.msra.mxu0 %v1124_v59 }
  0x39   :  { %1024 = vmatpush3.bf16.msra.mxu1 %v1126_v61  ;;  %1003 = vmatprep.subr.bf16.mxu0 %v1127_v62 }
  0x3a   :  { %1025 = vmatprep.subr.bf16.mxu1 %v1129_v0 }
  0x3c   :  { %1004 = vmatpush3.bf16.msra.mxu0 %v1128_v63 }
  0x3d   :  { %1026 = vmatpush3.bf16.msra.mxu1 %v1130_v1  ;;  %1005 = vmatprep.subr.bf16.mxu0 %v1131_v2 }
  0x3e   :  { %1027 = vmatprep.subr.bf16.mxu1 %v1133_v4 }
  0x40   :  { %1006 = vmatpush3.bf16.msra.mxu0 %v1132_v3 }
  0x41   :  { %1028 = vmatpush3.bf16.msra.mxu1 %v1136_v7  ;;  %1044 = vmatprep.subr.bf16.mxu0 %v1176_v13 }
  0x43   :  { %739 = vmatmul.mubr.bf16.vlgmr.msra.gmra.mrb[4].mxu0 %v870_v8 }
  0x44   :  { %1045 = vmatpush3.bf16.msra.mxu0 %v1139_v12  ;;  %779 = vmatmul.mubr.bf16.vlgmr.msra.gmra.mrb[4].mxu1 %v872_v10 }
  0x45   :  { %1046 = vmatprep.subr.bf16.mxu0 %v1176_v13  ;;  %1060 = vmatprep.mubr.msk.bf16.mxu0 %vm1177_vm0, %v1176_v13 }
  0x48   :  { %1047 = vmatpush3.bf16.msra.mxu0 %v1140_v14 }
  0x49   :  { %7 = vsyncpa [#allocation3], 0  ;;  %1048 = vmatprep.subr.bf16.mxu0 %v1176_v13  ;;  %v1142_v16 = vld [vmem:[%s1441_s1 + $0x218] sm:$0xff]   ;;  %v1143_v17 = vld [vmem:[%s1441_s1 + $0x220] sm:$0xff]   ;;  %vm838_vm1 = vcmask 74752  }
  0x4a   :  { %v1144_v18 = vld [vmem:[%s1441_s1 + $0x228] sm:$0xff]   ;;  %v1145_v19 = vld [vmem:[%s1441_s1 + $0x230] sm:$0xff]   ;;  %v1146_v20 = vld [vmem:[%s1441_s1 + $0x238] sm:$0xff]  }
  0x4b   :  { %v1147_v21 = vld [vmem:[%s1440_s0 + $0x20] ss:$0 sps:$4 sm:$0xff]   ;;  %s1178_s0 = smov [#allocation2]  }
  0x4c   :  { %1049 = vmatpush3.bf16.msra.mxu0 %v1141_v15  ;;  %s858_s1 = sshll.u32 %s1178_s0, 4  ;;  %s859_s1 = int_to_ptr.vmem [resolvable:$true] %s858_s1 }
  0x4d   :  { %1050 = vmatprep.subr.bf16.mxu0 %v1176_v13  ;;  %s1152_s23 = scalar_lea.vmem %s859_s1, 32  ;;  %p1157_p1 = scmp.lt.s32.totalorder %s859_s1, %s859_s1 }
  0x4e   :  { %p1153_p0 = scmp.ne.s32.totalorder %s859_s1, %s1152_s23  ;;  %p1158_p2 = scmp.lt.s32.totalorder %s1152_s23, %s1152_s23 }
  0x50   :  { %1051 = vmatpush3.bf16.msra.mxu0 %v1142_v16  ;;  %p1159_p3 = por %p1158_p2, %p1157_p1 }
  0x51   :  { %1052 = vmatprep.subr.bf16.mxu0 %v1176_v13 }
  0x52   :  { %p1160_p4 = pnand %p1159_p3, %p1153_p0 }
  0x54   :  { %1053 = vmatpush3.bf16.msra.mxu0 %v1143_v17 }
  0x55   :  { %1054 = vmatprep.subr.bf16.mxu0 %v1176_v13 }
  0x58   :  { %1055 = vmatpush3.bf16.msra.mxu0 %v1144_v18 }
  0x59   :  { %1056 = vmatprep.subr.bf16.mxu0 %v1176_v13 }
  0x5c   :  { %1057 = vmatpush3.bf16.msra.mxu0 %v1145_v19 }
  0x5d   :  { %1058 = vmatprep.subr.bf16.mxu0 %v1176_v13 }
  0x60   :  { %1059 = vmatpush3.bf16.msra.mxu0 %v1146_v20 }
  0x63   :  { %1061 = vmatmul.mubr.bf16.vlgmr.msra.gmra.mrb[8].mxu0 %v1147_v21 }
  0xf6   :  { %v963_v22 = vpop.f32.mrb[0].mxu0 }
  0xf7   :  { %v985_v23 = vpop.f32.mrb[0].mxu1  ;;  %v964_v24 = vpop.f32.mrb[1].mxu0 }
  0xf8   :  { %v986_v25 = vpop.f32.mrb[1].mxu1  ;;  %v965_v26 = vadd.f32 %v964_v24, %v963_v22  ;;  %v966_v28 = vpop.f32.mrb[2].mxu0 }
  0xf9   :  { %v987_v27 = vadd.f32 %v986_v25, %v985_v23  ;;  %v988_v29 = vpop.f32.mrb[2].mxu1  ;;  %v967_v30 = vpop.f32.mrb[3].mxu0 }
  0xfa   :  { %v989_v31 = vpop.f32.mrb[3].mxu1 }
  0xfb   :  { %v701_v32 = vadd.f32 %v987_v27, %v965_v26 }
 0x116   :  { %v1007_v33 = vpop.f32.mrb[4].mxu0 }
 0x117   :  { %v1008_v34 = vpop.f32.mrb[5].mxu0  ;;  %v1029_v35 = vpop.f32.mrb[4].mxu1 }
 0x118   :  { %v1009_v36 = vadd.f32 %v1008_v34, %v1007_v33  ;;  %v1010_v37 = vpop.f32.mrb[6].mxu0  ;;  %v1030_v38 = vpop.f32.mrb[5].mxu1 }
 0x119   :  { %v1011_v39 = vpop.f32.mrb[7].mxu0  ;;  %v1031_v40 = vadd.f32 %v1030_v38, %v1029_v35  ;;  %v1032_v41 = vpop.f32.mrb[6].mxu1 }
 0x11a   :  { %v741_v42 = vadd.f32 %v1009_v36, %v701_v32  ;;  %v1033_v43 = vpop.f32.mrb[7].mxu1 }
 0x11c   :  { %v781_v44 = vadd.f32 %v1031_v40, %v741_v42 }
 0x136   :  { %v820_v45 = vpop.f32.mrb[8].mxu0 }
 0x137   :  { %v821_v46 = vadd.f32 %v820_v45, %v781_v44  ;;  %v1062_v47 = vpop.f32.mrb[9].mxu0 }
 0x138   :  { %v823_v48 = vpop.f32.mrb[10].mxu0 }
 0x139   :  { %v826_v49 = vmax.f32 %v821_v46, 0.0  ;;  %v1063_v50 = vpop.f32.mrb[11].mxu0 }
 0x13b   :  { %v828_v51 = vrot.slane %v826_v49, 2  ;;  %v831_v53 = vrot.slane %v826_v49, 4  ;;  %v834_v55 = vrot.slane %v826_v49, 6 }
 0x13d   :  { %v830_v52 = vadd.f32 %v828_v51, %v826_v49 }
 0x13f   :  { %v833_v54 = vadd.f32 %v831_v53, %v830_v52 }
 0x141   :  { %v836_v56 = vadd.f32 %v834_v55, %v833_v54 }
 0x143   :  { %v837_v57 = vmul.f32 0.25, %v836_v56 }
 0x145   :  { %v839_v58 = vsel %vm838_vm1, %v837_v57, -inf }
 0x146   :  { %840 = vmax.xlane.f32.xlu0 %v839_v58 }
 0x1d3   :  { %v841_v59 = vpop.xlane.xlu0 %840 }
 0x1d4   :  { %v842_v60 = vsub.f32 %v837_v57, %v841_v59 }
 0x1d6   :  { %v843_v61 = vmul.f32 1.442695, %v842_v60 }
 0x1d8   :  { %1148 = vpow2.f32 %v843_v61 }
 0x1e2   :  { %v1149_v62 = vpop.eup %1148 }
 0x1e3   :  { %v845_v63 = vsel %vm838_vm1, %v1149_v62, 0.0 }
 0x1e4   :  { %846 = vadd.xlane.f32.xlu0 %v845_v63 }
 0x271   :  { %v847_v0 = vpop.xlane.xlu0 %846 }
 0x272   :  { %1150 = vlog2.f32 %v847_v0 }
 0x27c   :  { %v1151_v1 = vpop.eup %1150 }
 0x27d   :  { %v849_v2 = vmul.f32 0.6931472, %v1151_v1 }
 0x27f   :  { %v850_v3 = vsub.f32 %v842_v60, %v849_v2 }
 0x281   :  { %851 = vst.msk [vmem:[#allocation2] sm:$0x3] %vm838_vm1, %v850_v3 }
 0x282   :  { %1163 = shalt.err (!%p1160_p4)
}
 0x283   :  { %s1164_s26 = scalar_lea.hbm %s1442_s2, 32 }
 0x284   :  { %p1165_p5 = scmp.ne.s32.totalorder %s1442_s2, %s1164_s26  ;;  %p1168_p6 = scmp.lt.u32.totalorder %s1164_s26, %s1442_s2 }
 0x286   :  { %p1170_p7 = pnand %p1168_p6, %p1165_p5 }
 0x288   :  { %1173 = shalt.err (!%p1170_p7)
}
 0x289   :  { %861 = dma.vmem_to_hbm [thread:$0]  %s859_s1, 32, %s1442_s2, [#allocation3]  }
 0x28a   :  { %1174 = dma.done.wait [#allocation3], 32  }
 0x28b   :  { %1175 = vsyncadd [#allocation3], 4294967264 }
 0x28c   :  { %865 = vsyncpa [#allocation3], 1 }

</bundles_post_ra>
